<compile_context>
chip_gen: v6e
topology: v6e:2x2x1
jax: 0.10.0
libtpu: 0.0.40
codegen_flags: <defaults>
</compile_context>

<pallas_src>
import jax
import jax.numpy as jnp
from jax import lax
from jax.experimental import pallas as pl
from jax.experimental.pallas import tpu as pltpu

P_HIST = 11   # history horizon used by the reference (gt_trajs_rel[:, :11])
IN_CH = 3     # (dx, dy, valid-or-score)


def _round_up(x, m):
    return ((x + m - 1) // m) * m


# --------------------------------------------------------------------------------------
# Weight-slab packing (few large DMAs instead of ~37 tiny ones)
# --------------------------------------------------------------------------------------
def _layout(pieces):
    """pieces: [(name, rows)] -> ({name: row_offset}, total_rows); 8-row aligned."""
    off, cur = {}, 0
    for name, rows in pieces:
        off[name] = cur
        cur += _round_up(rows, 8)
    return off, cur


def _enc_layout(H):
    return _layout([('w_pre', IN_CH), ('b_pre', 1),
                    ('w_m0_feat', H), ('w_m0_pool', H), ('b_m0', 1),
                    ('w_m1', H), ('b_m1', 1),
                    ('w_o1', H), ('b_o1', 1),
                    ('w_o2', H), ('b_o2', 1)])


def _mf_layout(H):
    return _layout([('w1', H), ('b1', 1), ('w2', H), ('b2', 1)])


def _dec_layout(H, K, BM_pad):
    return _layout([('w1_hist', H), ('w1_ind', K * H), ('oh_bias', BM_pad),
                    ('w2', H), ('b2', 1)])


def _pack(off, total_rows, width, named):
    slab = jnp.zeros((total_rows, width), jnp.float32)
    for name, arr in named.items():
        r, w = arr.shape
        slab = slab.at[off[name]:off[name] + r, :w].set(arr.astype(jnp.float32))
    return slab


# --------------------------------------------------------------------------------------
# Fused Pallas kernel
# --------------------------------------------------------------------------------------
def _make_meta_kernel(B_pad, BM_pad, K, P_fut, H, enc_off, mf_off, dec_off):
    Nh = B_pad          # #agent polylines (padded to x8)
    Nf = K * BM_pad     # #future polylines (padded to x8, k-major row order)

    def _encoder(x, n, p_count, ref, mask=None):
        # PointNetPolylineEncoder (inference). BN already folded into the weights.
        # Invalid points are zero-filled after every ReLU; since ReLU >= 0 this matches
        # the reference's zero-scatter-before-max-pool exactly.
        def piece(name, rows):
            o = enc_off[name]
            return ref[o:o + rows, :]

        w_pre = piece('w_pre', IN_CH); b_pre = piece('b_pre', 1)
        w_m0f = piece('w_m0_feat', H); w_m0p = piece('w_m0_pool', H); b_m0 = piece('b_m0', 1)
        w_m1 = piece('w_m1', H); b_m1 = piece('b_m1', 1)
        w_o1 = piece('w_o1', H); b_o1 = piece('b_o1', 1)
        w_o2 = piece('w_o2', H); b_o2 = piece('b_o2', 1)

        # pre-layer: contraction dim is only 3 -> VPU broadcast mul-adds, not the MXU
        feat = jnp.maximum(x[:, 0:1] * w_pre[0:1, :]
                           + x[:, 1:2] * w_pre[1:2, :]
                           + x[:, 2:3] * w_pre[2:3, :] + b_pre, 0.0)         # (p*n, H)
        if mask is not None:
            feat = feat * mask
        pooled = jnp.max(feat.reshape(p_count, n, H), axis=0)                # (n, H)

        # split concat-matmul: cat([feat, tile(pooled)], -1) @ [w_m0f; w_m0p] =
        # feat @ w_m0f + broadcast(pooled @ w_m0p)  (no (p*n, 2H) concat / tiled copy)
        pooled_proj = jnp.dot(pooled, w_m0p, preferred_element_type=jnp.float32) + b_m0
        feat_proj = jnp.dot(feat, w_m0f, preferred_element_type=jnp.float32)
        feat = jnp.maximum(
            (feat_proj.reshape(p_count, n, H) + pooled_proj[None, :, :]
             ).reshape(p_count * n, H), 0.0)
        if mask is not None:
            feat = feat * mask

        feat = jnp.maximum(
            jnp.dot(feat, w_m1, preferred_element_type=jnp.float32) + b_m1, 0.0)
        if mask is not None:
            feat = feat * mask
        pooled = jnp.max(feat.reshape(p_count, n, H), axis=0)                # (n, H)

        # out-MLP: Linear + ReLU, Linear (ret_before_act / without_norm)
        h = jnp.maximum(jnp.dot(pooled, w_o1, preferred_element_type=jnp.float32) + b_o1, 0.0)
        return jnp.dot(h, w_o2, preferred_element_type=jnp.float32) + b_o2   # (n, H)

    def kernel(hist_x_ref, sel_ref, agent_ref, futenc_ref, mf_ref, dec_ref,
               fut_x_hbm, out_ref, fut_x_vmem, dma_sem):
        # start the future-polyline input DMA; it is hidden behind the agent encoder
        fut_cp = pltpu.make_async_copy(fut_x_hbm, fut_x_vmem, dma_sem)
        fut_cp.start()

        # -------- agent (history) polyline encoder (masked) --------
        hist_x = hist_x_ref[...]                       # (P_HIST*Nh, 3)
        hist_mask = hist_x[:, 2:3]                     # valid channel doubles as the mask
        enc_hist = _encoder(hist_x, Nh, P_HIST, agent_ref, mask=hist_mask)    # (Nh, H)

        # per-(b,m) history row + the decoder-layer-1 terms that do not depend on the
        # future path (sel folds the fully-invalid-polyline zero-fill; oh_bias folds
        # one_hot @ W1_oh + b1, precomputed host-side)
        hist_bm = jnp.dot(sel_ref[...], enc_hist, preferred_element_type=jnp.float32)
        dw1_hist = dec_ref[dec_off['w1_hist']:dec_off['w1_hist'] + H, :]
        oh_bias = dec_ref[dec_off['oh_bias']:dec_off['oh_bias'] + BM_pad, :]
        dec_h = jnp.dot(hist_bm, dw1_hist, preferred_element_type=jnp.float32) + oh_bias

        # -------- future polyline encoder (reference mask is all-ones -> dropped) -----
        fut_cp.wait()
        enc_fut = _encoder(fut_x_vmem[...], Nf, P_fut, futenc_ref, mask=None)  # (Nf, H)

        # -------- model_fut MLP (out width zero-padded to H) --------
        mf_w1 = mf_ref[mf_off['w1']:mf_off['w1'] + H, :]
        mf_b1 = mf_ref[mf_off['b1']:mf_off['b1'] + 1, :]
        mf_w2 = mf_ref[mf_off['w2']:mf_off['w2'] + H, :]
        mf_b2 = mf_ref[mf_off['b2']:mf_off['b2'] + 1, :]
        hmid = jnp.maximum(
            jnp.dot(enc_fut, mf_w1, preferred_element_type=jnp.float32) + mf_b1, 0.0)
        ind = jnp.dot(hmid, mf_w2, preferred_element_type=jnp.float32) + mf_b2  # (Nf, H)

        # -------- decoder: all K per-mode contributions as ONE batched matmul ---------
        dw1_ind = dec_ref[dec_off['w1_ind']:dec_off['w1_ind'] + K * H, :].reshape(K, H, H)
        ind3 = ind.reshape(K, BM_pad, H)              # rows are k-major -> free reshape
        per_k = lax.dot_general(ind3, dw1_ind,
                                dimension_numbers=(((2,), (1,)), ((0,), (0,))),
                                preferred_element_type=jnp.float32)   # (K, BM_pad, H)
        dec_h = jnp.maximum(dec_h + jnp.sum(per_k, axis=0), 0.0)

        dw2 = dec_ref[dec_off['w2']:dec_off['w2'] + H, :]     # only column 0 is real
        db2 = dec_ref[dec_off['b2']:dec_off['b2'] + 1, :]
        out_ref[...] = jnp.dot(dec_h, dw2, preferred_element_type=jnp.float32) + db2

    return kernel


# --------------------------------------------------------------------------------------
# MetaModel forward (inference / eval mode), jitted — one pallas_call per forward.
# --------------------------------------------------------------------------------------
def meta_model_forward(params, gt_trajs, pred_trajs, pred_scores):
    f32 = jnp.float32
    B = gt_trajs.shape[0]
    _, M, K, Tp, _ = pred_trajs.shape
    H = params['agent_enc']['w_m1'].shape[0]
    B_pad = _round_up(B, 8)
    BM_pad = _round_up(B * M, 8)
    Nf = K * BM_pad

    # ----- relative-displacement preprocessing (glue) -----
    hist_gt = jnp.concatenate(
        [jnp.zeros((B, 1, 2), f32),
         gt_trajs[:, 1:P_HIST, :2] - gt_trajs[:, :P_HIST - 1, :2]], axis=1)     # (B,11,2)
    hist_valid = (gt_trajs[:, :P_HIST, -1] > 0.5).astype(f32)                    # (B,11)
    hist_in = jnp.concatenate([hist_gt, hist_valid[..., None]], axis=-1)         # (B,11,3)

    first = pred_trajs[..., 0:1, :2] - gt_trajs[:, 10, :2][:, None, None, None, :]
    rest = pred_trajs[..., 1:, :2] - pred_trajs[..., :-1, :2]
    pred_rel = jnp.concatenate([first, rest], axis=-2)                           # (B,M,K,Tp,2)
    scores_b = jnp.broadcast_to(pred_scores[..., None, None], (B, M, K, Tp, 1))
    pred_in = jnp.concatenate([pred_rel, scores_b], axis=-1)                     # (B,M,K,Tp,3)

    # ----- kernel operand layout: point-major rows, polyline count padded to x8 -----
    hx = jnp.pad(jnp.transpose(hist_in, (1, 0, 2)), ((0, 0), (0, B_pad - B), (0, 0)))
    hist_x = hx.reshape(P_HIST * B_pad, IN_CH)

    # future polylines: row = p*(K*BM_pad) + k*BM_pad + (b*M + m)   (k-major)
    fx = jnp.transpose(pred_in, (3, 2, 0, 1, 4)).reshape(Tp, K, B * M, IN_CH)
    fx = jnp.pad(fx, ((0, 0), (0, 0), (0, BM_pad - B * M), (0, 0)))
    fut_x = fx.reshape(Tp * Nf, IN_CH)

    # selection matrix (b,m)->b; fully-invalid-polyline zero-fill folded into its columns
    bm = jnp.arange(BM_pad)
    valid_row = (bm < B * M)[:, None]
    sel = jnp.where(valid_row,
                    ((bm // M)[:, None] == jnp.arange(B_pad)[None, :]).astype(f32), 0.0)
    poly_valid = jnp.pad((jnp.sum(hist_valid, axis=1) > 0.0).astype(f32), (0, B_pad - B))
    sel = sel * poly_valid[None, :]

    a, fe = params['agent_enc'], params['future_enc']
    mf, de = params['model_fut'], params['decoder']
    FO = mf['w2'].shape[1]
    DH = de['w1_hist'].shape[1]
    assert a['w_o2'].shape[1] == H and DH == H and FO <= H

    # one-hot decoder contribution is input-independent -> folded host-side (incl. b1)
    onehot = jnp.where(valid_row,
                       ((bm % M)[:, None] == jnp.arange(M)[None, :]).astype(f32), 0.0)
    oh_bias = jnp.dot(onehot, de['w1_oh']) + de['b1']                            # (BM_pad, H)

    # per-mode decoder weights zero-padded FO->H (so the model_fut output needs no slicing)
    w1_ind_pad = jnp.zeros((K, H, H), f32).at[:, :FO, :].set(de['w1_ind'])
    w1_ind_pad = w1_ind_pad.reshape(K * H, H)

    # ----- packed weight slabs -----
    enc_off, enc_rows = _enc_layout(H)
    mf_off, mf_rows = _mf_layout(H)
    dec_off, dec_rows = _dec_layout(H, K, BM_pad)
    agent_slab = _pack(enc_off, enc_rows, H, a)
    fut_slab = _pack(enc_off, enc_rows, H, fe)
    mf_slab = _pack(mf_off, mf_rows, H, mf)
    dec_slab = _pack(dec_off, dec_rows, H,
                     dict(w1_hist=de['w1_hist'], w1_ind=w1_ind_pad, oh_bias=oh_bias,
                          w2=de['w2'], b2=de['b2']))

    kernel = _make_meta_kernel(B_pad, BM_pad, K, Tp, H, enc_off, mf_off, dec_off)
    out = pl.pallas_call(
        kernel,
        out_shape=jax.ShapeDtypeStruct((BM_pad, H), f32),
        in_specs=[pl.BlockSpec(memory_space=pltpu.MemorySpace.VMEM)] * 6
                 + [pl.BlockSpec(memory_space=pl.ANY)],     # fut_x stays in HBM
        out_specs=pl.BlockSpec(memory_space=pltpu.MemorySpace.VMEM),
        scratch_shapes=[pltpu.VMEM((Tp * Nf, IN_CH), f32),  # manual fut_x landing buffer
                        pltpu.SemaphoreType.DMA],
    )(hist_x, sel, agent_slab, fut_slab, mf_slab, dec_slab, fut_x)
    return out[:B * M, 0].reshape(B, M)                                          # pred_labels


meta_model_forward_jit = jax.jit(meta_model_forward)


# --------------------------------------------------------------------------------------
# Parameter initialization (deterministic, PyTorch-default-like), with BN folded
# --------------------------------------------------------------------------------------
def _linear_init(key, fan_in, fan_out):
    kw, kb = jax.random.split(key)
    bound = 1.0 / jnp.sqrt(jnp.float32(fan_in))
    w = jax.random.uniform(kw, (fan_in, fan_out), jnp.float32, -bound, bound)
    b = jax.random.uniform(kb, (1, fan_out), jnp.float32, -bound, bound)
    return w, b


def _fold_linear_bn(w, gamma, beta, running_mean, running_var, eps=1e-5):
    # y = ((x @ w) - mean) / sqrt(var+eps) * gamma + beta  ->  x @ (w*s) + (beta - mean*s)
    s = gamma / jnp.sqrt(running_var + eps)
    return w * s[None, :], (beta - running_mean * s)[None, :]


def init_polyline_encoder(key, in_ch, hidden, out_ch):
    keys = jax.random.split(key, 5)
    # synthetic BN running stats (gamma=1, beta=0, mean=0, var=1); real checkpoints must
    # fold their actual running stats here the same way.
    g = jnp.ones((hidden,), jnp.float32)
    z = jnp.zeros((hidden,), jnp.float32)
    o = jnp.ones((hidden,), jnp.float32)

    w_pre, _ = _linear_init(keys[0], in_ch, hidden)            # Linear(bias=False) + BN
    w_pre, b_pre = _fold_linear_bn(w_pre, g, z, z, o)
    w_m0, _ = _linear_init(keys[1], 2 * hidden, hidden)
    w_m0, b_m0 = _fold_linear_bn(w_m0, g, z, z, o)
    w_m1, _ = _linear_init(keys[2], hidden, hidden)
    w_m1, b_m1 = _fold_linear_bn(w_m1, g, z, z, o)
    w_o1, b_o1 = _linear_init(keys[3], hidden, hidden)
    w_o2, b_o2 = _linear_init(keys[4], hidden, out_ch)
    return dict(w_pre=w_pre, b_pre=b_pre,
                w_m0_feat=w_m0[:hidden], w_m0_pool=w_m0[hidden:], b_m0=b_m0,
                w_m1=w_m1, b_m1=b_m1,
                w_o1=w_o1, b_o1=b_o1, w_o2=w_o2, b_o2=b_o2)


def init_model_fut(key, in_size, hidden, out_size):
    k1, k2 = jax.random.split(key)
    w1, b1 = _linear_init(k1, in_size, hidden)
    w2, b2 = _linear_init(k2, hidden, out_size)
    return dict(w1=w1, b1=b1, w2=w2, b2=b2)


def init_decoder(key, enc_out, K, fut_out, M, hidden):
    # one Linear over the full concatenated input; split host-side into the pieces the
    # kernel consumes (hist / per-k individual / one-hot) to avoid in-kernel lane concats.
    k1, k2 = jax.random.split(key)
    in_size = enc_out + K * fut_out + M
    w1, b1 = _linear_init(k1, in_size, hidden)
    w2, b2 = _linear_init(k2, hidden, 1)
    return dict(w1_hist=w1[:enc_out],
                w1_ind=w1[enc_out:enc_out + K * fut_out].reshape(K, fut_out, hidden),
                w1_oh=w1[enc_out + K * fut_out:],
                b1=b1, w2=w2, b2=b2)

# TODO(synk): exact `MLP` class (dropout placement / #layers) from the repo is not given;
#             implemented as Linear+ReLU with a final Linear (dropout is a no-op at eval).
# TODO(synk): training-mode losses (get_loss / CrossEntropy / MSE / map) and checkpoint
#             loading are host-side / training-only and are not part of the inference kernel.


# --------------------------------------------------------------------------------------
if __name__ == "__main__":
    # small shapes: B=2 agents, M=3 ensemble models, K=6 pred modes, Tp=8 future points,
    # gt horizon T=16 (>= 11 history + index 10), gt feature dim 4 (last channel = valid)
    B, M, K, Tp, T = 2, 3, 6, 8, 16
    HIDDEN, OUT_SIZE, FUT_OUT = 32, 32, 4

    root = jax.random.PRNGKey(0)
    k_gt, k_pred, k_score, k_ae, k_fe, k_mf, k_dec = jax.random.split(root, 7)

    gt_xy = jax.random.normal(k_gt, (B, T, 3), jnp.float32)
    gt_valid = jnp.ones((B, T, 1), jnp.float32).at[1, 3:5, 0].set(0.0)   # some invalid steps
    gt_trajs = jnp.concatenate([gt_xy, gt_valid], axis=-1)                # (B, T, 4)
    pred_trajs = jax.random.normal(k_pred, (B, M, K, Tp, 2), jnp.float32)
    pred_scores = jax.nn.softmax(jax.random.normal(k_score, (B, M, K), jnp.float32), axis=-1)

    params = dict(
        agent_enc=init_polyline_encoder(k_ae, in_ch=3, hidden=HIDDEN, out_ch=OUT_SIZE),
        future_enc=init_polyline_encoder(k_fe, in_ch=3, hidden=HIDDEN, out_ch=OUT_SIZE),
        model_fut=init_model_fut(k_mf, OUT_SIZE, HIDDEN, FUT_OUT),
        decoder=init_decoder(k_dec, OUT_SIZE, K, FUT_OUT, M, HIDDEN),
    )

    decoded = meta_model_forward_jit(params, gt_trajs, pred_trajs, pred_scores)
    decoded = jax.block_until_ready(decoded)
    assert decoded.shape == (B, M) and decoded.dtype == jnp.float32
    assert bool(jnp.all(jnp.isfinite(decoded)))
    print("KERNEL_OK")
</pallas_src>

<mosaic_0001>
module attributes {stable_mosaic.version = 11 : i64} {
  func.func @kernel(%arg0: memref<88x3xf32, #tpu.memory_space<vmem>>, %arg1: memref<8x8xf32, #tpu.memory_space<vmem>>, %arg2: memref<208x32xf32, #tpu.memory_space<vmem>>, %arg3: memref<208x32xf32, #tpu.memory_space<vmem>>, %arg4: memref<80x32xf32, #tpu.memory_space<vmem>>, %arg5: memref<272x32xf32, #tpu.memory_space<vmem>>, %arg6: memref<384x3xf32, #tpu.memory_space<any>>, %arg7: memref<8x32xf32, #tpu.memory_space<vmem>>, %arg8: memref<384x3xf32, #tpu.memory_space<vmem>>, %arg9: memref<!tpu.dma_semaphore, #tpu.memory_space<semaphore_mem>>) attributes {dimension_semantics = [], scalar_prefetch = 0 : i64, scratch_operands = 2 : i64, tpu.core_type = #tpu.core_type<tc>} {
    tpu.enqueue_dma source(%arg6 : memref<384x3xf32, #tpu.memory_space<any>>) target(%arg8 : memref<384x3xf32, #tpu.memory_space<vmem>>) target_semaphore(%arg9 : memref<!tpu.dma_semaphore, #tpu.memory_space<semaphore_mem>>)
    %c0 = arith.constant 0 : index
    %c0_0 = arith.constant 0 : index
    %0 = vector.load %arg0[%c0, %c0_0] : memref<88x3xf32, #tpu.memory_space<vmem>>, vector<88x3xf32>
    %1 = vector.extract_strided_slice %0 {offsets = [0, 2], sizes = [88, 1], strides = [1, 1]} : vector<88x3xf32> to vector<88x1xf32>
    %c0_1 = arith.constant 0 : index
    %c0_2 = arith.constant 0 : index
    %2 = vector.load %arg2[%c0_1, %c0_2] : memref<208x32xf32, #tpu.memory_space<vmem>>, vector<3x32xf32>
    %c8 = arith.constant 8 : index
    %c0_3 = arith.constant 0 : index
    %3 = vector.load %arg2[%c8, %c0_3] : memref<208x32xf32, #tpu.memory_space<vmem>>, vector<1x32xf32>
    %c16 = arith.constant 16 : index
    %c0_4 = arith.constant 0 : index
    %4 = vector.load %arg2[%c16, %c0_4] : memref<208x32xf32, #tpu.memory_space<vmem>>, vector<32x32xf32>
    %c48 = arith.constant 48 : index
    %c0_5 = arith.constant 0 : index
    %5 = vector.load %arg2[%c48, %c0_5] : memref<208x32xf32, #tpu.memory_space<vmem>>, vector<32x32xf32>
    %c80 = arith.constant 80 : index
    %c0_6 = arith.constant 0 : index
    %6 = vector.load %arg2[%c80, %c0_6] : memref<208x32xf32, #tpu.memory_space<vmem>>, vector<1x32xf32>
    %c88 = arith.constant 88 : index
    %c0_7 = arith.constant 0 : index
    %7 = vector.load %arg2[%c88, %c0_7] : memref<208x32xf32, #tpu.memory_space<vmem>>, vector<32x32xf32>
    %c120 = arith.constant 120 : index
    %c0_8 = arith.constant 0 : index
    %8 = vector.load %arg2[%c120, %c0_8] : memref<208x32xf32, #tpu.memory_space<vmem>>, vector<1x32xf32>
    %c128 = arith.constant 128 : index
    %c0_9 = arith.constant 0 : index
    %9 = vector.load %arg2[%c128, %c0_9] : memref<208x32xf32, #tpu.memory_space<vmem>>, vector<32x32xf32>
    %c160 = arith.constant 160 : index
    %c0_10 = arith.constant 0 : index
    %10 = vector.load %arg2[%c160, %c0_10] : memref<208x32xf32, #tpu.memory_space<vmem>>, vector<1x32xf32>
    %c168 = arith.constant 168 : index
    %c0_11 = arith.constant 0 : index
    %11 = vector.load %arg2[%c168, %c0_11] : memref<208x32xf32, #tpu.memory_space<vmem>>, vector<32x32xf32>
    %c200 = arith.constant 200 : index
    %c0_12 = arith.constant 0 : index
    %12 = vector.load %arg2[%c200, %c0_12] : memref<208x32xf32, #tpu.memory_space<vmem>>, vector<1x32xf32>
    %13 = vector.extract_strided_slice %0 {offsets = [0, 0], sizes = [88, 1], strides = [1, 1]} : vector<88x3xf32> to vector<88x1xf32>
    %14 = vector.extract_strided_slice %2 {offsets = [0, 0], sizes = [1, 32], strides = [1, 1]} : vector<3x32xf32> to vector<1x32xf32>
    %15 = vector.broadcast %13 : vector<88x1xf32> to vector<88x32xf32>
    %16 = vector.broadcast %14 : vector<1x32xf32> to vector<88x32xf32>
    %17 = arith.mulf %15, %16 : vector<88x32xf32>
    %18 = vector.extract_strided_slice %0 {offsets = [0, 1], sizes = [88, 1], strides = [1, 1]} : vector<88x3xf32> to vector<88x1xf32>
    %19 = vector.extract_strided_slice %2 {offsets = [1, 0], sizes = [1, 32], strides = [1, 1]} : vector<3x32xf32> to vector<1x32xf32>
    %20 = vector.broadcast %18 : vector<88x1xf32> to vector<88x32xf32>
    %21 = vector.broadcast %19 : vector<1x32xf32> to vector<88x32xf32>
    %22 = arith.mulf %20, %21 : vector<88x32xf32>
    %23 = arith.addf %17, %22 : vector<88x32xf32>
    %24 = vector.extract_strided_slice %0 {offsets = [0, 2], sizes = [88, 1], strides = [1, 1]} : vector<88x3xf32> to vector<88x1xf32>
    %25 = vector.extract_strided_slice %2 {offsets = [2, 0], sizes = [1, 32], strides = [1, 1]} : vector<3x32xf32> to vector<1x32xf32>
    %26 = vector.broadcast %24 : vector<88x1xf32> to vector<88x32xf32>
    %27 = vector.broadcast %25 : vector<1x32xf32> to vector<88x32xf32>
    %28 = arith.mulf %26, %27 : vector<88x32xf32>
    %29 = arith.addf %23, %28 : vector<88x32xf32>
    %30 = vector.broadcast %3 : vector<1x32xf32> to vector<88x32xf32>
    %31 = arith.addf %29, %30 : vector<88x32xf32>
    %cst = arith.constant 0.000000e+00 : f32
    %32 = vector.broadcast %cst : f32 to vector<88x32xf32>
    %33 = arith.maximumf %31, %32 : vector<88x32xf32>
    %34 = vector.broadcast %1 : vector<88x1xf32> to vector<88x32xf32>
    %35 = arith.mulf %33, %34 : vector<88x32xf32>
    %36 = vector.shape_cast %35 : vector<88x32xf32> to vector<11x8x32xf32>
    %cst_13 = arith.constant dense<0xFF800000> : vector<8x32xf32>
    %37 = vector.multi_reduction <maximumf>, %36, %cst_13 [0] : vector<11x8x32xf32> to vector<8x32xf32>
    %cst_14 = arith.constant dense<0.000000e+00> : vector<8x32xf32>
    %38 = tpu.matmul %37, %5, %cst_14 {dimension_numbers = #tpu.dot_dimension_numbers<[1], [0], [0], [1], [0, 0, 1, 1], [], []>} : vector<8x32xf32>, vector<32x32xf32>, vector<8x32xf32> -> vector<8x32xf32>
    %39 = vector.broadcast %6 : vector<1x32xf32> to vector<8x32xf32>
    %40 = arith.addf %38, %39 : vector<8x32xf32>
    %cst_15 = arith.constant dense<0.000000e+00> : vector<88x32xf32>
    %41 = tpu.matmul %35, %4, %cst_15 {dimension_numbers = #tpu.dot_dimension_numbers<[1], [0], [0], [1], [0, 0, 1, 1], [], []>} : vector<88x32xf32>, vector<32x32xf32>, vector<88x32xf32> -> vector<88x32xf32>
    %42 = vector.shape_cast %41 : vector<88x32xf32> to vector<11x8x32xf32>
    %43 = vector.shape_cast %40 : vector<8x32xf32> to vector<1x8x32xf32>
    %44 = vector.broadcast %43 : vector<1x8x32xf32> to vector<11x8x32xf32>
    %45 = arith.addf %42, %44 : vector<11x8x32xf32>
    %46 = vector.shape_cast %45 : vector<11x8x32xf32> to vector<88x32xf32>
    %cst_16 = arith.constant 0.000000e+00 : f32
    %47 = vector.broadcast %cst_16 : f32 to vector<88x32xf32>
    %48 = arith.maximumf %46, %47 : vector<88x32xf32>
    %49 = vector.broadcast %1 : vector<88x1xf32> to vector<88x32xf32>
    %50 = arith.mulf %48, %49 : vector<88x32xf32>
    %cst_17 = arith.constant dense<0.000000e+00> : vector<88x32xf32>
    %51 = tpu.matmul %50, %7, %cst_17 {dimension_numbers = #tpu.dot_dimension_numbers<[1], [0], [0], [1], [0, 0, 1, 1], [], []>} : vector<88x32xf32>, vector<32x32xf32>, vector<88x32xf32> -> vector<88x32xf32>
    %52 = vector.broadcast %8 : vector<1x32xf32> to vector<88x32xf32>
    %53 = arith.addf %51, %52 : vector<88x32xf32>
    %cst_18 = arith.constant 0.000000e+00 : f32
    %54 = vector.broadcast %cst_18 : f32 to vector<88x32xf32>
    %55 = arith.maximumf %53, %54 : vector<88x32xf32>
    %56 = vector.broadcast %1 : vector<88x1xf32> to vector<88x32xf32>
    %57 = arith.mulf %55, %56 : vector<88x32xf32>
    %58 = vector.shape_cast %57 : vector<88x32xf32> to vector<11x8x32xf32>
    %cst_19 = arith.constant dense<0xFF800000> : vector<8x32xf32>
    %59 = vector.multi_reduction <maximumf>, %58, %cst_19 [0] : vector<11x8x32xf32> to vector<8x32xf32>
    %cst_20 = arith.constant dense<0.000000e+00> : vector<8x32xf32>
    %60 = tpu.matmul %59, %9, %cst_20 {dimension_numbers = #tpu.dot_dimension_numbers<[1], [0], [0], [1], [0, 0, 1, 1], [], []>} : vector<8x32xf32>, vector<32x32xf32>, vector<8x32xf32> -> vector<8x32xf32>
    %61 = vector.broadcast %10 : vector<1x32xf32> to vector<8x32xf32>
    %62 = arith.addf %60, %61 : vector<8x32xf32>
    %cst_21 = arith.constant 0.000000e+00 : f32
    %63 = vector.broadcast %cst_21 : f32 to vector<8x32xf32>
    %64 = arith.maximumf %62, %63 : vector<8x32xf32>
    %cst_22 = arith.constant dense<0.000000e+00> : vector<8x32xf32>
    %65 = tpu.matmul %64, %11, %cst_22 {dimension_numbers = #tpu.dot_dimension_numbers<[1], [0], [0], [1], [0, 0, 1, 1], [], []>} : vector<8x32xf32>, vector<32x32xf32>, vector<8x32xf32> -> vector<8x32xf32>
    %66 = vector.broadcast %12 : vector<1x32xf32> to vector<8x32xf32>
    %67 = arith.addf %65, %66 : vector<8x32xf32>
    %c0_23 = arith.constant 0 : index
    %c0_24 = arith.constant 0 : index
    %68 = vector.load %arg1[%c0_23, %c0_24] : memref<8x8xf32, #tpu.memory_space<vmem>>, vector<8x8xf32>
    %cst_25 = arith.constant dense<0.000000e+00> : vector<8x32xf32>
    %69 = tpu.matmul %68, %67, %cst_25 {dimension_numbers = #tpu.dot_dimension_numbers<[1], [0], [0], [1], [0, 0, 1, 1], [], []>} : vector<8x8xf32>, vector<8x32xf32>, vector<8x32xf32> -> vector<8x32xf32>
    %c0_26 = arith.constant 0 : index
    %c0_27 = arith.constant 0 : index
    %70 = vector.load %arg5[%c0_26, %c0_27] : memref<272x32xf32, #tpu.memory_space<vmem>>, vector<32x32xf32>
    %c224 = arith.constant 224 : index
    %c0_28 = arith.constant 0 : index
    %71 = vector.load %arg5[%c224, %c0_28] : memref<272x32xf32, #tpu.memory_space<vmem>>, vector<8x32xf32>
    %cst_29 = arith.constant dense<0.000000e+00> : vector<8x32xf32>
    %72 = tpu.matmul %69, %70, %cst_29 {dimension_numbers = #tpu.dot_dimension_numbers<[1], [0], [0], [1], [0, 0, 1, 1], [], []>} : vector<8x32xf32>, vector<32x32xf32>, vector<8x32xf32> -> vector<8x32xf32>
    %73 = arith.addf %72, %71 : vector<8x32xf32>
    tpu.wait_dma2 semaphore(%arg9 : memref<!tpu.dma_semaphore, #tpu.memory_space<semaphore_mem>>) src(%arg6 : memref<384x3xf32, #tpu.memory_space<any>>) dst(%arg8 : memref<384x3xf32, #tpu.memory_space<vmem>>)
    %c0_30 = arith.constant 0 : index
    %c0_31 = arith.constant 0 : index
    %74 = vector.load %arg8[%c0_30, %c0_31] : memref<384x3xf32, #tpu.memory_space<vmem>>, vector<384x3xf32>
    %c0_32 = arith.constant 0 : index
    %c0_33 = arith.constant 0 : index
    %75 = vector.load %arg3[%c0_32, %c0_33] : memref<208x32xf32, #tpu.memory_space<vmem>>, vector<3x32xf32>
    %c8_34 = arith.constant 8 : index
    %c0_35 = arith.constant 0 : index
    %76 = vector.load %arg3[%c8_34, %c0_35] : memref<208x32xf32, #tpu.memory_space<vmem>>, vector<1x32xf32>
    %c16_36 = arith.constant 16 : index
    %c0_37 = arith.constant 0 : index
    %77 = vector.load %arg3[%c16_36, %c0_37] : memref<208x32xf32, #tpu.memory_space<vmem>>, vector<32x32xf32>
    %c48_38 = arith.constant 48 : index
    %c0_39 = arith.constant 0 : index
    %78 = vector.load %arg3[%c48_38, %c0_39] : memref<208x32xf32, #tpu.memory_space<vmem>>, vector<32x32xf32>
    %c80_40 = arith.constant 80 : index
    %c0_41 = arith.constant 0 : index
    %79 = vector.load %arg3[%c80_40, %c0_41] : memref<208x32xf32, #tpu.memory_space<vmem>>, vector<1x32xf32>
    %c88_42 = arith.constant 88 : index
    %c0_43 = arith.constant 0 : index
    %80 = vector.load %arg3[%c88_42, %c0_43] : memref<208x32xf32, #tpu.memory_space<vmem>>, vector<32x32xf32>
    %c120_44 = arith.constant 120 : index
    %c0_45 = arith.constant 0 : index
    %81 = vector.load %arg3[%c120_44, %c0_45] : memref<208x32xf32, #tpu.memory_space<vmem>>, vector<1x32xf32>
    %c128_46 = arith.constant 128 : index
    %c0_47 = arith.constant 0 : index
    %82 = vector.load %arg3[%c128_46, %c0_47] : memref<208x32xf32, #tpu.memory_space<vmem>>, vector<32x32xf32>
    %c160_48 = arith.constant 160 : index
    %c0_49 = arith.constant 0 : index
    %83 = vector.load %arg3[%c160_48, %c0_49] : memref<208x32xf32, #tpu.memory_space<vmem>>, vector<1x32xf32>
    %c168_50 = arith.constant 168 : index
    %c0_51 = arith.constant 0 : index
    %84 = vector.load %arg3[%c168_50, %c0_51] : memref<208x32xf32, #tpu.memory_space<vmem>>, vector<32x32xf32>
    %c200_52 = arith.constant 200 : index
    %c0_53 = arith.constant 0 : index
    %85 = vector.load %arg3[%c200_52, %c0_53] : memref<208x32xf32, #tpu.memory_space<vmem>>, vector<1x32xf32>
    %86 = vector.extract_strided_slice %74 {offsets = [0, 0], sizes = [384, 1], strides = [1, 1]} : vector<384x3xf32> to vector<384x1xf32>
    %87 = vector.extract_strided_slice %75 {offsets = [0, 0], sizes = [1, 32], strides = [1, 1]} : vector<3x32xf32> to vector<1x32xf32>
    %88 = vector.broadcast %86 : vector<384x1xf32> to vector<384x32xf32>
    %89 = vector.broadcast %87 : vector<1x32xf32> to vector<384x32xf32>
    %90 = arith.mulf %88, %89 : vector<384x32xf32>
    %91 = vector.extract_strided_slice %74 {offsets = [0, 1], sizes = [384, 1], strides = [1, 1]} : vector<384x3xf32> to vector<384x1xf32>
    %92 = vector.extract_strided_slice %75 {offsets = [1, 0], sizes = [1, 32], strides = [1, 1]} : vector<3x32xf32> to vector<1x32xf32>
    %93 = vector.broadcast %91 : vector<384x1xf32> to vector<384x32xf32>
    %94 = vector.broadcast %92 : vector<1x32xf32> to vector<384x32xf32>
    %95 = arith.mulf %93, %94 : vector<384x32xf32>
    %96 = arith.addf %90, %95 : vector<384x32xf32>
    %97 = vector.extract_strided_slice %74 {offsets = [0, 2], sizes = [384, 1], strides = [1, 1]} : vector<384x3xf32> to vector<384x1xf32>
    %98 = vector.extract_strided_slice %75 {offsets = [2, 0], sizes = [1, 32], strides = [1, 1]} : vector<3x32xf32> to vector<1x32xf32>
    %99 = vector.broadcast %97 : vector<384x1xf32> to vector<384x32xf32>
    %100 = vector.broadcast %98 : vector<1x32xf32> to vector<384x32xf32>
    %101 = arith.mulf %99, %100 : vector<384x32xf32>
    %102 = arith.addf %96, %101 : vector<384x32xf32>
    %103 = vector.broadcast %76 : vector<1x32xf32> to vector<384x32xf32>
    %104 = arith.addf %102, %103 : vector<384x32xf32>
    %cst_54 = arith.constant 0.000000e+00 : f32
    %105 = vector.broadcast %cst_54 : f32 to vector<384x32xf32>
    %106 = arith.maximumf %104, %105 : vector<384x32xf32>
    %107 = vector.shape_cast %106 : vector<384x32xf32> to vector<8x48x32xf32>
    %cst_55 = arith.constant dense<0xFF800000> : vector<48x32xf32>
    %108 = vector.multi_reduction <maximumf>, %107, %cst_55 [0] : vector<8x48x32xf32> to vector<48x32xf32>
    %cst_56 = arith.constant dense<0.000000e+00> : vector<48x32xf32>
    %109 = tpu.matmul %108, %78, %cst_56 {dimension_numbers = #tpu.dot_dimension_numbers<[1], [0], [0], [1], [0, 0, 1, 1], [], []>} : vector<48x32xf32>, vector<32x32xf32>, vector<48x32xf32> -> vector<48x32xf32>
    %110 = vector.broadcast %79 : vector<1x32xf32> to vector<48x32xf32>
    %111 = arith.addf %109, %110 : vector<48x32xf32>
    %cst_57 = arith.constant dense<0.000000e+00> : vector<384x32xf32>
    %112 = tpu.matmul %106, %77, %cst_57 {dimension_numbers = #tpu.dot_dimension_numbers<[1], [0], [0], [1], [0, 0, 1, 1], [], []>} : vector<384x32xf32>, vector<32x32xf32>, vector<384x32xf32> -> vector<384x32xf32>
    %113 = vector.shape_cast %112 : vector<384x32xf32> to vector<8x48x32xf32>
    %114 = vector.shape_cast %111 : vector<48x32xf32> to vector<1x48x32xf32>
    %115 = vector.broadcast %114 : vector<1x48x32xf32> to vector<8x48x32xf32>
    %116 = arith.addf %113, %115 : vector<8x48x32xf32>
    %117 = vector.shape_cast %116 : vector<8x48x32xf32> to vector<384x32xf32>
    %cst_58 = arith.constant 0.000000e+00 : f32
    %118 = vector.broadcast %cst_58 : f32 to vector<384x32xf32>
    %119 = arith.maximumf %117, %118 : vector<384x32xf32>
    %cst_59 = arith.constant dense<0.000000e+00> : vector<384x32xf32>
    %120 = tpu.matmul %119, %80, %cst_59 {dimension_numbers = #tpu.dot_dimension_numbers<[1], [0], [0], [1], [0, 0, 1, 1], [], []>} : vector<384x32xf32>, vector<32x32xf32>, vector<384x32xf32> -> vector<384x32xf32>
    %121 = vector.broadcast %81 : vector<1x32xf32> to vector<384x32xf32>
    %122 = arith.addf %120, %121 : vector<384x32xf32>
    %cst_60 = arith.constant 0.000000e+00 : f32
    %123 = vector.broadcast %cst_60 : f32 to vector<384x32xf32>
    %124 = arith.maximumf %122, %123 : vector<384x32xf32>
    %125 = vector.shape_cast %124 : vector<384x32xf32> to vector<8x48x32xf32>
    %cst_61 = arith.constant dense<0xFF800000> : vector<48x32xf32>
    %126 = vector.multi_reduction <maximumf>, %125, %cst_61 [0] : vector<8x48x32xf32> to vector<48x32xf32>
    %cst_62 = arith.constant dense<0.000000e+00> : vector<48x32xf32>
    %127 = tpu.matmul %126, %82, %cst_62 {dimension_numbers = #tpu.dot_dimension_numbers<[1], [0], [0], [1], [0, 0, 1, 1], [], []>} : vector<48x32xf32>, vector<32x32xf32>, vector<48x32xf32> -> vector<48x32xf32>
    %128 = vector.broadcast %83 : vector<1x32xf32> to vector<48x32xf32>
    %129 = arith.addf %127, %128 : vector<48x32xf32>
    %cst_63 = arith.constant 0.000000e+00 : f32
    %130 = vector.broadcast %cst_63 : f32 to vector<48x32xf32>
    %131 = arith.maximumf %129, %130 : vector<48x32xf32>
    %cst_64 = arith.constant dense<0.000000e+00> : vector<48x32xf32>
    %132 = tpu.matmul %131, %84, %cst_64 {dimension_numbers = #tpu.dot_dimension_numbers<[1], [0], [0], [1], [0, 0, 1, 1], [], []>} : vector<48x32xf32>, vector<32x32xf32>, vector<48x32xf32> -> vector<48x32xf32>
    %133 = vector.broadcast %85 : vector<1x32xf32> to vector<48x32xf32>
    %134 = arith.addf %132, %133 : vector<48x32xf32>
    %c0_65 = arith.constant 0 : index
    %c0_66 = arith.constant 0 : index
    %135 = vector.load %arg4[%c0_65, %c0_66] : memref<80x32xf32, #tpu.memory_space<vmem>>, vector<32x32xf32>
    %c32 = arith.constant 32 : index
    %c0_67 = arith.constant 0 : index
    %136 = vector.load %arg4[%c32, %c0_67] : memref<80x32xf32, #tpu.memory_space<vmem>>, vector<1x32xf32>
    %c40 = arith.constant 40 : index
    %c0_68 = arith.constant 0 : index
    %137 = vector.load %arg4[%c40, %c0_68] : memref<80x32xf32, #tpu.memory_space<vmem>>, vector<32x32xf32>
    %c72 = arith.constant 72 : index
    %c0_69 = arith.constant 0 : index
    %138 = vector.load %arg4[%c72, %c0_69] : memref<80x32xf32, #tpu.memory_space<vmem>>, vector<1x32xf32>
    %cst_70 = arith.constant dense<0.000000e+00> : vector<48x32xf32>
    %139 = tpu.matmul %134, %135, %cst_70 {dimension_numbers = #tpu.dot_dimension_numbers<[1], [0], [0], [1], [0, 0, 1, 1], [], []>} : vector<48x32xf32>, vector<32x32xf32>, vector<48x32xf32> -> vector<48x32xf32>
    %140 = vector.broadcast %136 : vector<1x32xf32> to vector<48x32xf32>
    %141 = arith.addf %139, %140 : vector<48x32xf32>
    %cst_71 = arith.constant 0.000000e+00 : f32
    %142 = vector.broadcast %cst_71 : f32 to vector<48x32xf32>
    %143 = arith.maximumf %141, %142 : vector<48x32xf32>
    %cst_72 = arith.constant dense<0.000000e+00> : vector<48x32xf32>
    %144 = tpu.matmul %143, %137, %cst_72 {dimension_numbers = #tpu.dot_dimension_numbers<[1], [0], [0], [1], [0, 0, 1, 1], [], []>} : vector<48x32xf32>, vector<32x32xf32>, vector<48x32xf32> -> vector<48x32xf32>
    %145 = vector.broadcast %138 : vector<1x32xf32> to vector<48x32xf32>
    %146 = arith.addf %144, %145 : vector<48x32xf32>
    %c32_73 = arith.constant 32 : index
    %c0_74 = arith.constant 0 : index
    %147 = vector.load %arg5[%c32_73, %c0_74] : memref<272x32xf32, #tpu.memory_space<vmem>>, vector<192x32xf32>
    %148 = vector.shape_cast %147 : vector<192x32xf32> to vector<6x32x32xf32>
    %149 = vector.shape_cast %146 : vector<48x32xf32> to vector<6x8x32xf32>
    %cst_75 = arith.constant dense<0.000000e+00> : vector<6x8x32xf32>
    %150 = tpu.matmul %149, %148, %cst_75 {dimension_numbers = #tpu.dot_dimension_numbers<[2], [1], [1], [2], [0, 0, 0, 1, 1, 2], [0], [0]>} : vector<6x8x32xf32>, vector<6x32x32xf32>, vector<6x8x32xf32> -> vector<6x8x32xf32>
    %cst_76 = arith.constant dense<0.000000e+00> : vector<8x32xf32>
    %151 = vector.multi_reduction <add>, %150, %cst_76 [0] : vector<6x8x32xf32> to vector<8x32xf32>
    %152 = arith.addf %73, %151 : vector<8x32xf32>
    %cst_77 = arith.constant 0.000000e+00 : f32
    %153 = vector.broadcast %cst_77 : f32 to vector<8x32xf32>
    %154 = arith.maximumf %152, %153 : vector<8x32xf32>
    %c232 = arith.constant 232 : index
    %c0_78 = arith.constant 0 : index
    %155 = vector.load %arg5[%c232, %c0_78] : memref<272x32xf32, #tpu.memory_space<vmem>>, vector<32x32xf32>
    %c264 = arith.constant 264 : index
    %c0_79 = arith.constant 0 : index
    %156 = vector.load %arg5[%c264, %c0_79] : memref<272x32xf32, #tpu.memory_space<vmem>>, vector<1x32xf32>
    %cst_80 = arith.constant dense<0.000000e+00> : vector<8x32xf32>
    %157 = tpu.matmul %154, %155, %cst_80 {dimension_numbers = #tpu.dot_dimension_numbers<[1], [0], [0], [1], [0, 0, 1, 1], [], []>} : vector<8x32xf32>, vector<32x32xf32>, vector<8x32xf32> -> vector<8x32xf32>
    %158 = vector.broadcast %156 : vector<1x32xf32> to vector<8x32xf32>
    %159 = arith.addf %157, %158 : vector<8x32xf32>
    %c0_81 = arith.constant 0 : index
    %c0_82 = arith.constant 0 : index
    %160 = vector.load %arg7[%c0_81, %c0_82] : memref<8x32xf32, #tpu.memory_space<vmem>>, vector<8x32xf32>
    tpu.vector_store %arg7[%c0_81, %c0_82], %159 {strides = array<i32>} : memref<8x32xf32, #tpu.memory_space<vmem>>, vector<8x32xf32>,
    return
  }
}

</mosaic_0001>

<bundles_post_ra>
// kernel: squeeze.5
= control target key start
LH: loop header
LB: loop body
LE: loop exit
PB: predicated region body
PF: predicated region fallthrough
CT: control target
= control target key end

     0   :  { %s77_s0 = inlined_call_operand.vmem [shape: f32[6], index: 0, kind: input, shape index: {}]   ;;  %s78_s1 = inlined_call_operand.hbm [shape: f32[2,3], index: 1, kind: output, shape index: {}]  }
   0x1   :  { %v6_v0 = vld [vmem:[%s77_s0] sm:$0x1] }
   0x2   :  { %2 = vsyncpa [#allocation1], 0  ;;  %7 = vst [vmem:[#allocation3] sm:$0x1] %v6_v0  ;;  %vm9_vm0 = vcmask 23552   ;;  %s59_s0 = smov 125  }
   0x3   :  { %s60_s8 = smov [#allocation0]  }
   0x4   :  { %s29_s9 = sshll.u32 %s60_s8, 4  ;;  %s30_s9 = int_to_ptr.vmem [resolvable:$true] %s29_s9 }
   0x5   :  { %s37_s10 = scalar_lea.vmem %s30_s9, 32  ;;  %p42_p1 = scmp.lt.s32.totalorder %s30_s9, %s30_s9 }
   0x6   :  { %p38_p0 = scmp.ne.s32.totalorder %s30_s9, %s37_s10  ;;  %p43_p2 = scmp.lt.s32.totalorder %s37_s10, %s37_s10 }
   0x8   :  { %p44_p3 = por %p43_p2, %p42_p1 }
   0x9   :  { %v11_v1 = vld [vmem:[#allocation3] sm:$0x1]  }
   0xa   :  { %v8_v2 = vld [vmem:[#allocation3] sm:$0x1]   ;;  %12 = vrot.lane.b32.xlu0 %v11_v1, %s59_s0  ;;  %p45_p4 = pnand %p44_p3, %p38_p0 }
   0xb   :  { %10 = vst.msk [vmem:[#allocation2] sm:$0x1] %vm9_vm0, %v8_v2  }
  0x7c   :  { %v13_v3 = vpop.permute.xlu0 %12  }
  0x7d   :  { %16 = vst.msk [vmem:[#allocation2 + $0x1] sm:$0x1] %vm9_vm0, %v13_v3  }
  0x84   :  { %v21_v4 = vld [vmem:[#allocation2] sm:$0x3] }
  0x85   :  { %24 = vst [vmem:[#allocation0] sm:$0x3] %v21_v4 }
  0x86   :  { %48 = shalt.err (!%p45_p4)
}
  0x87   :  { %32 = dma.vmem_to_hbm [thread:$0]  %s30_s9, 32, %s78_s1, [#allocation1]  }
  0x88   :  { %57 = dma.done.wait [#allocation1], 32  }
  0x89   :  { %58 = vsyncadd [#allocation1], 4294967264 }
  0x8a   :  { %34 = vsyncpa [#allocation1], 1 }

// kernel: meta_model_forward.1
= control target key start
LH: loop header
LB: loop body
LE: loop exit
PB: predicated region body
PF: predicated region fallthrough
CT: control target
= control target key end

     0   :  { %v7936_v50 = vmov 0   ;;  %s7926_s0 = inlined_call_operand.vmem [shape: f32[88,3], index: 0, kind: input, shape index: {}]   ;;  %s7927_s1 = inlined_call_operand.vmem [shape: f32[8,8], index: 1, kind: input, shape index: {}]   ;;  %s7928_s2 = inlined_call_operand.vmem [shape: f32[208,32], index: 2, kind: input, shape index: {}]   ;;  %s7929_s3 = inlined_call_operand.vmem [shape: f32[208,32], index: 3, kind: input, shape index: {}]   ;;  %s7930_s4 = inlined_call_operand.vmem [shape: f32[80,32], index: 4, kind: input, shape index: {}]   ;;  %s7931_s5 = inlined_call_operand.vmem [shape: f32[272,32], index: 5, kind: input, shape index: {}]   ;;  %s7932_s6 = inlined_call_operand.vmem [shape: f32[384,3], index: 6, kind: input, shape index: {}]   ;;  %s7933_s7 = inlined_call_operand.vmem [shape: f32[8,32], index: 7, kind: output, shape index: {}]  }
   0x1   :  { %v5692_v0 = vld [vmem:[%s7932_s6] sm:$0xff]  ;;  %v5697_v1 = vld [vmem:[%s7932_s6 + $0x8] sm:$0xff]  ;;  %v5702_v2 = vld [vmem:[%s7932_s6 + $0x10] sm:$0xff]  ;;  %5574 = vset.pattern.permute.xlu1 %v7936_v50  ;;  %5573 = vset.pattern.permute.xlu0 %v7936_v50 }
   0x2   :  { %v5707_v3 = vld [vmem:[%s7932_s6 + $0x18] sm:$0xff]  ;;  %v5712_v4 = vld [vmem:[%s7932_s6 + $0x20] sm:$0xff]  ;;  %v5717_v5 = vld [vmem:[%s7932_s6 + $0x28] sm:$0xff] }
   0x3   :  { %7991 = vst [vmem:[#allocation6_spill] sm:$0xff] %v5707_v3  ;;  %7992 = vst [vmem:[#allocation7_spill] sm:$0xff] %v5712_v4  ;;  %v5722_v6 = vld [vmem:[%s7932_s6 + $0x30] sm:$0xff]  ;;  %v5727_v7 = vld [vmem:[%s7932_s6 + $0x38] sm:$0xff] }
   0x4   :  { %7993 = vst [vmem:[#allocation8_spill] sm:$0xff] %v5717_v5  ;;  %v5732_v8 = vld [vmem:[%s7932_s6 + $0x40] sm:$0xff]  ;;  %v5737_v9 = vld [vmem:[%s7932_s6 + $0x48] sm:$0xff]  ;;  %v5742_v10 = vld [vmem:[%s7932_s6 + $0x50] sm:$0xff] }
   0x5   :  { %7994 = vst [vmem:[#allocation9_spill] sm:$0xff] %v5737_v9  ;;  %7995 = vst [vmem:[#allocation10_spill] sm:$0xff] %v5742_v10  ;;  %v5747_v11 = vld [vmem:[%s7932_s6 + $0x58] sm:$0xff]  ;;  %v5752_v12 = vld [vmem:[%s7932_s6 + $0x60] sm:$0xff] }
   0x6   :  { %v5757_v13 = vld [vmem:[%s7932_s6 + $0x68] sm:$0xff]  ;;  %v5762_v14 = vld [vmem:[%s7932_s6 + $0x70] sm:$0xff]  ;;  %v5767_v15 = vld [vmem:[%s7932_s6 + $0x78] sm:$0xff] }
   0x7   :  { %7996 = vst [vmem:[#allocation11_spill] sm:$0xff] %v5762_v14  ;;  %v5772_v16 = vld [vmem:[%s7932_s6 + $0x80] sm:$0xff]  ;;  %v5777_v17 = vld [vmem:[%s7932_s6 + $0x88] sm:$0xff]  ;;  %v5782_v18 = vld [vmem:[%s7932_s6 + $0x90] sm:$0xff] }
   0x8   :  { %7997 = vst [vmem:[#allocation12_spill] sm:$0xff] %v5772_v16  ;;  %7998 = vst [vmem:[#allocation13_spill] sm:$0xff] %v5777_v17  ;;  %v5787_v19 = vld [vmem:[%s7932_s6 + $0x98] sm:$0xff]  ;;  %v5792_v20 = vld [vmem:[%s7932_s6 + $0xa0] sm:$0xff] }
   0x9   :  { %v5797_v21 = vld [vmem:[%s7932_s6 + $0xa8] sm:$0xff]  ;;  %v5802_v22 = vld [vmem:[%s7932_s6 + $0xb0] sm:$0xff]  ;;  %v5807_v23 = vld [vmem:[%s7932_s6 + $0xb8] sm:$0xff] }
   0xa   :  { %7999 = vst [vmem:[#allocation14_spill] sm:$0xff] %v5797_v21  ;;  %v5812_v24 = vld [vmem:[%s7932_s6 + $0xc0] sm:$0xff]  ;;  %v5817_v25 = vld [vmem:[%s7932_s6 + $0xc8] sm:$0xff]  ;;  %v5822_v26 = vld [vmem:[%s7932_s6 + $0xd0] sm:$0xff] }
   0xb   :  { %8000 = vst [vmem:[#allocation15_spill] sm:$0xff] %v5817_v25  ;;  %8001 = vst [vmem:[#allocation16_spill] sm:$0xff] %v5822_v26  ;;  %v5827_v27 = vld [vmem:[%s7932_s6 + $0xd8] sm:$0xff]  ;;  %v5832_v28 = vld [vmem:[%s7932_s6 + $0xe0] sm:$0xff] }
   0xc   :  { %v5837_v29 = vld [vmem:[%s7932_s6 + $0xe8] sm:$0xff]  ;;  %v5842_v30 = vld [vmem:[%s7932_s6 + $0xf0] sm:$0xff]  ;;  %v5847_v31 = vld [vmem:[%s7932_s6 + $0xf8] sm:$0xff] }
   0xd   :  { %8002 = vst [vmem:[#allocation17_spill] sm:$0xff] %v5837_v29  ;;  %8003 = vst [vmem:[#allocation18_spill] sm:$0xff] %v5842_v30  ;;  %v5852_v32 = vld [vmem:[%s7932_s6 + $0x100] sm:$0xff]  ;;  %v5857_v33 = vld [vmem:[%s7932_s6 + $0x108] sm:$0xff] }
   0xe   :  { %8004 = vst [vmem:[#allocation19_spill] sm:$0xff] %v5847_v31  ;;  %8005 = vst [vmem:[#allocation20_spill] sm:$0xff] %v5852_v32  ;;  %v5862_v34 = vld [vmem:[%s7932_s6 + $0x110] sm:$0xff]  ;;  %v5867_v35 = vld [vmem:[%s7932_s6 + $0x118] sm:$0xff] }
   0xf   :  { %8006 = vst [vmem:[#allocation21_spill] sm:$0xff] %v5857_v33  ;;  %8007 = vst [vmem:[#allocation22_spill] sm:$0xff] %v5862_v34  ;;  %v5872_v36 = vld [vmem:[%s7932_s6 + $0x120] sm:$0xff]  ;;  %v5877_v37 = vld [vmem:[%s7932_s6 + $0x128] sm:$0xff] }
  0x10   :  { %8008 = vst [vmem:[#allocation23_spill] sm:$0xff] %v5867_v35  ;;  %8009 = vst [vmem:[#allocation24_spill] sm:$0xff] %v5877_v37  ;;  %v5882_v38 = vld [vmem:[%s7932_s6 + $0x130] sm:$0xff]  ;;  %v5887_v39 = vld [vmem:[%s7932_s6 + $0x138] sm:$0xff] }
  0x11   :  { %8010 = vst [vmem:[#allocation25_spill] sm:$0xff] %v5882_v38  ;;  %8011 = vst [vmem:[#allocation26_spill] sm:$0xff] %v5887_v39  ;;  %v5892_v40 = vld [vmem:[%s7932_s6 + $0x140] sm:$0xff]  ;;  %v5897_v41 = vld [vmem:[%s7932_s6 + $0x148] sm:$0xff] }
  0x12   :  { %8012 = vst [vmem:[#allocation27_spill] sm:$0xff] %v5892_v40  ;;  %8013 = vst [vmem:[#allocation28_spill] sm:$0xff] %v5897_v41  ;;  %v5902_v42 = vld [vmem:[%s7932_s6 + $0x150] sm:$0xff]  ;;  %v5907_v43 = vld [vmem:[%s7932_s6 + $0x158] sm:$0xff] }
  0x13   :  { %8014 = vst [vmem:[#allocation29_spill] sm:$0xff] %v5902_v42  ;;  %8015 = vst [vmem:[#allocation30_spill] sm:$0xff] %v5907_v43  ;;  %v5912_v44 = vld [vmem:[%s7932_s6 + $0x160] sm:$0xff]  ;;  %v5917_v45 = vld [vmem:[%s7932_s6 + $0x168] sm:$0xff] }
  0x14   :  { %8016 = vst [vmem:[#allocation31_spill] sm:$0xff] %v5917_v45  ;;  %v5922_v46 = vld [vmem:[%s7932_s6 + $0x170] sm:$0xff]  ;;  %v5927_v47 = vld [vmem:[%s7932_s6 + $0x178] sm:$0xff]  ;;  %v161_v49 = vld [vmem:[%s7926_s0] sm:$0xff] }
  0x15   :  { %8017 = vst [vmem:[#allocation32_spill] sm:$0xff] %v5922_v46  ;;  %8018 = vst [vmem:[#allocation33_spill] sm:$0xff] %v5927_v47  ;;  %v163_v48 = vld [vmem:[%s7926_s0 + $0x10] sm:$0xff]  ;;  %200 = vperm.xlu0 %5573, %v161_v49   ;;  %v165_v51 = vld [vmem:[%s7926_s0 + $0x20] sm:$0xff] }
  0x16   :  { %210 = vperm.xlu1 %5574, %v163_v48   ;;  %v162_v52 = vld [vmem:[%s7926_s0 + $0x8] sm:$0xff] }
  0x17   :  { %160 = vsyncadd [#allocation3], 6144  ;;  %v167_v53 = vld [vmem:[%s7926_s0 + $0x30] sm:$0xff]  ;;  %v166_v54 = vld [vmem:[%s7926_s0 + $0x28] sm:$0xff]  ;;  %v7938_v56 = vmov 1   ;;  %v7934_v61 = vmov 2   ;;  %v253_v35 = vlaneseq }
  0x18   :  { %v168_v55 = vld [vmem:[%s7926_s0 + $0x38] sm:$0xff]  ;;  %v171_v57 = vld [vmem:[%s7926_s0 + $0x50] sm:$0xff]  ;;  %v169_v59 = vld [vmem:[%s7926_s0 + $0x40] sm:$0xff]  ;;  %v7942_v62 = vmov 0.0   ;;  %vm5648_vm0 = vmmov 0   ;;  %vm445_vm1 = vcmask 261120  }
  0x19   :  { %205 = vperm.xlu0 %5573, %v162_v52   ;;  %v164_v58 = vld [vmem:[%s7926_s0 + $0x18] sm:$0xff]  ;;  %v170_v60 = vld [vmem:[%s7926_s0 + $0x48] sm:$0xff]  ;;  %5126 = vmatprep.subr.mxu1 %v7942_v62  ;;  %v6016_v39 = vshrl.u32 %v253_v35, 7  ;;  %v172_v42 = vld [vmem:[%s7928_s2] sm:$0x7]  ;;  %vm1086_vm2 = vcmask 64512  }
  0x1a   :  { %220 = vperm.xlu1 %5574, %v165_v51   ;;  %v177_v63 = vld [vmem:[%s7928_s2 + $0x28] sm:$0xff]  ;;  %5115 = vmatprep.subr.mxu0 %v7942_v62 }
  0x1b   :  { %5127 = vmatpush3.msra.mxu1 %v177_v63  ;;  %5134 = vmatprep.mubr.msk.f32.mxu1 %vm5648_vm0, %v7942_v62  ;;  %8019 = vst [vmem:[#allocation34_spill] sm:$0xff] %v6016_v39  ;;  %v7960_v32 = vsub.s32 1, %v6016_v39  ;;  %v7963_v26 = vsub.s32 0, %v6016_v39  ;;  %v7966_v33 = vsub.s32 2, %v6016_v39 }
  0x1c   :  { %5128 = vmatprep.subr.mxu1 %v7942_v62  ;;  %5123 = vmatprep.mubr.msk.f32.mxu0 %vm5648_vm0, %v7942_v62 }
  0x1d   :  { %225 = vperm.xlu0 %5573, %v166_v54   ;;  %v6028_v16 = vrot.slane %v172_v42, %v7960_v32  ;;  %v6032_v21 = vrot.slane %v172_v42, %v7963_v26  ;;  %v6036_v30 = vrot.slane %v172_v42, %v7966_v33 }
  0x1e   :  { %230 = vperm.xlu1 %5574, %v167_v53  }
  0x21   :  { %235 = vperm.xlu0 %5573, %v168_v55  }
  0x22   :  { %5575 = vset.pattern.permute.xlu1 %v7938_v56 }
  0x23   :  { %273 = vperm.xlu1 %5575, %v162_v52  }
  0x25   :  { %250 = vperm.xlu0 %5573, %v171_v57  }
  0x27   :  { %277 = vperm.xlu1 %5575, %v163_v48  }
  0x29   :  { %5577 = vset.pattern.permute.xlu0 %v7938_v56 }
  0x2a   :  { %269 = vperm.xlu0 %5577, %v161_v49  }
  0x2b   :  { %289 = vperm.xlu1 %5575, %v166_v54  }
  0x2e   :  { %285 = vperm.xlu0 %5577, %v165_v51  }
  0x2f   :  { %5576 = vset.pattern.permute.xlu1 %v7936_v50 }
  0x30   :  { %215 = vperm.xlu1 %5576, %v164_v58  }
  0x32   :  { %293 = vperm.xlu0 %5577, %v167_v53  }
  0x34   :  { %240 = vperm.xlu1 %5576, %v169_v59  }
  0x36   :  { %297 = vperm.xlu0 %5577, %v168_v55  }
  0x38   :  { %245 = vperm.xlu1 %5576, %v170_v60  }
  0x3a   :  { %309 = vperm.xlu0 %5577, %v171_v57  }
  0x3c   :  { %5578 = vset.pattern.permute.xlu1 %v7938_v56 }
  0x3d   :  { %281 = vperm.xlu1 %5578, %v164_v58  }
  0x3e   :  { %5580 = vset.pattern.permute.xlu0 %v7934_v61 }
  0x3f   :  { %343 = vperm.xlu0 %5580, %v162_v52   ;;  %v176_v52 = vld [vmem:[%s7928_s2 + $0x20] sm:$0xff] }
  0x40   :  { %5129 = vmatpush3.msra.mxu1 %v176_v52 }
  0x41   :  { %301 = vperm.xlu1 %5578, %v169_v59   ;;  %5130 = vmatprep.subr.mxu1 %v7942_v62 }
  0x43   :  { %359 = vperm.xlu0 %5580, %v166_v54   ;;  %v175_v54 = vld [vmem:[%s7928_s2 + $0x18] sm:$0xff] }
  0x44   :  { %5131 = vmatpush3.msra.mxu1 %v175_v54 }
  0x45   :  { %305 = vperm.xlu1 %5578, %v170_v60   ;;  %5132 = vmatprep.subr.mxu1 %v7942_v62 }
  0x47   :  { %351 = vperm.xlu0 %5580, %v164_v58  }
  0x49   :  { %5579 = vset.pattern.permute.xlu1 %v7934_v61 }
  0x4a   :  { %339 = vperm.xlu1 %5579, %v161_v49   ;;  %v174_v49 = vld [vmem:[%s7928_s2 + $0x10] sm:$0xff] }
  0x4b   :  { %371 = vperm.xlu0 %5580, %v169_v59   ;;  %5133 = vmatpush3.msra.mxu1 %v174_v49 }
  0x4c   :  { %5208 = vmatprep.subr.mxu1 %v7942_v62 }
  0x4e   :  { %347 = vperm.xlu1 %5579, %v163_v48   ;;  %v181_v48 = vld [vmem:[%s7928_s2 + $0x48] sm:$0xff] }
  0x4f   :  { %379 = vperm.xlu0 %5580, %v171_v57   ;;  %5116 = vmatpush3.msra.mxu0 %v181_v48  ;;  %v180_v57 = vld [vmem:[%s7928_s2 + $0x40] sm:$0xff] }
  0x50   :  { %5117 = vmatprep.subr.mxu0 %v7942_v62 }
  0x51   :  { %5118 = vmatpush3.msra.mxu0 %v180_v57 }
  0x52   :  { %355 = vperm.xlu1 %5579, %v165_v51   ;;  %v179_v51 = vld [vmem:[%s7928_s2 + $0x38] sm:$0xff]  ;;  %5119 = vmatprep.subr.mxu0 %v7942_v62 }
  0x53   :  { %5120 = vmatpush3.msra.mxu0 %v179_v51 }
  0x54   :  { %5121 = vmatprep.subr.mxu0 %v7942_v62 }
  0x56   :  { %363 = vperm.xlu1 %5579, %v167_v53   ;;  %v178_v53 = vld [vmem:[%s7928_s2 + $0x30] sm:$0xff] }
  0x57   :  { %5122 = vmatpush3.msra.mxu0 %v178_v53 }
  0x58   :  { %5167 = vmatprep.subr.mxu0 %v7942_v62 }
  0x5a   :  { %367 = vperm.xlu1 %5579, %v168_v55  }
  0x5e   :  { %375 = vperm.xlu1 %5579, %v170_v60  }
  0x90   :  { %v201_v58 = vpop.permute.xlu0 %200 }
  0x91   :  { %v211_v55 = vpop.permute.xlu1 %210  ;;  %v257_v26 = vmul.f32 %v6032_v21, %v201_v58 }
  0x94   :  { %v206_v60 = vpop.permute.xlu0 %205 }
  0x95   :  { %v221_v59 = vpop.permute.xlu1 %220  ;;  %v258_v4 = vmul.f32 %v6032_v21, %v206_v60 }
  0x96   :  { %v261_v58 = vmul.f32 %v6032_v21, %v221_v59 }
  0x98   :  { %v226_v52 = vpop.permute.xlu0 %225 }
  0x99   :  { %v231_v63 = vpop.permute.xlu1 %230 }
  0x9c   :  { %v6008_v54 = vpop.permute.xlu0 %235 }
  0x9e   :  { %v274_v49 = vpop.permute.xlu1 %273 }
  0x9f   :  { %v317_v40 = vmul.f32 %v6028_v16, %v274_v49 }
  0xa0   :  { %v6010_v48 = vpop.permute.xlu0 %250 }
  0xa1   :  { %v328_v39 = vadd.f32 %v317_v40, %v258_v4 }
  0xa2   :  { %v278_v57 = vpop.permute.xlu1 %277 }
  0xa3   :  { %v318_v49 = vmul.f32 %v6028_v16, %v278_v57  ;;  %v262_v57 = vmul.f32 %v6032_v21, %v226_v52 }
  0xa5   :  { %v270_v50 = vpop.permute.xlu0 %269 }
  0xa6   :  { %v290_v61 = vpop.permute.xlu1 %289  ;;  %v316_v32 = vmul.f32 %v6028_v16, %v270_v50  ;;  %v6059_v50 = vld [vmem:[%s7928_s2 + $0x8] ss:$0 sm:$0xff] }
  0xa7   :  { %v321_v4 = vmul.f32 %v6028_v16, %v290_v61 }
  0xa8   :  { %v327_v33 = vadd.f32 %v316_v32, %v257_v26  ;;  %v259_v26 = vmul.f32 %v6032_v21, %v211_v55 }
  0xa9   :  { %v286_v51 = vpop.permute.xlu0 %285  ;;  %v332_v9 = vadd.f32 %v321_v4, %v262_v57 }
  0xaa   :  { %v320_v32 = vmul.f32 %v6028_v16, %v286_v51  ;;  %v263_v51 = vmul.f32 %v6032_v21, %v231_v63 }
  0xab   :  { %v216_v56 = vpop.permute.xlu1 %215 }
  0xac   :  { %v331_v3 = vadd.f32 %v320_v32, %v261_v58 }
  0xad   :  { %v294_v46 = vpop.permute.xlu0 %293 }
  0xae   :  { %v322_v41 = vmul.f32 %v6028_v16, %v294_v46 }
  0xaf   :  { %v241_v53 = vpop.permute.xlu1 %240 }
  0xb0   :  { %v333_v58 = vadd.f32 %v322_v41, %v263_v51 }
  0xb1   :  { %v6012_v62 = vpop.permute.xlu0 %297 }
  0xb3   :  { %v6014_v34 = vpop.permute.xlu1 %245 }
  0xb5   :  { %v310_v43 = vpop.permute.xlu0 %309 }
  0xb8   :  { %v282_v37 = vpop.permute.xlu1 %281 }
  0xb9   :  { %v319_v10 = vmul.f32 %v6028_v16, %v282_v37 }
  0xba   :  { %v6024_v17 = vpop.permute.xlu0 %343 }
  0xbb   :  { %v387_v38 = vmul.f32 %v6036_v30, %v6024_v17 }
  0xbc   :  { %v302_v35 = vpop.permute.xlu1 %301 }
  0xbd   :  { %v398_v5 = vadd.f32 %v387_v38, %v328_v39  ;;  %v260_v38 = vmul.f32 %v6032_v21, %v216_v56  ;;  %v324_v52 = vmul.f32 %v6028_v16, %v302_v35 }
  0xbe   :  { %v6038_v47 = vpop.permute.xlu0 %359 }
  0xbf   :  { %v413_v14 = vadd.f32 %v6059_v50, %v398_v5  ;;  %v391_v55 = vmul.f32 %v6036_v30, %v6038_v47 }
  0xc0   :  { %v6042_v29 = vpop.permute.xlu1 %305 }
  0xc1   :  { %v402_v4 = vadd.f32 %v391_v55, %v332_v9  ;;  %v323_v9 = vmul.f32 %v6028_v16, %v6012_v62  ;;  %v264_v55 = vmul.f32 %v6032_v21, %v6008_v54 }
  0xc2   :  { %v6047_v31 = vpop.permute.xlu0 %351 }
  0xc3   :  { %v389_v37 = vmul.f32 %v6036_v30, %v6047_v31  ;;  %v417_v62 = vadd.f32 %v6059_v50, %v402_v4 }
  0xc5   :  { %v6050_v42 = vpop.permute.xlu1 %339 }
  0xc6   :  { %v386_v60 = vmul.f32 %v6036_v30, %v6050_v42  ;;  %v6061_v25 = vpop.permute.xlu0 %371 }
  0xc7   :  { %v394_v46 = vmul.f32 %v6036_v30, %v6061_v25 }
  0xc8   :  { %v397_v40 = vadd.f32 %v386_v60, %v327_v33  ;;  %v329_v33 = vadd.f32 %v318_v49, %v259_v26  ;;  %v330_v60 = vadd.f32 %v319_v10, %v260_v38  ;;  %v265_v49 = vmul.f32 %v6032_v21, %v241_v53 }
  0xc9   :  { %v6069_v39 = vpop.permute.xlu1 %347  ;;  %v326_v26 = vmul.f32 %v6028_v16, %v310_v43  ;;  %v424_v38 = vmax.f32 %v413_v14, 0.0 }
  0xca   :  { %v412_v61 = vadd.f32 %v6059_v50, %v397_v40  ;;  %v388_v56 = vmul.f32 %v6036_v30, %v6069_v39  ;;  %v400_v5 = vadd.f32 %v389_v37, %v330_v60  ;;  %v6082_v40 = vpop.permute.xlu0 %379  ;;  %v267_v37 = vmul.f32 %v6032_v21, %v6010_v48 }
  0xcb   :  { %v396_v53 = vmul.f32 %v6036_v30, %v6082_v40  ;;  %v335_v14 = vadd.f32 %v324_v52, %v265_v49  ;;  %v435_v41 = vmul.f32 %v424_v38, %v6024_v17  ;;  %v334_v52 = vadd.f32 %v323_v9, %v264_v55 }
  0xcc   :  { %v423_v59 = vmax.f32 %v412_v61, 0.0  ;;  %v399_v45 = vadd.f32 %v388_v56, %v329_v33  ;;  %v415_v43 = vadd.f32 %v6059_v50, %v400_v5  ;;  %v8020_v61 = vmov 0.0  }
  0xcd   :  { %v6084_v10 = vpop.permute.xlu1 %355  ;;  %v337_v33 = vadd.f32 %v326_v26, %v267_v37  ;;  %v405_v56 = vadd.f32 %v394_v46, %v335_v14  ;;  %v325_v5 = vmul.f32 %v6028_v16, %v6042_v29 }
  0xce   :  { %v434_v63 = vmul.f32 %v423_v59, %v6050_v42  ;;  %v414_v32 = vadd.f32 %v6059_v50, %v399_v45  ;;  %v390_v35 = vmul.f32 %v6036_v30, %v6084_v10  ;;  %v426_v49 = vmax.f32 %v415_v43, 0.0 }
  0xcf   :  { %v407_v51 = vadd.f32 %v396_v53, %v337_v33  ;;  %v420_v16 = vadd.f32 %v6059_v50, %v405_v56 }
  0xd0   :  { %5135 = vmatmul.mubr.msk.f32.vlgmr.msra.gmra.mxu1 %vm445_vm1, %v434_v63  ;;  %v401_v57 = vadd.f32 %v390_v35, %v331_v3  ;;  %v425_v48 = vmax.f32 %v414_v32, 0.0  ;;  %v266_v32 = vmul.f32 %v6032_v21, %v6014_v34  ;;  %v428_v35 = vmax.f32 %v417_v62, 0.0 }
  0xd1   :  { %v6102_v45 = vpop.permute.xlu1 %363  ;;  %5137 = vmatprep.mubr.msk.f32.mxu1 %vm5648_vm0, %v8020_v61  ;;  %v422_v29 = vadd.f32 %v6059_v50, %v407_v51  ;;  %v437_v9 = vmul.f32 %v426_v49, %v6047_v31 }
  0xd2   :  { %v392_v60 = vmul.f32 %v6036_v30, %v6102_v45  ;;  %v416_v3 = vadd.f32 %v6059_v50, %v401_v57  ;;  %v436_v54 = vmul.f32 %v425_v48, %v6069_v39  ;;  %v336_v53 = vadd.f32 %v325_v5, %v266_v32 }
  0xd3   :  { %v439_v33 = vmul.f32 %v428_v35, %v6038_v47  ;;  %v431_v48 = vmax.f32 %v420_v16, 0.0 }
  0xd4   :  { %v403_v59 = vadd.f32 %v392_v60, %v333_v58  ;;  %5138 = vmatmul.mubr.msk.f32.gmra.mxu1 %vm445_vm1, %v435_v41  ;;  %v427_v38 = vmax.f32 %v416_v3, 0.0  ;;  %v433_v60 = vmax.f32 %v422_v29, 0.0  ;;  %v448_v49 = vsel %vm445_vm1, %v436_v54, -inf }
  0xd5   :  { %v6116_v26 = vpop.permute.xlu1 %367  ;;  %5140 = vmatprep.mubr.msk.f32.mxu1 %vm5648_vm0, %v8020_v61  ;;  %v442_v5 = vmul.f32 %v431_v48, %v6061_v25 }
  0xd6   :  { %v418_v4 = vadd.f32 %v6059_v50, %v403_v59  ;;  %v393_v46 = vmul.f32 %v6036_v30, %v6116_v26  ;;  %v438_v43 = vmul.f32 %v427_v38, %v6084_v10  ;;  %v444_v38 = vmul.f32 %v433_v60, %v6082_v40  ;;  %v184_v60 = vld [vmem:[%s7928_s2 + $0x60] sm:$0xff] }
  0xd8   :  { %v429_v37 = vmax.f32 %v418_v4, 0.0  ;;  %v404_v58 = vadd.f32 %v393_v46, %v334_v52  ;;  %5141 = vmatmul.mubr.msk.f32.gmra.mxu1 %vm445_vm1, %v436_v54  ;;  %v450_v56 = vsel %vm445_vm1, %v438_v43, -inf  ;;  %v446_v52 = vsel %vm445_vm1, %v434_v63, -inf }
  0xd9   :  { %v6130_v14 = vpop.permute.xlu1 %375  ;;  %5143 = vmatprep.mubr.msk.f32.mxu1 %vm5648_vm0, %v8020_v61  ;;  %v451_v32 = vmax.f32 %v446_v52, %v450_v56  ;;  %v449_v63 = vsel %vm445_vm1, %v437_v9, -inf }
  0xda   :  { %v440_v21 = vmul.f32 %v429_v37, %v6102_v45  ;;  %v419_v34 = vadd.f32 %v6059_v50, %v404_v58  ;;  %v395_v57 = vmul.f32 %v6036_v30, %v6130_v14  ;;  %v452_v30 = vsel %vm445_vm1, %v439_v33, -inf }
  0xdb   :  { %v458_v37 = vsel %vm445_vm1, %v442_v5, -inf  ;;  %v462_v58 = vsel %vm445_vm1, %v444_v38, -inf }
  0xdc   :  { %v430_v55 = vmax.f32 %v419_v34, 0.0  ;;  %v406_v62 = vadd.f32 %v395_v57, %v336_v53  ;;  %5144 = vmatmul.mubr.msk.f32.gmra.mxu1 %vm445_vm1, %v437_v9  ;;  %v454_v3 = vsel %vm445_vm1, %v440_v21, -inf  ;;  %v459_v34 = vmax.f32 %v451_v32, %v458_v37 }
  0xdd   :  { %5146 = vmatprep.mubr.msk.f32.mxu1 %vm5648_vm0, %v8020_v61  ;;  %v455_v35 = vmax.f32 %v448_v49, %v454_v3 }
  0xde   :  { %v441_v51 = vmul.f32 %v430_v55, %v6116_v26  ;;  %v421_v59 = vadd.f32 %v6059_v50, %v406_v62  ;;  %v447_v50 = vsel %vm445_vm1, %v435_v41, -inf  ;;  %v183_v55 = vld [vmem:[%s7928_s2 + $0x58] sm:$0xff] }
  0xdf   :  { %v453_v54 = vmax.f32 %v447_v50, %v452_v30 }
  0xe0   :  { %v456_v4 = vsel %vm445_vm1, %v441_v51, -inf  ;;  %v432_v46 = vmax.f32 %v421_v59, 0.0  ;;  %5147 = vmatmul.mubr.msk.f32.gmra.mxu1 %vm445_vm1, %v438_v43  ;;  %v463_v43 = vmax.f32 %v455_v35, %v462_v58  ;;  %v4701_v35 = vld [vmem:[%s7928_s2 + $0x50] ss:$0 sm:$0xff] }
  0xe1   :  { %5149 = vmatprep.mubr.msk.f32.mxu1 %vm5648_vm0, %v8020_v61  ;;  %v457_v29 = vmax.f32 %v449_v63, %v456_v4 }
  0xe2   :  { %v443_v16 = vmul.f32 %v432_v46, %v6130_v14 }
  0xe3   :  { %v465_v9 = vmax.f32 %v463_v43, %v457_v29 }
  0xe4   :  { %v460_v53 = vsel %vm445_vm1, %v443_v16, -inf  ;;  %5150 = vmatmul.mubr.msk.f32.gmra.mxu1 %vm445_vm1, %v439_v33  ;;  %v185_v33 = vld [vmem:[%s7928_s2 + $0x68] sm:$0xff] }
  0xe5   :  { %v461_v57 = vmax.f32 %v453_v54, %v460_v53  ;;  %5152 = vmatprep.mubr.msk.f32.mxu1 %vm5648_vm0, %v8020_v61 }
  0xe7   :  { %v464_v41 = vmax.f32 %v459_v34, %v461_v57 }
  0xe8   :  { %5153 = vmatmul.mubr.msk.f32.gmra.mxu1 %vm445_vm1, %v440_v21  ;;  %v186_v21 = vld [vmem:[%s7928_s2 + $0x70] sm:$0xff] }
  0xe9   :  { %v466_v48 = vmax.f32 %v464_v41, %v465_v9  ;;  %5155 = vmatprep.mubr.msk.f32.mxu1 %vm5648_vm0, %v8020_v61 }
  0xeb   :  { %5124 = vmatmul.mubr.msk.f32.vlgmr.msra.gmra.mxu0 %vm445_vm1, %v466_v48 }
  0xec   :  { %5156 = vmatmul.mubr.msk.f32.gmra.mxu1 %vm445_vm1, %v441_v51  ;;  %5175 = vmatprep.mubr.msk.f32.mxu0 %vm5648_vm0, %v8020_v61 }
  0xed   :  { %5158 = vmatprep.mubr.msk.f32.mxu1 %vm5648_vm0, %v8020_v61  ;;  %5168 = vmatpush3.msra.mxu0 %v186_v21 }
  0xee   :  { %5169 = vmatprep.subr.mxu0 %v8020_v61 }
  0xef   :  { %5170 = vmatpush3.msra.mxu0 %v185_v33 }
  0xf0   :  { %5159 = vmatmul.mubr.msk.f32.gmra.mxu1 %vm445_vm1, %v442_v5  ;;  %5171 = vmatprep.subr.mxu0 %v8020_v61 }
  0xf1   :  { %5161 = vmatprep.mubr.msk.f32.mxu1 %vm5648_vm0, %v8020_v61  ;;  %5172 = vmatpush3.msra.mxu0 %v184_v60 }
  0xf2   :  { %5173 = vmatprep.subr.mxu0 %v8020_v61 }
  0xf3   :  { %5174 = vmatpush3.msra.mxu0 %v183_v55 }
  0xf4   :  { %5162 = vmatmul.mubr.msk.f32.gmra.mxu1 %vm445_vm1, %v443_v16  ;;  %5219 = vmatprep.subr.mxu0 %v8020_v61 }
  0xf5   :  { %5164 = vmatprep.mubr.msk.f32.mxu1 %vm5648_vm0, %v8020_v61 }
  0xf8   :  { %5165 = vmatmul.mubr.msk.f32.gmra.mxu1 %vm445_vm1, %v444_v38 }
  0xf9   :  { %5216 = vmatprep.mubr.msk.f32.mxu1 %vm5648_vm0, %v8020_v61 }
 0x190   :  { %v643_v62 = vpop.f32.mrf.mxu1 }
 0x192   :  { %v5136_v56 = vpop.f32.mrf.mxu1 }
 0x194   :  { %v648_v3 = vpop.f32.mrf.mxu1 }
 0x196   :  { %v5139_v51 = vpop.f32.mrf.mxu1 }
 0x198   :  { %v653_v59 = vpop.f32.mrf.mxu1 }
 0x19a   :  { %v5142_v30 = vpop.f32.mrf.mxu1 }
 0x19c   :  { %v658_v52 = vpop.f32.mrf.mxu1 }
 0x19e   :  { %v5145_v5 = vpop.f32.mrf.mxu1 }
 0x1a0   :  { %v663_v49 = vpop.f32.mrf.mxu1 }
 0x1a2   :  { %v5148_v38 = vpop.f32.mrf.mxu1 }
 0x1a4   :  { %v668_v4 = vpop.f32.mrf.mxu1 }
 0x1a6   :  { %v5151_v46 = vpop.f32.mrf.mxu1 }
 0x1a8   :  { %v673_v32 = vpop.f32.mrf.mxu1 }
 0x1aa   :  { %v5154_v50 = vpop.f32.mrf.mxu1 }
 0x1ab   :  { %v540_v63 = vpop.f32.mrf.mxu0 }
 0x1ac   :  { %v541_v16 = vadd.f32 %v4701_v35, %v540_v63  ;;  %v678_v29 = vpop.f32.mrf.mxu1 }
 0x1ad   :  { %v5125_v54 = vpop.f32.mrf.mxu0 }
 0x1ae   :  { %v5157_v37 = vpop.f32.mrf.mxu1  ;;  %v697_v58 = vadd.f32 %v643_v62, %v541_v16  ;;  %v698_v53 = vadd.f32 %v648_v3, %v541_v16  ;;  %v699_v48 = vadd.f32 %v653_v59, %v541_v16  ;;  %v700_v56 = vadd.f32 %v658_v52, %v541_v16 }
 0x1af   :  { %v701_v30 = vadd.f32 %v663_v49, %v541_v16  ;;  %v702_v52 = vadd.f32 %v668_v4, %v541_v16  ;;  %v703_v50 = vadd.f32 %v673_v32, %v541_v16  ;;  %v704_v49 = vadd.f32 %v678_v29, %v541_v16 }
 0x1b0   :  { %v683_v43 = vpop.f32.mrf.mxu1  ;;  %v708_v34 = vmax.f32 %v697_v58, 0.0  ;;  %v709_v9 = vmax.f32 %v698_v53, 0.0  ;;  %v710_v55 = vmax.f32 %v699_v48, 0.0  ;;  %v711_v59 = vmax.f32 %v700_v56, 0.0  ;;  %v195_v56 = vld [vmem:[%s7928_s2 + $0xb8] sm:$0xff] }
 0x1b1   :  { %v712_v38 = vmax.f32 %v701_v30, 0.0  ;;  %v713_v35 = vmax.f32 %v702_v52, 0.0  ;;  %v714_v54 = vmax.f32 %v703_v50, 0.0  ;;  %v715_v4 = vmax.f32 %v704_v49, 0.0 }
 0x1b2   :  { %v5160_v57 = vpop.f32.mrf.mxu1  ;;  %v719_v41 = vmul.f32 %v708_v34, %v6050_v42  ;;  %v720_v60 = vmul.f32 %v709_v9, %v6024_v17  ;;  %v721_v51 = vmul.f32 %v710_v55, %v6069_v39  ;;  %v722_v5 = vmul.f32 %v711_v59, %v6047_v31  ;;  %v196_v55 = vld [vmem:[%s7928_s2 + $0xc0] sm:$0xff] }
 0x1b3   :  { %v723_v46 = vmul.f32 %v712_v38, %v6084_v10  ;;  %v724_v63 = vmul.f32 %v713_v35, %v6038_v47  ;;  %v705_v37 = vadd.f32 %v683_v43, %v541_v16  ;;  %v725_v58 = vmul.f32 %v714_v54, %v6102_v45 }
 0x1b4   :  { %v688_v21 = vpop.f32.mrf.mxu1  ;;  %5176 = vmatmul.mubr.msk.f32.vlgmr.msra.gmra.mxu0 %vm445_vm1, %v719_v41  ;;  %v726_v32 = vmul.f32 %v715_v4, %v6116_v26 }
 0x1b5   :  { %5178 = vmatprep.mubr.msk.f32.mxu0 %vm5648_vm0, %v8020_v61  ;;  %v716_v29 = vmax.f32 %v705_v37, 0.0  ;;  %v706_v53 = vadd.f32 %v688_v21, %v541_v16  ;;  %v190_v21 = vld [vmem:[%s7928_s2 + $0x90] sm:$0xff]  ;;  %5220 = vmatpush3.msra.mxu0 %v196_v55 }
 0x1b6   :  { %v5163_v33 = vpop.f32.mrf.mxu1  ;;  %5221 = vmatprep.subr.mxu0 %v8020_v61 }
 0x1b7   :  { %v727_v34 = vmul.f32 %v716_v29, %v6061_v25  ;;  %v717_v57 = vmax.f32 %v706_v53, 0.0  ;;  %v189_v33 = vld [vmem:[%s7928_s2 + $0x88] sm:$0xff]  ;;  %5222 = vmatpush3.msra.mxu0 %v195_v56 }
 0x1b8   :  { %v693_v62 = vpop.f32.mrf.mxu1  ;;  %5179 = vmatmul.mubr.msk.f32.gmra.mxu0 %vm445_vm1, %v720_v60  ;;  %v188_v60 = vld [vmem:[%s7928_s2 + $0x80] sm:$0xff]  ;;  %5223 = vmatprep.subr.mxu0 %v8020_v61 }
 0x1b9   :  { %5181 = vmatprep.mubr.msk.f32.mxu0 %vm5648_vm0, %v8020_v61  ;;  %v707_v43 = vadd.f32 %v693_v62, %v541_v16  ;;  %v728_v41 = vmul.f32 %v717_v57, %v6130_v14  ;;  %v191_v16 = vld [vmem:[%s7928_s2 + $0x98] sm:$0xff]  ;;  %v194_v62 = vld [vmem:[%s7928_s2 + $0xb0] sm:$0xff] }
 0x1ba   :  { %v5166_v3 = vpop.f32.mrf.mxu1  ;;  %5209 = vmatpush3.msra.mxu1 %v191_v16  ;;  %5224 = vmatpush3.msra.mxu0 %v194_v62 }
 0x1bb   :  { %v718_v9 = vmax.f32 %v707_v43, 0.0  ;;  %5210 = vmatprep.subr.mxu1 %v8020_v61  ;;  %v193_v3 = vld [vmem:[%s7928_s2 + $0xa8] sm:$0xff]  ;;  %5225 = vmatprep.subr.mxu0 %v8020_v61 }
 0x1bc   :  { %5182 = vmatmul.mubr.msk.f32.gmra.mxu0 %vm445_vm1, %v721_v51  ;;  %5211 = vmatpush3.msra.mxu1 %v190_v21 }
 0x1bd   :  { %5184 = vmatprep.mubr.msk.f32.mxu0 %vm5648_vm0, %v8020_v61  ;;  %v729_v48 = vmul.f32 %v718_v9, %v6082_v40  ;;  %5212 = vmatprep.subr.mxu1 %v8020_v61 }
 0x1be   :  { %5213 = vmatpush3.msra.mxu1 %v189_v33  ;;  %5226 = vmatpush3.msra.mxu0 %v193_v3 }
 0x1bf   :  { %5214 = vmatprep.subr.mxu1 %v8020_v61 }
 0x1c0   :  { %5185 = vmatmul.mubr.msk.f32.gmra.mxu0 %vm445_vm1, %v722_v5  ;;  %5215 = vmatpush3.msra.mxu1 %v188_v60 }
 0x1c1   :  { %5187 = vmatprep.mubr.msk.f32.mxu0 %vm5648_vm0, %v8020_v61  ;;  %5230 = vmatprep.subr.mxu1 %v8020_v61 }
 0x1c4   :  { %5188 = vmatmul.mubr.msk.f32.gmra.mxu0 %vm445_vm1, %v723_v46 }
 0x1c5   :  { %5190 = vmatprep.mubr.msk.f32.mxu0 %vm5648_vm0, %v8020_v61 }
 0x1c8   :  { %5191 = vmatmul.mubr.msk.f32.gmra.mxu0 %vm445_vm1, %v724_v63 }
 0x1c9   :  { %5193 = vmatprep.mubr.msk.f32.mxu0 %vm5648_vm0, %v8020_v61 }
 0x1cc   :  { %5194 = vmatmul.mubr.msk.f32.gmra.mxu0 %vm445_vm1, %v725_v58  ;;  %v4714_v58 = vld [vmem:[%s7928_s2 + $0x78] ss:$0 sm:$0xff] }
 0x1cd   :  { %5196 = vmatprep.mubr.msk.f32.mxu0 %vm5648_vm0, %v8020_v61 }
 0x1d0   :  { %5197 = vmatmul.mubr.msk.f32.gmra.mxu0 %vm445_vm1, %v726_v32 }
 0x1d1   :  { %5199 = vmatprep.mubr.msk.f32.mxu0 %vm5648_vm0, %v8020_v61 }
 0x1d4   :  { %5200 = vmatmul.mubr.msk.f32.gmra.mxu0 %vm445_vm1, %v727_v34 }
 0x1d5   :  { %5202 = vmatprep.mubr.msk.f32.mxu0 %vm5648_vm0, %v8020_v61 }
 0x1d8   :  { %5203 = vmatmul.mubr.msk.f32.gmra.mxu0 %vm445_vm1, %v728_v41 }
 0x1d9   :  { %5205 = vmatprep.mubr.msk.f32.mxu0 %vm5648_vm0, %v8020_v61 }
 0x1dc   :  { %5206 = vmatmul.mubr.msk.f32.gmra.mxu0 %vm445_vm1, %v729_v48 }
 0x1dd   :  { %5227 = vmatprep.mubr.msk.f32.mxu0 %vm5648_vm0, %v8020_v61 }
 0x274   :  { %v833_v51 = vpop.f32.mrf.mxu0 }
 0x275   :  { %v834_v41 = vadd.f32 %v4714_v58, %v833_v51 }
 0x276   :  { %v5177_v59 = vpop.f32.mrf.mxu0 }
 0x277   :  { %v887_v59 = vmax.f32 %v834_v41, 0.0 }
 0x278   :  { %v838_v30 = vpop.f32.mrf.mxu0 }
 0x279   :  { %v839_v53 = vadd.f32 %v4714_v58, %v838_v30 }
 0x27a   :  { %v5180_v5 = vpop.f32.mrf.mxu0 }
 0x27b   :  { %v888_v60 = vmax.f32 %v839_v53, 0.0 }
 0x27c   :  { %v843_v38 = vpop.f32.mrf.mxu0 }
 0x27d   :  { %v844_v9 = vadd.f32 %v4714_v58, %v843_v38  ;;  %v899_v51 = vmul.f32 %v888_v60, %v6024_v17 }
 0x27e   :  { %v5183_v52 = vpop.f32.mrf.mxu0 }
 0x27f   :  { %v889_v5 = vmax.f32 %v844_v9, 0.0 }
 0x280   :  { %v848_v46 = vpop.f32.mrf.mxu0 }
 0x281   :  { %v849_v55 = vadd.f32 %v4714_v58, %v848_v46 }
 0x282   :  { %v5186_v35 = vpop.f32.mrf.mxu0 }
 0x283   :  { %v890_v38 = vmax.f32 %v849_v55, 0.0 }
 0x284   :  { %v853_v50 = vpop.f32.mrf.mxu0 }
 0x285   :  { %v854_v57 = vadd.f32 %v4714_v58, %v853_v50 }
 0x286   :  { %v5189_v49 = vpop.f32.mrf.mxu0 }
 0x287   :  { %v891_v62 = vmax.f32 %v854_v57, 0.0 }
 0x288   :  { %v858_v63 = vpop.f32.mrf.mxu0 }
 0x289   :  { %v859_v32 = vadd.f32 %v4714_v58, %v858_v63 }
 0x28a   :  { %v5192_v54 = vpop.f32.mrf.mxu0 }
 0x28b   :  { %v892_v48 = vmax.f32 %v859_v32, 0.0  ;;  %v902_v54 = vmul.f32 %v891_v62, %v6084_v10  ;;  %v900_v32 = vmul.f32 %v889_v5, %v6069_v39  ;;  %v901_v10 = vmul.f32 %v890_v38, %v6047_v31 }
 0x28c   :  { %v863_v4 = vpop.f32.mrf.mxu0 }
 0x28d   :  { %v864_v43 = vadd.f32 %v4714_v58, %v863_v4  ;;  %v903_v52 = vmul.f32 %v892_v48, %v6038_v47  ;;  %v913_v41 = vsel %vm445_vm1, %v902_v54, -inf  ;;  %v912_v60 = vsel %vm445_vm1, %v901_v10, -inf  ;;  %v1085_v54 = vld [vmem:[%s7927_s1] sm:$0xff] }
 0x28e   :  { %v5195_v37 = vpop.f32.mrf.mxu0  ;;  %v8022_v10 = vmov 1  }
 0x28f   :  { %v893_v3 = vmax.f32 %v864_v43, 0.0  ;;  %v898_v37 = vmul.f32 %v887_v59, %v6050_v42  ;;  %v910_v43 = vsel %vm445_vm1, %v899_v51, -inf  ;;  %v4728_v51 = vld [vmem:[%s7928_s2 + $0xc8] ss:$0 sm:$0xff]  ;;  %5582 = vset.pattern.permute.xlu1 %v8022_v10 }
 0x290   :  { %v868_v29 = vpop.f32.mrf.mxu0 }
 0x291   :  { %v869_v21 = vadd.f32 %v4714_v58, %v868_v29  ;;  %v904_v4 = vmul.f32 %v893_v3, %v6102_v45  ;;  %v915_v29 = vsel %vm445_vm1, %v903_v52, -inf  ;;  %v909_v48 = vsel %vm445_vm1, %v898_v37, -inf  ;;  %v1162_v37 = vld [vmem:[%s7931_s5 + $0x10] sm:$0xff] }
 0x292   :  { %v5198_v34 = vpop.f32.mrf.mxu0  ;;  %v914_v31 = vmax.f32 %v909_v48, %v913_v41 }
 0x293   :  { %v894_v30 = vmax.f32 %v869_v21, 0.0  ;;  %v917_v42 = vsel %vm445_vm1, %v904_v4, -inf }
 0x294   :  { %v873_v16 = vpop.f32.mrf.mxu0 }
 0x295   :  { %v874_v33 = vadd.f32 %v4714_v58, %v873_v16  ;;  %v905_v53 = vmul.f32 %v894_v30, %v6116_v26  ;;  %v916_v26 = vmax.f32 %v910_v43, %v915_v29  ;;  %v1160_v29 = vld [vmem:[%s7931_s5] sm:$0xff] }
 0x296   :  { %v5201_v56 = vpop.f32.mrf.mxu0 }
 0x297   :  { %v895_v49 = vmax.f32 %v874_v33, 0.0 }
 0x298   :  { %v878_v35 = vpop.f32.mrf.mxu0 }
 0x299   :  { %v879_v50 = vadd.f32 %v4714_v58, %v878_v35  ;;  %v906_v34 = vmul.f32 %v895_v49, %v6061_v25  ;;  %v911_v25 = vsel %vm445_vm1, %v900_v32, -inf  ;;  %v1161_v32 = vld [vmem:[%s7931_s5 + $0x8] sm:$0xff] }
 0x29a   :  { %v5204_v63 = vpop.f32.mrf.mxu0  ;;  %v918_v21 = vmax.f32 %v911_v25, %v917_v42 }
 0x29b   :  { %v896_v46 = vmax.f32 %v879_v50, 0.0 }
 0x29c   :  { %v883_v47 = vpop.f32.mrf.mxu0 }
 0x29d   :  { %v907_v17 = vmul.f32 %v896_v46, %v6130_v14  ;;  %v884_v57 = vadd.f32 %v4714_v58, %v883_v47  ;;  %v919_v14 = vsel %vm445_vm1, %v905_v53, -inf  ;;  %v921_v58 = vsel %vm445_vm1, %v906_v34, -inf  ;;  %v1163_v46 = vld [vmem:[%s7931_s5 + $0x18] sm:$0xff]  ;;  %v1164_v34 = vld [vmem:[%s7931_s5 + $0xe0] sm:$0xff] }
 0x29e   :  { %v5207_v45 = vpop.f32.mrf.mxu0  ;;  %v920_v56 = vmax.f32 %v912_v60, %v919_v14  ;;  %v922_v62 = vmax.f32 %v914_v31, %v921_v58 }
 0x29f   :  { %v923_v39 = vsel %vm445_vm1, %v907_v17, -inf  ;;  %v897_v9 = vmax.f32 %v884_v57, 0.0  ;;  %v8023_v45 = vmov 0  }
 0x2a0   :  { %v924_v33 = vmax.f32 %v916_v26, %v923_v39  ;;  %5581 = vset.pattern.permute.xlu0 %v8023_v45 }
 0x2a1   :  { %v908_v16 = vmul.f32 %v897_v9, %v6082_v40  ;;  %v4726_v40 = vld [vmem:[%s7928_s2 + $0xa0] ss:$0 sm:$0xff] }
 0x2a2   :  { %v927_v59 = vmax.f32 %v922_v62, %v924_v33 }
 0x2a3   :  { %v925_v55 = vsel %vm445_vm1, %v908_v16, -inf }
 0x2a4   :  { %v926_v3 = vmax.f32 %v918_v21, %v925_v55 }
 0x2a6   :  { %v928_v5 = vmax.f32 %v926_v3, %v920_v56 }
 0x2a8   :  { %v929_v52 = vmax.f32 %v927_v59, %v928_v5 }
 0x2aa   :  { %5217 = vmatmul.mubr.msk.f32.vlgmr.msra.gmra.mxu1 %vm445_vm1, %v929_v52 }
 0x2ab   :  { %5232 = vmatprep.mubr.msk.f32.mxu1 %vm5648_vm0, %v8020_v61 }
 0x36a   :  { %v1003_v35 = vpop.f32.mrf.mxu1 }
 0x36b   :  { %v1004_v30 = vadd.f32 %v4726_v40, %v1003_v35 }
 0x36c   :  { %v5218_v49 = vpop.f32.mrf.mxu1 }
 0x36d   :  { %v1007_v50 = vmax.f32 %v1004_v30, 0.0 }
 0x36f   :  { %5228 = vmatmul.mubr.msk.f32.vlgmr.msra.gmra.mxu0 %vm445_vm1, %v1007_v50 }
 0x42f   :  { %v1081_v38 = vpop.f32.mrf.mxu0 }
 0x430   :  { %v1082_v63 = vadd.f32 %v4728_v51, %v1081_v38 }
 0x431   :  { %v5229_v4 = vpop.f32.mrf.mxu0 }
 0x432   :  { %5231 = vmatpush3.msra.mxu1 %v1082_v63 }
 0x433   :  { %5233 = vmatmul.mubr.msk.f32.vlgmr.msra.gmra.mxu1 %vm1086_vm2, %v1085_v54  ;;  %5235 = vmatprep.subr.mxu1 %v8020_v61 }
 0x434   :  { %5236 = vmatpush3.msra.mxu1 %v1163_v46  ;;  %5243 = vmatprep.mubr.msk.f32.mxu1 %vm5648_vm0, %v8020_v61 }
 0x435   :  { %5237 = vmatprep.subr.mxu1 %v8020_v61 }
 0x436   :  { %5238 = vmatpush3.msra.mxu1 %v1162_v37 }
 0x437   :  { %5239 = vmatprep.subr.mxu1 %v8020_v61 }
 0x438   :  { %5240 = vmatpush3.msra.mxu1 %v1161_v32 }
 0x439   :  { %5241 = vmatprep.subr.mxu1 %v8020_v61 }
 0x43a   :  { %5242 = vmatpush3.msra.mxu1 %v1160_v29 }
 0x4f3   :  { %v1156_v47 = vpop.f32.mrf.mxu1 }
 0x4f4   :  { %5244 = vmatmul.mubr.msk.f32.vlgmr.msra.gmra.mxu1 %vm445_vm1, %v1156_v47 }
 0x4f5   :  { %v5234_v53 = vpop.f32.mrf.mxu1 }
 0x5b4   :  { %v1234_v17 = vpop.f32.mrf.mxu1 }
 0x5b5   :  { %v6337_v57 = vadd.f32 %v1234_v17, %v1164_v34 }
 0x5b6   :  { %v5245_v43 = vpop.f32.mrf.mxu1 }
 0x5b7   :  { %8021 = vst [vmem:[#allocation35_spill] sm:$0xff] %v6337_v57 }
 0x5b8   :  { %5642 = dma.done.wait [#allocation3], 6144 }
 0x5b9   :  { %5643 = vsyncadd [#allocation3], 4294961152  ;;  %1608 = vperm.xlu1 %5582, %v5692_v0   ;;  %1317 = vperm.xlu0 %5581, %v5692_v0   ;;  %v8024_v41 = vmov 2   ;;  %v8027_v42 = vld [vmem:[#allocation28_spill] sm:$0xff]  ;;  %v8028_v39 = vld [vmem:[#allocation9_spill] sm:$0xff] }
 0x5ba   :  { %v8029_v9 = vld [vmem:[#allocation11_spill] sm:$0xff]  ;;  %v8031_v26 = vld [vmem:[#allocation10_spill] sm:$0xff]  ;;  %v8032_v25 = vld [vmem:[#allocation8_spill] sm:$0xff] }
 0x5bb   :  { %v8030_v48 = vld [vmem:[#allocation15_spill] sm:$0xff]  ;;  %v8038_v60 = vld [vmem:[#allocation33_spill] sm:$0xff]  ;;  %v8039_v62 = vld [vmem:[#allocation18_spill] sm:$0xff] }
 0x5bc   :  { %v8033_v14 = vld [vmem:[#allocation19_spill] sm:$0xff]  ;;  %v1289_v59 = vld [vmem:[%s7929_s3] sm:$0x7]  ;;  %v1292_v38 = vld [vmem:[%s7929_s3 + $0x18] sm:$0xff] }
 0x5bd   :  { %1632 = vperm.xlu1 %5582, %v5722_v6   ;;  %1347 = vperm.xlu0 %5581, %v5722_v6   ;;  %v8036_v16 = vld [vmem:[#allocation27_spill] sm:$0xff] }
 0x5be   :  { %v8037_v31 = vld [vmem:[#allocation7_spill] sm:$0xff] }
 0x5bf   :  { %v1294_v52 = vld [vmem:[%s7929_s3 + $0x28] sm:$0xff] }
 0x5c0   :  { %5263 = vmatprep.subr.mxu1 %v1294_v52  ;;  %v6486_v34 = vld [vmem:[%s7929_s3 + $0x8] ss:$0 sm:$0xff] }
 0x5c1   :  { %5583 = vset.pattern.permute.xlu1 %v8023_v45  ;;  %1322 = vperm.xlu0 %5581, %v5697_v1  }
 0x5c2   :  { %1352 = vperm.xlu1 %5583, %v5727_v7   ;;  %5264 = vmatpush3.msra.mxu1 %v1294_v52 }
 0x5c5   :  { %1327 = vperm.xlu0 %5581, %v5702_v2  }
 0x5c6   :  { %5584 = vset.pattern.permute.xlu1 %v8022_v10 }
 0x5c7   :  { %1636 = vperm.xlu1 %5584, %v5727_v7  }
 0x5c9   :  { %1412 = vperm.xlu0 %5581, %v5787_v19  }
 0x5cb   :  { %5585 = vset.pattern.permute.xlu1 %v8023_v45 }
 0x5cc   :  { %1377 = vperm.xlu1 %5585, %v5752_v12  }
 0x5cd   :  { %1437 = vperm.xlu0 %5581, %v5812_v24  }
 0x5d0   :  { %5586 = vset.pattern.permute.xlu1 %v8024_v41 }
 0x5d1   :  { %1900 = vperm.xlu1 %5586, %v5692_v0   ;;  %1392 = vperm.xlu0 %5581, %v5767_v15   ;;  %v8025_v0 = vld [vmem:[#allocation31_spill] sm:$0xff] }
 0x5d5   :  { %5587 = vset.pattern.permute.xlu1 %v8023_v45  ;;  %1417 = vperm.xlu0 %5581, %v5792_v20  }
 0x5d6   :  { %1382 = vperm.xlu1 %5587, %v5757_v13  }
 0x5d9   :  { %1372 = vperm.xlu0 %5581, %v5747_v11  }
 0x5da   :  { %5588 = vset.pattern.permute.xlu1 %v8022_v10 }
 0x5db   :  { %1660 = vperm.xlu1 %5588, %v5757_v13  }
 0x5dd   :  { %1497 = vperm.xlu0 %5581, %v5872_v36  }
 0x5df   :  { %5589 = vset.pattern.permute.xlu1 %v8024_v41 }
 0x5e0   :  { %1928 = vperm.xlu1 %5589, %v5727_v7   ;;  %v8026_v7 = vld [vmem:[#allocation6_spill] sm:$0xff] }
 0x5e1   :  { %1452 = vperm.xlu0 %5581, %v5827_v27  }
 0x5e4   :  { %5590 = vset.pattern.permute.xlu1 %v8023_v45 }
 0x5e5   :  { %1357 = vperm.xlu1 %5590, %v5732_v8   ;;  %1427 = vperm.xlu0 %5581, %v5802_v22  }
 0x5e9   :  { %1407 = vperm.xlu1 %5590, %v5782_v18   ;;  %1432 = vperm.xlu0 %5581, %v5807_v23  }
 0x5ed   :  { %5591 = vset.pattern.permute.xlu1 %v8022_v10  ;;  %1457 = vperm.xlu0 %5581, %v5832_v28  }
 0x5ee   :  { %1640 = vperm.xlu1 %5591, %v5732_v8  }
 0x5f1   :  { %1537 = vperm.xlu0 %5581, %v5912_v44  }
 0x5f2   :  { %1680 = vperm.xlu1 %5591, %v5782_v18  }
 0x5f5   :  { %1542 = vperm.xlu0 %5581, %v8025_v0  }
 0x5f6   :  { %5592 = vset.pattern.permute.xlu1 %v8023_v45 }
 0x5f7   :  { %1332 = vperm.xlu1 %5592, %v8026_v7  }
 0x5f9   :  { %1522 = vperm.xlu0 %5581, %v8027_v42  }
 0x5fb   :  { %1362 = vperm.xlu1 %5592, %v8028_v39  }
 0x5fd   :  { %5633 = vset.pattern.permute.xlu0 %v8022_v10 }
 0x5fe   :  { %1612 = vperm.xlu0 %5633, %v5697_v1  }
 0x5ff   :  { %5593 = vset.pattern.permute.xlu1 %v8022_v10 }
 0x600   :  { %1620 = vperm.xlu1 %5593, %v8026_v7  }
 0x602   :  { %1656 = vperm.xlu0 %5633, %v5752_v12  }
 0x604   :  { %1644 = vperm.xlu1 %5593, %v8028_v39  }
 0x606   :  { %1616 = vperm.xlu0 %5633, %v5702_v2  }
 0x608   :  { %5594 = vset.pattern.permute.xlu1 %v8024_v41 }
 0x609   :  { %1952 = vperm.xlu1 %5594, %v5757_v13   ;;  %v8035_v13 = vld [vmem:[#allocation17_spill] sm:$0xff] }
 0x60a   :  { %1684 = vperm.xlu0 %5633, %v5787_v19  }
 0x60d   :  { %5595 = vset.pattern.permute.xlu1 %v8023_v45 }
 0x60e   :  { %1387 = vperm.xlu1 %5595, %v8029_v9   ;;  %1708 = vperm.xlu0 %5633, %v8030_v48  }
 0x612   :  { %5596 = vset.pattern.permute.xlu1 %v8022_v10  ;;  %1648 = vperm.xlu0 %5633, %v8031_v26  }
 0x613   :  { %1664 = vperm.xlu1 %5596, %v8029_v9  }
 0x616   :  { %1628 = vperm.xlu0 %5633, %v8032_v25  }
 0x617   :  { %1704 = vperm.xlu1 %5596, %v5812_v24  }
 0x61a   :  { %1732 = vperm.xlu0 %5633, %v8033_v14  }
 0x61b   :  { %5597 = vset.pattern.permute.xlu1 %v8024_v41 }
 0x61c   :  { %1932 = vperm.xlu1 %5597, %v5732_v8   ;;  %v8034_v8 = vld [vmem:[#allocation25_spill] sm:$0xff] }
 0x61e   :  { %1752 = vperm.xlu0 %5633, %v5872_v36  }
 0x620   :  { %1972 = vperm.xlu1 %5597, %v5782_v18  }
 0x622   :  { %1716 = vperm.xlu0 %5633, %v5827_v27  }
 0x624   :  { %5598 = vset.pattern.permute.xlu1 %v8023_v45 }
 0x625   :  { %1442 = vperm.xlu1 %5598, %v8030_v48  }
 0x626   :  { %1696 = vperm.xlu0 %5633, %v5802_v22  }
 0x629   :  { %5599 = vset.pattern.permute.xlu1 %v8022_v10 }
 0x62a   :  { %1668 = vperm.xlu1 %5599, %v5767_v15   ;;  %1700 = vperm.xlu0 %5633, %v5807_v23  }
 0x62e   :  { %5600 = vset.pattern.permute.xlu1 %v8024_v41  ;;  %1760 = vperm.xlu0 %5633, %v8034_v8  }
 0x62f   :  { %1912 = vperm.xlu1 %5600, %v8026_v7  }
 0x632   :  { %1724 = vperm.xlu0 %5633, %v8035_v13  }
 0x633   :  { %1936 = vperm.xlu1 %5600, %v8028_v39  }
 0x634   :  { %v1609_v18 = vpop.permute.xlu1 %1608  ;;  %v1318_v58 = vpop.permute.xlu0 %1317 }
 0x636   :  { %1768 = vperm.xlu0 %5633, %v8036_v16  }
 0x637   :  { %5601 = vset.pattern.permute.xlu1 %v8023_v45 }
 0x638   :  { %1337 = vperm.xlu1 %5601, %v8037_v31   ;;  %v6421_v21 = vpop.permute.xlu1 %1632  ;;  %v6423_v33 = vpop.permute.xlu0 %1347 }
 0x63a   :  { %1796 = vperm.xlu0 %5633, %v8038_v60  }
 0x63c   :  { %1367 = vperm.xlu1 %5601, %v8031_v26   ;;  %v6427_v55 = vpop.permute.xlu0 %1322 }
 0x63d   :  { %v6429_v56 = vpop.permute.xlu1 %1352 }
 0x63e   :  { %5639 = vset.pattern.permute.xlu0 %v8024_v41 }
 0x63f   :  { %1924 = vperm.xlu0 %5639, %v5722_v6   ;;  %v8040_v6 = vld [vmem:[#allocation34_spill] sm:$0xff] }
 0x640   :  { %1467 = vperm.xlu1 %5601, %v8039_v62   ;;  %v6434_v3 = vpop.permute.xlu0 %1327  ;;  %v8041_v35 = vsub.s32 1, %v8040_v6  ;;  %v8042_v49 = vsub.s32 0, %v8040_v6  ;;  %v8044_v46 = vsub.s32 2, %v8040_v6 }
 0x642   :  { %v6439_v5 = vpop.permute.xlu1 %1636  ;;  %v6450_v30 = vrot.slane %v1289_v59, %v8041_v35  ;;  %v6454_v50 = vrot.slane %v1289_v59, %v8042_v49  ;;  %v6473_v37 = vrot.slane %v1289_v59, %v8044_v46  ;;  %v8054_v46 = vld [vmem:[#allocation21_spill] sm:$0xff] }
 0x643   :  { %1904 = vperm.xlu0 %5639, %v5697_v1   ;;  %v1293_v1 = vld [vmem:[%s7929_s3 + $0x20] sm:$0xff] }
 0x644   :  { %5602 = vset.pattern.permute.xlu1 %v8022_v10  ;;  %v6446_v40 = vpop.permute.xlu0 %1412  ;;  %5265 = vmatprep.subr.mxu1 %v1293_v1  ;;  %v1803_v54 = vmul.f32 %v6450_v30, %v1609_v18  ;;  %v1559_v4 = vmul.f32 %v6454_v50, %v1318_v58 }
 0x645   :  { %1624 = vperm.xlu1 %5602, %v8037_v31   ;;  %5266 = vmatpush3.msra.mxu1 %v1293_v1 }
 0x646   :  { %5267 = vmatprep.subr.mxu1 %v1292_v38  ;;  %v1851_v47 = vadd.f32 %v1803_v54, %v1559_v4  ;;  %v8051_v54 = vld [vmem:[#allocation29_spill] sm:$0xff] }
 0x647   :  { %v6460_v51 = vpop.permute.xlu1 %1377  ;;  %1948 = vperm.xlu0 %5639, %v5752_v12   ;;  %5268 = vmatpush3.msra.mxu1 %v1292_v38  ;;  %v1291_v12 = vld [vmem:[%s7929_s3 + $0x10] sm:$0xff] }
 0x648   :  { %v6466_v63 = vpop.permute.xlu0 %1437  ;;  %5269 = vmatprep.subr.mxu1 %v1291_v12 }
 0x649   :  { %8043 = vst [vmem:[#allocation6_spill] sm:$0xff] %v6466_v63  ;;  %1688 = vperm.xlu1 %5602, %v5792_v20   ;;  %5270 = vmatpush3.msra.mxu1 %v1291_v12 }
 0x64b   :  { %1908 = vperm.xlu0 %5639, %v5702_v2  }
 0x64c   :  { %v1901_v32 = vpop.permute.xlu1 %1900  ;;  %v6479_v29 = vpop.permute.xlu0 %1392 }
 0x64d   :  { %v2095_v53 = vmul.f32 %v6473_v37, %v1901_v32  ;;  %1728 = vperm.xlu1 %5602, %v8039_v62  }
 0x64f   :  { %v2143_v17 = vadd.f32 %v2095_v53, %v1851_v47  ;;  %1976 = vperm.xlu0 %5639, %v5787_v19   ;;  %v8057_v53 = vld [vmem:[#allocation16_spill] sm:$0xff] }
 0x650   :  { %v6489_v43 = vpop.permute.xlu0 %1417 }
 0x651   :  { %8045 = vst [vmem:[#allocation9_spill] sm:$0xff] %v6489_v43  ;;  %5603 = vset.pattern.permute.xlu1 %v8024_v41  ;;  %v6492_v2 = vpop.permute.xlu1 %1382  ;;  %v6495_v7 = vadd.f32 %v6486_v34, %v2143_v17 }
 0x652   :  { %1996 = vperm.xlu1 %5603, %v5812_v24   ;;  %v8046_v24 = vld [vmem:[#allocation14_spill] sm:$0xff] }
 0x653   :  { %1956 = vperm.xlu0 %5639, %v8029_v9   ;;  %v7975_v39 = vmax.f32 %v6495_v7, 0.0 }
 0x654   :  { %v6500_v18 = vpop.permute.xlu0 %1372 }
 0x655   :  { %5271 = vmatprep.mubr.msk.f32.mxu1 %vm445_vm1, %v7975_v39 }
 0x656   :  { %5604 = vset.pattern.permute.xlu1 %v8023_v45  ;;  %v6506_v19 = vpop.permute.xlu1 %1660 }
 0x657   :  { %1342 = vperm.xlu1 %5604, %v8032_v25   ;;  %2000 = vperm.xlu0 %5639, %v8030_v48   ;;  %v8047_v48 = vld [vmem:[#allocation12_spill] sm:$0xff] }
 0x658   :  { %v6510_v58 = vpop.permute.xlu0 %1497 }
 0x65b   :  { %1422 = vperm.xlu1 %5604, %v8046_v24   ;;  %v6513_v9 = vpop.permute.xlu1 %1928  ;;  %1980 = vperm.xlu0 %5639, %v5792_v20   ;;  %v8049_v20 = vld [vmem:[#allocation13_spill] sm:$0xff] }
 0x65c   :  { %v6516_v59 = vpop.permute.xlu0 %1452 }
 0x65f   :  { %1472 = vperm.xlu1 %5604, %v8033_v14   ;;  %1944 = vperm.xlu0 %5639, %v5747_v11  }
 0x660   :  { %v6520_v52 = vpop.permute.xlu1 %1357  ;;  %v6522_v6 = vpop.permute.xlu0 %1427 }
 0x663   :  { %5605 = vset.pattern.permute.xlu1 %v8022_v10  ;;  %1964 = vperm.xlu0 %5639, %v8047_v48  }
 0x664   :  { %1652 = vperm.xlu1 %5605, %v5747_v11   ;;  %v6527_v35 = vpop.permute.xlu1 %1407  ;;  %v6529_v49 = vpop.permute.xlu0 %1432 }
 0x665   :  { %8048 = vst [vmem:[#allocation11_spill] sm:$0xff] %v6527_v35 }
 0x667   :  { %1968 = vperm.xlu0 %5639, %v8049_v20  }
 0x668   :  { %1692 = vperm.xlu1 %5605, %v8046_v24   ;;  %v6533_v1 = vpop.permute.xlu0 %1457 }
 0x669   :  { %8050 = vst [vmem:[#allocation15_spill] sm:$0xff] %v6533_v1  ;;  %v6535_v38 = vpop.permute.xlu1 %1640 }
 0x66b   :  { %2068 = vperm.xlu0 %5639, %v8051_v54  }
 0x66c   :  { %5606 = vset.pattern.permute.xlu1 %v8024_v41  ;;  %v6539_v4 = vpop.permute.xlu0 %1537 }
 0x66d   :  { %8052 = vst [vmem:[#allocation10_spill] sm:$0xff] %v6539_v4  ;;  %1960 = vperm.xlu1 %5606, %v5767_v15   ;;  %v6542_v11 = vpop.permute.xlu1 %1680  ;;  %v1560_v15 = vmul.f32 %v6454_v50, %v6427_v55  ;;  %v1561_v55 = vmul.f32 %v6454_v50, %v6434_v3 }
 0x66e   :  { %8053 = vst [vmem:[#allocation8_spill] sm:$0xff] %v6542_v11 }
 0x66f   :  { %2032 = vperm.xlu0 %5639, %v8054_v46  }
 0x670   :  { %v6545_v12 = vpop.permute.xlu0 %1542 }
 0x671   :  { %8055 = vst [vmem:[#allocation19_spill] sm:$0xff] %v6545_v12  ;;  %5607 = vset.pattern.permute.xlu1 %v8023_v45 }
 0x672   :  { %1397 = vperm.xlu1 %5607, %v8047_v48   ;;  %v6549_v32 = vpop.permute.xlu1 %1332 }
 0x673   :  { %2012 = vperm.xlu0 %5639, %v5832_v28  }
 0x674   :  { %v6552_v47 = vpop.permute.xlu0 %1522 }
 0x675   :  { %8056 = vst [vmem:[#allocation25_spill] sm:$0xff] %v6552_v47 }
 0x676   :  { %1447 = vperm.xlu1 %5607, %v8057_v53   ;;  %v6555_v17 = vpop.permute.xlu1 %1362 }
 0x677   :  { %2016 = vperm.xlu0 %5639, %v8035_v13  }
 0x679   :  { %v1613_v39 = vpop.permute.xlu0 %1612 }
 0x67a   :  { %v1804_v57 = vmul.f32 %v6450_v30, %v1613_v39  ;;  %5608 = vset.pattern.permute.xlu1 %v8022_v10 }
 0x67b   :  { %1672 = vperm.xlu1 %5608, %v8047_v48   ;;  %v6563_v61 = vpop.permute.xlu1 %1620  ;;  %2080 = vperm.xlu0 %5639, %v8025_v0  }
 0x67c   :  { %v6566_v47 = vadd.f32 %v1804_v57, %v1560_v15  ;;  %v1578_v57 = vmul.f32 %v6454_v50, %v6446_v40 }
 0x67d   :  { %v6568_v4 = vpop.permute.xlu0 %1656 }
 0x67f   :  { %1712 = vperm.xlu1 %5608, %v8057_v53   ;;  %v6571_v12 = vpop.permute.xlu1 %1644  ;;  %2060 = vperm.xlu0 %5639, %v8036_v16  }
 0x681   :  { %v1617_v39 = vpop.permute.xlu0 %1616 }
 0x682   :  { %v1805_v48 = vmul.f32 %v6450_v30, %v1617_v39 }
 0x683   :  { %5609 = vset.pattern.permute.xlu1 %v8024_v41  ;;  %2088 = vperm.xlu0 %5639, %v8038_v60  }
 0x684   :  { %v6581_v15 = vadd.f32 %v1805_v48, %v1561_v55  ;;  %1916 = vperm.xlu1 %5609, %v8037_v31   ;;  %v6584_v1 = vpop.permute.xlu1 %1952 }
 0x685   :  { %v1685_v42 = vpop.permute.xlu0 %1684 }
 0x686   :  { %v1822_v16 = vmul.f32 %v6450_v30, %v1685_v42 }
 0x688   :  { %v6587_v3 = vadd.f32 %v1822_v16, %v1578_v57  ;;  %1940 = vperm.xlu1 %5609, %v8031_v26   ;;  %v8060_v16 = vld [vmem:[#allocation24_spill] sm:$0xff] }
 0x689   :  { %v6590_v39 = vpop.permute.xlu1 %1387  ;;  %v6592_v35 = vpop.permute.xlu0 %1708 }
 0x68a   :  { %8058 = vst [vmem:[#allocation17_spill] sm:$0xff] %v6590_v39 }
 0x68c   :  { %2020 = vperm.xlu1 %5609, %v8039_v62   ;;  %v1595_v62 = vmul.f32 %v6454_v50, %v6510_v58  ;;  %v1581_v58 = vmul.f32 %v6454_v50, %v6522_v6 }
 0x68d   :  { %v6595_v40 = vpop.permute.xlu0 %1648 }
 0x68e   :  { %v6597_v55 = vpop.permute.xlu1 %1664 }
 0x690   :  { %5610 = vset.pattern.permute.xlu1 %v8023_v45 }
 0x691   :  { %1402 = vperm.xlu1 %5610, %v8049_v20   ;;  %v6601_v31 = vpop.permute.xlu0 %1628 }
 0x692   :  { %v6603_v42 = vpop.permute.xlu1 %1704 }
 0x693   :  { %8059 = vst [vmem:[#allocation7_spill] sm:$0xff] %v6603_v42  ;;  %v1586_v42 = vmul.f32 %v6454_v50, %v6516_v59 }
 0x695   :  { %1502 = vperm.xlu1 %5610, %v8060_v16   ;;  %v6606_v26 = vpop.permute.xlu0 %1732 }
 0x697   :  { %v6608_v48 = vpop.permute.xlu1 %1932 }
 0x699   :  { %5611 = vset.pattern.permute.xlu1 %v8022_v10  ;;  %v1753_v57 = vpop.permute.xlu0 %1752 }
 0x69a   :  { %1676 = vperm.xlu1 %5611, %v8049_v20   ;;  %v1839_v60 = vmul.f32 %v6450_v30, %v1753_v57 }
 0x69b   :  { %v6615_v63 = vpop.permute.xlu1 %1972 }
 0x69c   :  { %8061 = vst [vmem:[#allocation18_spill] sm:$0xff] %v6615_v63  ;;  %v6619_v43 = vadd.f32 %v1839_v60, %v1595_v62  ;;  %v1582_v60 = vmul.f32 %v6454_v50, %v6529_v49 }
 0x69d   :  { %v1717_v11 = vpop.permute.xlu0 %1716 }
 0x69e   :  { %8062 = vst [vmem:[#allocation34_spill] sm:$0xff] %v6619_v43  ;;  %1756 = vperm.xlu1 %5611, %v8060_v16   ;;  %v1830_v0 = vmul.f32 %v6450_v30, %v1717_v11  ;;  %v1806_v43 = vmul.f32 %v6450_v30, %v6563_v61  ;;  %v1562_v61 = vmul.f32 %v6454_v50, %v6549_v32 }
 0x69f   :  { %v2102_v32 = vmul.f32 %v6473_v37, %v6513_v9 }
 0x6a0   :  { %v6625_v39 = vadd.f32 %v1830_v0, %v1586_v42  ;;  %v6627_v20 = vpop.permute.xlu1 %1442 }
 0x6a1   :  { %v1697_v57 = vpop.permute.xlu0 %1696 }
 0x6a2   :  { %8063 = vst [vmem:[#allocation14_spill] sm:$0xff] %v6625_v39  ;;  %5612 = vset.pattern.permute.xlu1 %v8024_v41  ;;  %v1825_v63 = vmul.f32 %v6450_v30, %v1697_v57 }
 0x6a3   :  { %1920 = vperm.xlu1 %5612, %v8032_v25  }
 0x6a4   :  { %v6634_v59 = vadd.f32 %v1825_v63, %v1581_v58  ;;  %v8068_v63 = vld [vmem:[#allocation20_spill] sm:$0xff] }
 0x6a5   :  { %v6636_v11 = vpop.permute.xlu1 %1668  ;;  %v1701_v62 = vpop.permute.xlu0 %1700 }
 0x6a6   :  { %8064 = vst [vmem:[#allocation12_spill] sm:$0xff] %v6634_v59  ;;  %v1826_v0 = vmul.f32 %v6450_v30, %v1701_v62 }
 0x6a7   :  { %1984 = vperm.xlu1 %5612, %v8046_v24  }
 0x6a8   :  { %v6640_v6 = vadd.f32 %v1826_v0, %v1582_v60  ;;  %v1809_v60 = vmul.f32 %v6450_v30, %v6421_v21  ;;  %v1815_v21 = vmul.f32 %v6450_v30, %v6568_v4  ;;  %v1810_v4 = vmul.f32 %v6450_v30, %v6439_v5 }
 0x6a9   :  { %v6642_v42 = vpop.permute.xlu0 %1760 }
 0x6aa   :  { %8065 = vst [vmem:[#allocation13_spill] sm:$0xff] %v6640_v6  ;;  %8066 = vst [vmem:[#allocation29_spill] sm:$0xff] %v6642_v42  ;;  %v1913_v39 = vpop.permute.xlu1 %1912 }
 0x6ab   :  { %2024 = vperm.xlu1 %5612, %v8033_v14   ;;  %v1565_v14 = vmul.f32 %v6454_v50, %v6423_v33 }
 0x6ad   :  { %v6645_v25 = vpop.permute.xlu0 %1724 }
 0x6ae   :  { %8067 = vst [vmem:[#allocation21_spill] sm:$0xff] %v6645_v25  ;;  %v6647_v57 = vpop.permute.xlu1 %1936 }
 0x6af   :  { %5613 = vset.pattern.permute.xlu1 %v8023_v45 }
 0x6b0   :  { %1477 = vperm.xlu1 %5613, %v8068_v63  }
 0x6b1   :  { %v6651_v49 = vpop.permute.xlu0 %1768 }
 0x6b2   :  { %8069 = vst [vmem:[#allocation16_spill] sm:$0xff] %v6651_v49  ;;  %v1857_v49 = vadd.f32 %v1809_v60, %v1565_v14  ;;  %v1571_v14 = vmul.f32 %v6454_v50, %v6460_v51 }
 0x6b3   :  { %v6653_v58 = vpop.permute.xlu1 %1337 }
 0x6b4   :  { %1527 = vperm.xlu1 %5613, %v8051_v54  }
 0x6b5   :  { %v6656_v24 = vpop.permute.xlu0 %1796 }
 0x6b6   :  { %8070 = vst [vmem:[#allocation24_spill] sm:$0xff] %v6656_v24 }
 0x6b7   :  { %v6662_v62 = vpop.permute.xlu1 %1367 }
 0x6b8   :  { %5614 = vset.pattern.permute.xlu1 %v8022_v10 }
 0x6b9   :  { %1736 = vperm.xlu1 %5614, %v8068_v63  }
 0x6ba   :  { %v1925_v0 = vpop.permute.xlu0 %1924 }
 0x6bb   :  { %v2101_v6 = vmul.f32 %v6473_v37, %v1925_v0  ;;  %v6667_v25 = vpop.permute.xlu1 %1467 }
 0x6bc   :  { %8071 = vst [vmem:[#allocation20_spill] sm:$0xff] %v6667_v25 }
 0x6bd   :  { %v2149_v59 = vadd.f32 %v2101_v6, %v1857_v49  ;;  %1776 = vperm.xlu1 %5614, %v8051_v54  }
 0x6be   :  { %v1905_v24 = vpop.permute.xlu0 %1904 }
 0x6bf   :  { %v2096_v33 = vmul.f32 %v6473_v37, %v1905_v24  ;;  %v6674_v42 = vadd.f32 %v6486_v34, %v2149_v59  ;;  %v8073_v59 = vmax.f32 %v6495_v7, 0.0  ;;  %v2098_v24 = vmul.f32 %v6473_v37, %v1913_v39 }
 0x6c0   :  { %v6678_v60 = vpop.permute.xlu1 %1624  ;;  %v1566_v7 = vmul.f32 %v6454_v50, %v6429_v56 }
 0x6c1   :  { %8072 = vst [vmem:[#allocation36_spill] sm:$0xff] %v6674_v42  ;;  %v2144_v6 = vadd.f32 %v2096_v33, %v6566_v47  ;;  %5615 = vset.pattern.permute.xlu1 %v8024_v41  ;;  %v7980_v54 = vmax.f32 %v6674_v42, 0.0  ;;  %v2291_v49 = vsel %vm445_vm1, %v8073_v59, -inf  ;;  %v1863_v47 = vadd.f32 %v1815_v21, %v1571_v14 }
 0x6c2   :  { %2004 = vperm.xlu1 %5615, %v8057_v53   ;;  %v1949_v51 = vpop.permute.xlu0 %1948  ;;  %v1854_v59 = vadd.f32 %v1806_v43, %v1562_v61  ;;  %v1858_v14 = vadd.f32 %v1810_v4, %v1566_v7  ;;  %v1572_v43 = vmul.f32 %v6454_v50, %v6492_v2  ;;  %v2108_v4 = vmul.f32 %v6473_v37, %v6584_v1 }
 0x6c3   :  { %v2107_v0 = vmul.f32 %v6473_v37, %v1949_v51  ;;  %v2196_v33 = vadd.f32 %v6486_v34, %v2144_v6  ;;  %v2292_v5 = vsel %vm445_vm1, %v7980_v54, -inf  ;;  %v1816_v6 = vmul.f32 %v6450_v30, %v6506_v19 }
 0x6c4   :  { %v6703_v39 = vpop.permute.xlu1 %1688  ;;  %v2293_v53 = vmax.f32 %v2291_v49, %v2292_v5  ;;  %v2146_v51 = vadd.f32 %v2098_v24, %v1854_v59  ;;  %v2150_v9 = vadd.f32 %v2102_v32, %v1858_v14  ;;  %v1828_v59 = vmul.f32 %v6450_v30, %v6592_v35 }
 0x6c5   :  { %v2155_v25 = vadd.f32 %v2107_v0, %v1863_v47  ;;  %v2244_v21 = vmax.f32 %v2196_v33, 0.0  ;;  %v1864_v61 = vadd.f32 %v1816_v6, %v1572_v43  ;;  %v1584_v14 = vmul.f32 %v6454_v50, %v6627_v20  ;;  %v8074_v6 = vld [vmem:[#allocation30_spill] sm:$0xff] }
 0x6c6   :  { %2044 = vperm.xlu1 %5615, %v5872_v36   ;;  %v1909_v54 = vpop.permute.xlu0 %1908 }
 0x6c7   :  { %v2097_v42 = vmul.f32 %v6473_v37, %v1909_v54  ;;  %5272 = vmatmul.mubr.msk.f32.vlgmr.msra.gmra.mxu1 %vm445_vm1, %v2244_v21  ;;  %v6711_v56 = vadd.f32 %v6486_v34, %v2155_v25  ;;  %v6723_v25 = vadd.f32 %v6486_v34, %v2146_v51  ;;  %v2306_v20 = vsel %vm445_vm1, %v2244_v21, -inf }
 0x6c8   :  { %v6717_v49 = vpop.permute.xlu1 %1728 }
 0x6c9   :  { %v2145_v19 = vadd.f32 %v2097_v42, %v6581_v15  ;;  %v7986_v36 = vmax.f32 %v6711_v56, 0.0  ;;  %v2156_v15 = vadd.f32 %v2108_v4, %v1864_v61  ;;  %v6734_v42 = vadd.f32 %v6486_v34, %v2150_v9 }
 0x6ca   :  { %5616 = vset.pattern.permute.xlu1 %v8023_v45  ;;  %v1977_v54 = vpop.permute.xlu0 %1976  ;;  %v7988_v32 = vmax.f32 %v6723_v25, 0.0  ;;  %v1876_v9 = vadd.f32 %v1828_v59, %v1584_v14 }
 0x6cb   :  { %v2114_v24 = vmul.f32 %v6473_v37, %v1977_v54  ;;  %1482 = vperm.xlu1 %5616, %v8054_v46   ;;  %v6728_v2 = vadd.f32 %v6486_v34, %v2145_v19  ;;  %v2294_v1 = vsel %vm445_vm1, %v7986_v36, -inf }
 0x6cc   :  { %v6736_v47 = vmax.f32 %v2293_v53, %v2294_v1  ;;  %v6758_v53 = vadd.f32 %v6486_v34, %v2156_v15 }
 0x6cd   :  { %v2162_v0 = vadd.f32 %v2114_v24, %v6587_v3  ;;  %v6739_v33 = vpop.permute.xlu1 %1996  ;;  %v7984_v5 = vmax.f32 %v6728_v2, 0.0  ;;  %v7987_v3 = vmax.f32 %v6734_v42, 0.0 }
 0x6ce   :  { %v6742_v7 = vpop.permute.xlu0 %1956  ;;  %v7985_v61 = vmax.f32 %v6758_v53, 0.0 }
 0x6cf   :  { %1532 = vperm.xlu1 %5616, %v8074_v6   ;;  %5274 = vmatprep.mubr.msk.f32.mxu1 %vm445_vm1, %v7984_v5  ;;  %v6761_v35 = vadd.f32 %v6486_v34, %v2162_v0  ;;  %v2307_v19 = vsel %vm445_vm1, %v7987_v3, -inf }
 0x6d0   :  { %5275 = vmatmul.mubr.msk.f32.gmra.mxu1 %vm445_vm1, %v7988_v32  ;;  %v2308_v21 = vmax.f32 %v2306_v20, %v2307_v19  ;;  %v2309_v15 = vsel %vm445_vm1, %v7985_v61, -inf }
 0x6d1   :  { %v7983_v54 = vmax.f32 %v6761_v35, 0.0 }
 0x6d2   :  { %v6764_v51 = vpop.permute.xlu1 %1342  ;;  %v2001_v43 = vpop.permute.xlu0 %2000  ;;  %v2310_v59 = vmax.f32 %v2308_v21, %v2309_v15 }
 0x6d3   :  { %v2120_v4 = vmul.f32 %v6473_v37, %v2001_v43  ;;  %5617 = vset.pattern.permute.xlu1 %v8022_v10 }
 0x6d4   :  { %1740 = vperm.xlu1 %5617, %v8054_v46   ;;  %v2311_v46 = vsel %vm445_vm1, %v7983_v54, -inf  ;;  %v8076_v54 = vld [vmem:[#allocation26_spill] sm:$0xff] }
 0x6d5   :  { %v2168_v24 = vadd.f32 %v2120_v4, %v1876_v9  ;;  %v2312_v43 = vmax.f32 %v2310_v59, %v2311_v46 }
 0x6d6   :  { %v6774_v1 = vpop.permute.xlu1 %1422 }
 0x6d7   :  { %v6784_v0 = vadd.f32 %v6486_v34, %v2168_v24 }
 0x6d8   :  { %1780 = vperm.xlu1 %5617, %v8074_v6  }
 0x6d9   :  { %8075 = vst [vmem:[#allocation30_spill] sm:$0xff] %v6784_v0  ;;  %v7982_v20 = vmax.f32 %v6784_v0, 0.0 }
 0x6da   :  { %v6786_v14 = vpop.permute.xlu1 %1472 }
 0x6db   :  { %v2313_v9 = vsel %vm445_vm1, %v7982_v20, -inf }
 0x6dc   :  { %5618 = vset.pattern.permute.xlu1 %v8024_v41  ;;  %v6794_v4 = vmax.f32 %v2312_v43, %v2313_v9 }
 0x6dd   :  { %2008 = vperm.xlu1 %5618, %v5827_v27  }
 0x6df   :  { %v6796_v19 = vpop.permute.xlu1 %1652 }
 0x6e1   :  { %2048 = vperm.xlu1 %5618, %v8060_v16   ;;  %v6811_v16 = vpop.permute.xlu0 %1980 }
 0x6e3   :  { %v6799_v24 = vpop.permute.xlu1 %1692 }
 0x6e5   :  { %5619 = vset.pattern.permute.xlu1 %v8023_v45  ;;  %v6814_v59 = vpop.permute.xlu0 %1944 }
 0x6e6   :  { %1507 = vperm.xlu1 %5619, %v8034_v8  }
 0x6e8   :  { %v6803_v21 = vpop.permute.xlu1 %1960 }
 0x6e9   :  { %v1965_v9 = vpop.permute.xlu0 %1964 }
 0x6ea   :  { %5620 = vset.pattern.permute.xlu1 %v8022_v10  ;;  %v2111_v61 = vmul.f32 %v6473_v37, %v1965_v9 }
 0x6eb   :  { %1720 = vperm.xlu1 %5620, %v5832_v28  }
 0x6ed   :  { %v1398_v15 = vpop.permute.xlu1 %1397 }
 0x6ee   :  { %v1575_v20 = vmul.f32 %v6454_v50, %v1398_v15 }
 0x6ef   :  { %5621 = vset.pattern.permute.xlu1 %v8024_v41 }
 0x6f0   :  { %1988 = vperm.xlu1 %5621, %v5802_v22   ;;  %v1807_v22 = vmul.f32 %v6450_v30, %v6678_v60 }
 0x6f1   :  { %v6809_v27 = vpop.permute.xlu1 %1447 }
 0x6f4   :  { %2028 = vperm.xlu1 %5621, %v8068_v63   ;;  %v1563_v63 = vmul.f32 %v6454_v50, %v6653_v58 }
 0x6f6   :  { %v1673_v46 = vpop.permute.xlu1 %1672  ;;  %v1855_v3 = vadd.f32 %v1807_v22, %v1563_v63 }
 0x6f7   :  { %v1819_v28 = vmul.f32 %v6450_v30, %v1673_v46  ;;  %v1569_v46 = vmul.f32 %v6454_v50, %v6662_v62 }
 0x6f8   :  { %5622 = vset.pattern.permute.xlu1 %v8023_v45 }
 0x6f9   :  { %1462 = vperm.xlu1 %5622, %v8035_v13   ;;  %v1867_v5 = vadd.f32 %v1819_v28, %v1575_v20  ;;  %v1813_v13 = vmul.f32 %v6450_v30, %v6595_v40 }
 0x6fa   :  { %v6819_v43 = vpop.permute.xlu1 %1712 }
 0x6fb   :  { %v2159_v15 = vadd.f32 %v2111_v61, %v1867_v5  ;;  %v1861_v20 = vadd.f32 %v1813_v13, %v1569_v46  ;;  %v1296_v46 = vld [vmem:[%s7929_s3 + $0x38] sm:$0xff] }
 0x6fd   :  { %1512 = vperm.xlu1 %5622, %v8076_v54   ;;  %v6839_v62 = vadd.f32 %v6486_v34, %v2159_v15  ;;  %v8077_v15 = vld [vmem:[#allocation22_spill] sm:$0xff] }
 0x6ff   :  { %v1917_v36 = vpop.permute.xlu1 %1916  ;;  %v7990_v61 = vmax.f32 %v6839_v62, 0.0 }
 0x700   :  { %v2099_v60 = vmul.f32 %v6473_v37, %v1917_v36 }
 0x701   :  { %5623 = vset.pattern.permute.xlu1 %v8022_v10 }
 0x702   :  { %v2147_v32 = vadd.f32 %v2099_v60, %v1855_v3  ;;  %1764 = vperm.xlu1 %5623, %v8076_v54  }
 0x703   :  { %v1941_v58 = vpop.permute.xlu1 %1940 }
 0x704   :  { %v2105_v28 = vmul.f32 %v6473_v37, %v1941_v58  ;;  %v2199_v9 = vadd.f32 %v6486_v34, %v2147_v32  ;;  %v1298_v32 = vld [vmem:[%s7929_s3 + $0x48] sm:$0xff] }
 0x705   :  { %5246 = vmatprep.subr.mxu0 %v1298_v32 }
 0x706   :  { %v2153_v0 = vadd.f32 %v2105_v28, %v1861_v20  ;;  %5624 = vset.pattern.permute.xlu1 %v8024_v41  ;;  %v2247_v40 = vmax.f32 %v2199_v9, 0.0  ;;  %5247 = vmatpush3.msra.mxu0 %v1298_v32  ;;  %v1295_v20 = vld [vmem:[%s7929_s3 + $0x30] sm:$0xff]  ;;  %v1570_v28 = vmul.f32 %v6454_v50, %v6500_v18  ;;  %v1814_v9 = vmul.f32 %v6450_v30, %v6796_v19 }
 0x707   :  { %1992 = vperm.xlu1 %5624, %v5807_v23   ;;  %v6842_v36 = vpop.permute.xlu1 %2020  ;;  %v1297_v23 = vld [vmem:[%s7929_s3 + $0x40] sm:$0xff]  ;;  %v1574_v32 = vmul.f32 %v6454_v50, %v6479_v29  ;;  %v2104_v18 = vmul.f32 %v6473_v37, %v6647_v57 }
 0x708   :  { %5277 = vmatprep.mubr.msk.f32.mxu1 %vm445_vm1, %v2247_v40  ;;  %v6846_v5 = vadd.f32 %v6486_v34, %v2153_v0  ;;  %v2351_v22 = vsel %vm445_vm1, %v2247_v40, -inf  ;;  %5248 = vmatprep.subr.mxu0 %v1297_v23  ;;  %v1812_v40 = vmul.f32 %v6450_v30, %v6571_v12  ;;  %v2106_v12 = vmul.f32 %v6473_v37, %v6814_v59 }
 0x709   :  { %5249 = vmatpush3.msra.mxu0 %v1297_v23  ;;  %v1568_v23 = vmul.f32 %v6454_v50, %v6555_v17  ;;  %v2110_v17 = vmul.f32 %v6473_v37, %v6803_v21  ;;  %v1564_v21 = vmul.f32 %v6454_v50, %v6764_v51 }
 0x70a   :  { %v2253_v3 = vmax.f32 %v6846_v5, 0.0  ;;  %5250 = vmatprep.subr.mxu0 %v1296_v46  ;;  %v2115_v5 = vmul.f32 %v6473_v37, %v6811_v16 }
 0x70b   :  { %2072 = vperm.xlu1 %5624, %v8074_v6   ;;  %v2354_v6 = vsel %vm445_vm1, %v7990_v61, -inf  ;;  %5251 = vmatpush3.msra.mxu0 %v1296_v46  ;;  %v1969_v46 = vpop.permute.xlu0 %1968  ;;  %v1860_v29 = vadd.f32 %v1812_v40, %v1568_v23  ;;  %v1808_v40 = vmul.f32 %v6450_v30, %v6601_v31  ;;  %v2103_v31 = vmul.f32 %v6473_v37, %v6608_v48 }
 0x70c   :  { %v1403_v0 = vpop.permute.xlu1 %1402  ;;  %v2352_v63 = vsel %vm445_vm1, %v2253_v3, -inf  ;;  %5252 = vmatprep.subr.mxu0 %v1295_v20  ;;  %v2112_v57 = vmul.f32 %v6473_v37, %v1969_v46 }
 0x70d   :  { %v2353_v13 = vmax.f32 %v2351_v22, %v2352_v63  ;;  %5253 = vmatpush3.msra.mxu0 %v1295_v20  ;;  %v1818_v22 = vmul.f32 %v6450_v30, %v6636_v11  ;;  %v1862_v63 = vadd.f32 %v1814_v9, %v1570_v28  ;;  %v2152_v20 = vadd.f32 %v2104_v18, %v1860_v29 }
 0x70f   :  { %5625 = vset.pattern.permute.xlu1 %v8023_v45  ;;  %v6868_v60 = vmax.f32 %v2353_v13, %v2354_v6  ;;  %v1576_v6 = vmul.f32 %v6454_v50, %v1403_v0  ;;  %v1866_v11 = vadd.f32 %v1818_v22, %v1574_v32  ;;  %v2154_v9 = vadd.f32 %v2106_v12, %v1862_v63 }
 0x710   :  { %1487 = vperm.xlu1 %5625, %v8077_v15   ;;  %v1503_v58 = vpop.permute.xlu1 %1502  ;;  %v1811_v32 = vmul.f32 %v6450_v30, %v6535_v38  ;;  %v6910_v18 = vadd.f32 %v6486_v34, %v2152_v20  ;;  %v1856_v38 = vadd.f32 %v1808_v40, %v1564_v21  ;;  %v8079_v21 = vmax.f32 %v6723_v25, 0.0 }
 0x711   :  { %v1596_v59 = vmul.f32 %v6454_v50, %v1503_v58  ;;  %v2158_v0 = vadd.f32 %v2110_v17, %v1866_v11  ;;  %v1567_v58 = vmul.f32 %v6454_v50, %v6520_v52  ;;  %v6918_v63 = vadd.f32 %v6486_v34, %v2154_v9 }
 0x712   :  { %v1580_v52 = vmul.f32 %v6454_v50, %v6774_v1  ;;  %v1834_v17 = vmul.f32 %v6450_v30, %v6606_v26 }
 0x713   :  { %v1859_v46 = vadd.f32 %v1811_v32, %v1567_v58  ;;  %v2254_v20 = vmax.f32 %v6918_v63, 0.0 }
 0x714   :  { %5626 = vset.pattern.permute.xlu1 %v8022_v10 }
 0x715   :  { %1744 = vperm.xlu1 %5626, %v8077_v15   ;;  %v1677_v19 = vpop.permute.xlu1 %1676  ;;  %v2367_v58 = vsel %vm445_vm1, %v2254_v20, -inf }
 0x716   :  { %v1820_v13 = vmul.f32 %v6450_v30, %v1677_v19 }
 0x718   :  { %v1868_v61 = vadd.f32 %v1820_v13, %v1576_v6  ;;  %v6924_v13 = vadd.f32 %v6486_v34, %v2158_v0  ;;  %v2151_v6 = vadd.f32 %v2103_v31, %v1859_v46  ;;  %v2336_v0 = vsel %vm445_vm1, %v8079_v21, -inf }
 0x719   :  { %1784 = vperm.xlu1 %5626, %v5912_v44   ;;  %v1757_v28 = vpop.permute.xlu1 %1756 }
 0x71a   :  { %v1840_v19 = vmul.f32 %v6450_v30, %v1757_v28  ;;  %v2160_v22 = vadd.f32 %v2112_v57, %v1868_v61  ;;  %v1824_v61 = vmul.f32 %v6450_v30, %v6799_v24  ;;  %v1590_v24 = vmul.f32 %v6454_v50, %v6786_v14  ;;  %v8078_v28 = vld [vmem:[#allocation23_spill] sm:$0xff] }
 0x71c   :  { %v6906_v23 = vadd.f32 %v1840_v19, %v1596_v59  ;;  %v6930_v29 = vadd.f32 %v6486_v34, %v2160_v22  ;;  %v1872_v57 = vadd.f32 %v1824_v61, %v1580_v52  ;;  %v2258_v59 = vmax.f32 %v6924_v13, 0.0  ;;  %v8080_v61 = vld [vmem:[#allocation36_spill] sm:$0xff] }
 0x71d   :  { %5627 = vset.pattern.permute.xlu1 %v8024_v41  ;;  %v1882_v32 = vadd.f32 %v1834_v17, %v1590_v24 }
 0x71e   :  { %2052 = vperm.xlu1 %5627, %v8034_v8   ;;  %v1921_v51 = vpop.permute.xlu1 %1920  ;;  %v2252_v8 = vmax.f32 %v6910_v18, 0.0  ;;  %v2260_v14 = vmax.f32 %v6930_v29, 0.0  ;;  %v6948_v18 = vadd.f32 %v6486_v34, %v2151_v6  ;;  %v2339_v25 = vsel %vm445_vm1, %v2258_v59, -inf }
 0x71f   :  { %v2100_v12 = vmul.f32 %v6473_v37, %v1921_v51 }
 0x720   :  { %v2337_v40 = vsel %vm445_vm1, %v2252_v8, -inf  ;;  %v2369_v24 = vsel %vm445_vm1, %v2260_v14, -inf }
 0x721   :  { %v2148_v48 = vadd.f32 %v2100_v12, %v1856_v38  ;;  %v1817_v38 = vmul.f32 %v6450_v30, %v6597_v55  ;;  %v8081_v12 = vmax.f32 %v8080_v61, 0.0  ;;  %v2338_v46 = vmax.f32 %v2336_v0, %v2337_v40  ;;  %v8084_v0 = vld [vmem:[#allocation31_spill] sm:$0xff] }
 0x722   :  { %5628 = vset.pattern.permute.xlu1 %v8023_v45  ;;  %v1985_v11 = vpop.permute.xlu1 %1984  ;;  %v2109_v55 = vmul.f32 %v6473_v37, %v6742_v7  ;;  %v8083_v40 = vmax.f32 %v6734_v42, 0.0 }
 0x723   :  { %v2116_v1 = vmul.f32 %v6473_v37, %v1985_v11  ;;  %1492 = vperm.xlu1 %5628, %v8078_v28   ;;  %v2200_v9 = vadd.f32 %v6486_v34, %v2148_v48  ;;  %v8082_v48 = vld [vmem:[#allocation17_spill] sm:$0xff] }
 0x724   :  { %v1573_v17 = vmul.f32 %v6454_v50, %v8082_v48 }
 0x725   :  { %v2164_v19 = vadd.f32 %v2116_v1, %v1872_v57  ;;  %v2248_v26 = vmax.f32 %v2200_v9, 0.0  ;;  %v2251_v57 = vmax.f32 %v6948_v18, 0.0  ;;  %v6976_v1 = vmax.f32 %v2338_v46, %v2339_v25 }
 0x726   :  { %v2025_v22 = vpop.permute.xlu1 %2024  ;;  %v1865_v7 = vadd.f32 %v1817_v38, %v1573_v17  ;;  %v8086_v38 = vld [vmem:[#allocation9_spill] sm:$0xff]  ;;  %v8088_v17 = vld [vmem:[#allocation11_spill] sm:$0xff] }
 0x727   :  { %v2126_v31 = vmul.f32 %v6473_v37, %v2025_v22  ;;  %5629 = vset.pattern.permute.xlu1 %v8022_v10  ;;  %v2366_v51 = vsel %vm445_vm1, %v2248_v26, -inf  ;;  %5278 = vmatmul.mubr.msk.f32.gmra.mxu1 %vm445_vm1, %v2248_v26  ;;  %v6959_v63 = vadd.f32 %v6486_v34, %v2164_v19  ;;  %v1579_v61 = vmul.f32 %v6454_v50, %v8086_v38 }
 0x728   :  { %1748 = vperm.xlu1 %5629, %v8078_v28   ;;  %5280 = vmatprep.mubr.msk.f32.mxu1 %vm445_vm1, %v8081_v12  ;;  %v2368_v52 = vmax.f32 %v2366_v51, %v2367_v58  ;;  %v2157_v42 = vadd.f32 %v2109_v55, %v1865_v7  ;;  %v8085_v58 = vld [vmem:[#allocation8_spill] sm:$0xff]  ;;  %v1823_v12 = vmul.f32 %v6450_v30, %v6703_v39  ;;  %v8090_v55 = vld [vmem:[#allocation18_spill] sm:$0xff] }
 0x729   :  { %v2174_v6 = vadd.f32 %v2126_v31, %v1882_v32  ;;  %v2264_v11 = vmax.f32 %v6959_v63, 0.0  ;;  %v1821_v31 = vmul.f32 %v6450_v30, %v8085_v58  ;;  %v2113_v39 = vmul.f32 %v6473_v37, %v8090_v55  ;;  %v2069_v55 = vpop.permute.xlu0 %2068 }
 0x72a   :  { %v6978_v9 = vmax.f32 %v2368_v52, %v2369_v24  ;;  %v8087_v52 = vld [vmem:[#allocation6_spill] sm:$0xff]  ;;  %v1871_v7 = vadd.f32 %v1823_v12, %v1579_v61  ;;  %v2119_v58 = vmul.f32 %v6473_v37, %v6739_v33  ;;  %v2125_v33 = vmul.f32 %v6473_v37, %v6842_v36  ;;  %v8093_v61 = vld [vmem:[#allocation27_spill] sm:$0xff] }
 0x72b   :  { %v6981_v19 = vadd.f32 %v6486_v34, %v2174_v6  ;;  %v1478_v26 = vpop.permute.xlu1 %1477  ;;  %5281 = vmatmul.mubr.msk.f32.gmra.mxu1 %vm445_vm1, %v8083_v40  ;;  %v6989_v21 = vsel %vm445_vm1, %v2264_v11, -inf  ;;  %v1583_v48 = vmul.f32 %v6454_v50, %v8087_v52  ;;  %v8089_v6 = vld [vmem:[#allocation7_spill] sm:$0xff]  ;;  %v8091_v52 = vmax.f32 %v6711_v56, 0.0 }
 0x72c   :  { %1788 = vperm.xlu1 %5629, %v8084_v0   ;;  %5283 = vmatprep.mubr.msk.f32.mxu1 %vm445_vm1, %v2251_v57  ;;  %v2342_v32 = vmax.f32 %v6976_v1, %v6989_v21  ;;  %v1827_v24 = vmul.f32 %v6450_v30, %v8089_v6  ;;  %v1833_v0 = vmul.f32 %v6450_v30, %v6717_v49 }
 0x72d   :  { %v2274_v22 = vmax.f32 %v6981_v19, 0.0  ;;  %v1591_v16 = vmul.f32 %v6454_v50, %v1478_v26  ;;  %v2163_v49 = vadd.f32 %v2115_v5, %v1871_v7  ;;  %v1829_v36 = vmul.f32 %v6450_v30, %v6819_v43 }
 0x72e   :  { %v1585_v7 = vmul.f32 %v6454_v50, %v6809_v27 }
 0x72f   :  { %v7003_v51 = vsel %vm445_vm1, %v2274_v22, -inf  ;;  %v1528_v25 = vpop.permute.xlu1 %1527  ;;  %5284 = vmatmul.mubr.msk.f32.gmra.mxu1 %vm445_vm1, %v2252_v8  ;;  %v1577_v8 = vmul.f32 %v6454_v50, %v8088_v17 }
 0x730   :  { %5630 = vset.pattern.permute.xlu1 %v8024_v41  ;;  %5286 = vmatprep.mubr.msk.f32.mxu1 %vm445_vm1, %v2253_v3  ;;  %v2316_v46 = vmax.f32 %v6794_v4, %v7003_v51  ;;  %v2209_v3 = vadd.f32 %v6486_v34, %v2157_v42 }
 0x731   :  { %2056 = vperm.xlu1 %5630, %v8076_v54   ;;  %v1869_v40 = vadd.f32 %v1821_v31, %v1577_v8  ;;  %v1875_v54 = vadd.f32 %v1827_v24, %v1583_v48  ;;  %v8094_v48 = vmax.f32 %v6758_v53, 0.0  ;;  %v2215_v53 = vadd.f32 %v6486_v34, %v2163_v49 }
 0x732   :  { %v2257_v56 = vmax.f32 %v2209_v3, 0.0  ;;  %v1601_v3 = vmul.f32 %v6454_v50, %v1528_v25  ;;  %v8095_v25 = vmax.f32 %v6839_v62, 0.0 }
 0x733   :  { %5287 = vmatmul.mubr.msk.f32.gmra.mxu1 %vm445_vm1, %v2254_v20  ;;  %v2161_v17 = vadd.f32 %v2113_v39, %v1869_v40  ;;  %v8092_v20 = vld [vmem:[#allocation20_spill] sm:$0xff]  ;;  %v2167_v8 = vadd.f32 %v2119_v58, %v1875_v54  ;;  %v8096_v58 = vmax.f32 %v6728_v2, 0.0  ;;  %v2263_v27 = vmax.f32 %v2215_v53, 0.0 }
 0x734   :  { %v1737_v38 = vpop.permute.xlu1 %1736  ;;  %5289 = vmatprep.mubr.msk.f32.mxu1 %vm445_vm1, %v8091_v52  ;;  %v1589_v31 = vmul.f32 %v6454_v50, %v8092_v20  ;;  %v2324_v62 = vsel %vm445_vm1, %v2257_v56, -inf }
 0x735   :  { %v1835_v42 = vmul.f32 %v6450_v30, %v1737_v38  ;;  %5631 = vset.pattern.permute.xlu1 %v8023_v45  ;;  %v2213_v39 = vadd.f32 %v6486_v34, %v2161_v17  ;;  %v7062_v40 = vadd.f32 %v6486_v34, %v2167_v8  ;;  %v2322_v17 = vsel %vm445_vm1, %v2251_v57, -inf }
 0x736   :  { %1517 = vperm.xlu1 %5631, %v8093_v61   ;;  %v1881_v26 = vadd.f32 %v1833_v0, %v1589_v31  ;;  %v2137_v0 = vmul.f32 %v6473_v37, %v2069_v55  ;;  %v8098_v61 = vld [vmem:[#allocation34_spill] sm:$0xff] }
 0x737   :  { %v7044_v12 = vadd.f32 %v1835_v42, %v1591_v16  ;;  %5290 = vmatmul.mubr.msk.f32.gmra.mxu1 %vm445_vm1, %v8094_v48  ;;  %v2261_v38 = vmax.f32 %v2213_v39, 0.0  ;;  %v2267_v2 = vmax.f32 %v7062_v40, 0.0  ;;  %v8099_v48 = vld [vmem:[#allocation28_spill] sm:$0xff] }
 0x738   :  { %v1777_v6 = vpop.permute.xlu1 %1776  ;;  %5292 = vmatprep.mubr.msk.f32.mxu1 %vm445_vm1, %v2257_v56  ;;  %v2173_v5 = vadd.f32 %v2125_v33, %v1881_v26  ;;  %v8097_v33 = vmax.f32 %v6761_v35, 0.0 }
 0x739   :  { %v1845_v24 = vmul.f32 %v6450_v30, %v1777_v6  ;;  %v2296_v49 = vsel %vm445_vm1, %v2261_v38, -inf  ;;  %v2298_v8 = vsel %vm445_vm1, %v2267_v2, -inf }
 0x73a   :  { %5632 = vset.pattern.permute.xlu1 %v8024_v41  ;;  %v7074_v52 = vadd.f32 %v6486_v34, %v2173_v5 }
 0x73b   :  { %2036 = vperm.xlu1 %5632, %v8077_v15   ;;  %5293 = vmatmul.mubr.msk.f32.gmra.mxu1 %vm445_vm1, %v2258_v59  ;;  %v1893_v43 = vadd.f32 %v1845_v24, %v1601_v3  ;;  %v2321_v15 = vsel %vm445_vm1, %v8096_v58, -inf  ;;  %v1877_v59 = vadd.f32 %v1829_v36, %v1585_v7  ;;  %v2297_v24 = vmax.f32 %v6736_v47, %v2296_v49  ;;  %v8100_v58 = vld [vmem:[#allocation32_spill] sm:$0xff] }
 0x73c   :  { %5295 = vmatprep.mubr.msk.f32.mxu1 %vm445_vm1, %v8095_v25  ;;  %v2323_v20 = vmax.f32 %v2321_v15, %v2322_v17  ;;  %v2273_v18 = vmax.f32 %v7074_v52, 0.0 }
 0x73d   :  { %v2005_v13 = vpop.permute.xlu1 %2004  ;;  %v2185_v16 = vadd.f32 %v2137_v0, %v1893_v43  ;;  %v2299_v3 = vmax.f32 %v2297_v24, %v2298_v8 }
 0x73e   :  { %v2121_v54 = vmul.f32 %v6473_v37, %v2005_v13  ;;  %v2300_v36 = vsel %vm445_vm1, %v2273_v18, -inf }
 0x73f   :  { %2076 = vperm.xlu1 %5632, %v5912_v44   ;;  %5296 = vmatmul.mubr.msk.f32.gmra.mxu1 %vm445_vm1, %v2260_v14  ;;  %v2326_v44 = vsel %vm445_vm1, %v2263_v27, -inf  ;;  %v2325_v14 = vmax.f32 %v2323_v20, %v2324_v62  ;;  %v7102_v26 = vadd.f32 %v6486_v34, %v2185_v16  ;;  %v2301_v7 = vmax.f32 %v2299_v3, %v2300_v36  ;;  %v8101_v62 = vld [vmem:[#allocation33_spill] sm:$0xff]  ;;  %v8102_v20 = vld [vmem:[#allocation14_spill] sm:$0xff]  ;;  %v8104_v3 = vld [vmem:[#allocation15_spill] sm:$0xff] }
 0x740   :  { %v2169_v42 = vadd.f32 %v2121_v54, %v1877_v59  ;;  %5298 = vmatprep.mubr.msk.f32.mxu1 %vm445_vm1, %v2261_v38  ;;  %v2033_v38 = vpop.permute.xlu0 %2032 }
 0x741   :  { %v2045_v31 = vpop.permute.xlu1 %2044  ;;  %v2327_v35 = vmax.f32 %v2325_v14, %v2326_v44  ;;  %v2285_v47 = vmax.f32 %v7102_v26, 0.0  ;;  %v2128_v54 = vmul.f32 %v6473_v37, %v2033_v38 }
 0x742   :  { %v2131_v57 = vmul.f32 %v6473_v37, %v2045_v31  ;;  %v7091_v29 = vadd.f32 %v6486_v34, %v2169_v42 }
 0x743   :  { %5634 = vset.pattern.permute.xlu1 %v8022_v10  ;;  %5299 = vmatmul.mubr.msk.f32.gmra.mxu1 %vm445_vm1, %v8097_v33 }
 0x744   :  { %v2179_v56 = vadd.f32 %v2131_v57, %v8098_v61  ;;  %1772 = vperm.xlu1 %5634, %v8099_v48   ;;  %5301 = vmatprep.mubr.msk.f32.mxu1 %vm445_vm1, %v2263_v27  ;;  %v2269_v6 = vmax.f32 %v7091_v29, 0.0  ;;  %v7150_v57 = vld [vmem:[%s7929_s3 + $0x8] ss:$0 sm:$0xff] }
 0x746   :  { %v7110_v55 = vadd.f32 %v6486_v34, %v2179_v56  ;;  %v1483_v39 = vpop.permute.xlu1 %1482  ;;  %v2328_v5 = vsel %vm445_vm1, %v2269_v6, -inf  ;;  %v8103_v56 = vld [vmem:[#allocation29_spill] sm:$0xff] }
 0x747   :  { %5302 = vmatmul.mubr.msk.f32.gmra.mxu1 %vm445_vm1, %v2264_v11  ;;  %v7121_v53 = vmax.f32 %v2327_v35, %v2328_v5  ;;  %v2304_v11 = vsel %vm445_vm1, %v2285_v47, -inf }
 0x748   :  { %5635 = vset.pattern.permute.xlu1 %v8024_v41  ;;  %v2279_v34 = vmax.f32 %v7110_v55, 0.0  ;;  %v1303_v55 = vld [vmem:[%s7929_s3 + $0x70] sm:$0xff] }
 0x749   :  { %2040 = vperm.xlu1 %5635, %v8078_v28   ;;  %v1592_v28 = vmul.f32 %v6454_v50, %v1483_v39  ;;  %v2013_v39 = vpop.permute.xlu0 %2012  ;;  %5343 = vmatprep.subr.mxu0 %v1303_v55 }
 0x74a   :  { %v7127_v43 = vpop.permute.xlu1 %1532  ;;  %v2302_v63 = vsel %vm445_vm1, %v2279_v34, -inf  ;;  %v2123_v1 = vmul.f32 %v6473_v37, %v2013_v39 }
 0x74b   :  { %v2303_v0 = vmax.f32 %v2301_v7, %v2302_v63  ;;  %v1587_v7 = vmul.f32 %v6454_v50, %v8104_v3 }
 0x74d   :  { %5636 = vset.pattern.permute.xlu1 %v8023_v45  ;;  %v2305_v25 = vmax.f32 %v2303_v0, %v2304_v11  ;;  %v2017_v39 = vpop.permute.xlu0 %2016 }
 0x74e   :  { %1547 = vperm.xlu1 %5636, %v8100_v58  }
 0x74f   :  { %v1741_v15 = vpop.permute.xlu1 %1740  ;;  %5254 = vmatprep.mubr.msk.f32.mxu0 %vm445_vm1, %v2305_v25  ;;  %v8105_v25 = vld [vmem:[#allocation12_spill] sm:$0xff] }
 0x750   :  { %v1836_v13 = vmul.f32 %v6450_v30, %v1741_v15 }
 0x752   :  { %v1884_v59 = vadd.f32 %v1836_v13, %v1592_v28  ;;  %5637 = vset.pattern.permute.xlu1 %v8022_v10 }
 0x753   :  { %1792 = vperm.xlu1 %5637, %v8100_v58   ;;  %v1781_v27 = vpop.permute.xlu1 %1780 }
 0x754   :  { %v2176_v17 = vadd.f32 %v2128_v54, %v1884_v59 }
 0x756   :  { %v7153_v10 = vadd.f32 %v7150_v57, %v2176_v17 }
 0x757   :  { %5638 = vset.pattern.permute.xlu1 %v8023_v45 }
 0x758   :  { %1552 = vperm.xlu1 %5638, %v8101_v62   ;;  %v2009_v16 = vpop.permute.xlu1 %2008  ;;  %v2276_v49 = vmax.f32 %v7153_v10, 0.0 }
 0x759   :  { %v2122_v42 = vmul.f32 %v6473_v37, %v2009_v16 }
 0x75a   :  { %v7177_v24 = vsel %vm445_vm1, %v2276_v49, -inf }
 0x75b   :  { %v2170_v31 = vadd.f32 %v2122_v42, %v8102_v20 }
 0x75c   :  { %5640 = vset.pattern.permute.xlu1 %v8024_v41  ;;  %v2049_v44 = vpop.permute.xlu1 %2048  ;;  %v1841_v41 = vmul.f32 %v6450_v30, %v8103_v56 }
 0x75d   :  { %2064 = vperm.xlu1 %5640, %v8099_v48   ;;  %v7158_v45 = vadd.f32 %v7150_v57, %v2170_v31 }
 0x75f   :  { %v2270_v14 = vmax.f32 %v7158_v45, 0.0 }
 0x761   :  { %2084 = vperm.xlu1 %5640, %v8100_v58   ;;  %v1508_v33 = vpop.permute.xlu1 %1507  ;;  %v2343_v61 = vsel %vm445_vm1, %v2270_v14, -inf }
 0x762   :  { %v1597_v8 = vmul.f32 %v6454_v50, %v1508_v33  ;;  %v7172_v48 = vmax.f32 %v2342_v32, %v2343_v61 }
 0x764   :  { %v7179_v35 = vadd.f32 %v1841_v41, %v1597_v8  ;;  %v2346_v36 = vmax.f32 %v7172_v48, %v7177_v24 }
 0x766   :  { %v1721_v5 = vpop.permute.xlu1 %1720 }
 0x767   :  { %v1831_v63 = vmul.f32 %v6450_v30, %v1721_v5  ;;  %v8106_v5 = vld [vmem:[#allocation21_spill] sm:$0xff] }
 0x768   :  { %v1832_v3 = vmul.f32 %v6450_v30, %v8106_v5 }
 0x769   :  { %v1879_v21 = vadd.f32 %v1831_v63, %v1587_v7  ;;  %v2132_v7 = vmul.f32 %v6473_v37, %v2049_v44  ;;  %v2124_v63 = vmul.f32 %v6473_v37, %v2017_v39 }
 0x76b   :  { %v2171_v32 = vadd.f32 %v2123_v1, %v1879_v21  ;;  %v1989_v0 = vpop.permute.xlu1 %1988  ;;  %v2180_v21 = vadd.f32 %v2132_v7, %v6906_v23  ;;  %v8108_v7 = vld [vmem:[#allocation30_spill] sm:$0xff] }
 0x76c   :  { %v2117_v11 = vmul.f32 %v6473_v37, %v1989_v0 }
 0x76d   :  { %v2223_v15 = vadd.f32 %v7150_v57, %v2171_v32 }
 0x76e   :  { %v2165_v58 = vadd.f32 %v2117_v11, %v8105_v25  ;;  %v1846_v11 = vmul.f32 %v6450_v30, %v1781_v27  ;;  %v7212_v25 = vadd.f32 %v7150_v57, %v2180_v21  ;;  %v2081_v21 = vpop.permute.xlu0 %2080 }
 0x76f   :  { %v2029_v28 = vpop.permute.xlu1 %2028  ;;  %v2271_v17 = vmax.f32 %v2223_v15, 0.0  ;;  %v8107_v15 = vld [vmem:[#allocation13_spill] sm:$0xff]  ;;  %v2140_v10 = vmul.f32 %v6473_v37, %v2081_v21 }
 0x770   :  { %v2127_v13 = vmul.f32 %v6473_v37, %v2029_v28  ;;  %v2217_v38 = vadd.f32 %v7150_v57, %v2165_v58  ;;  %v1602_v58 = vmul.f32 %v6454_v50, %v7127_v43  ;;  %v2280_v23 = vmax.f32 %v7212_v25, 0.0  ;;  %v1302_v25 = vld [vmem:[%s7929_s3 + $0x68] sm:$0xff] }
 0x771   :  { %v2358_v31 = vsel %vm445_vm1, %v2271_v17, -inf }
 0x772   :  { %v2175_v59 = vadd.f32 %v2127_v13, %v7044_v12  ;;  %v2265_v54 = vmax.f32 %v2217_v38, 0.0  ;;  %v1894_v38 = vadd.f32 %v1846_v11, %v1602_v58 }
 0x774   :  { %v1463_v62 = vpop.permute.xlu1 %1462  ;;  %v2356_v16 = vsel %vm445_vm1, %v2265_v54, -inf  ;;  %5304 = vmatprep.mubr.msk.f32.mxu1 %vm445_vm1, %v2265_v54  ;;  %v2227_v42 = vadd.f32 %v7150_v57, %v2175_v59 }
 0x775   :  { %v2357_v20 = vmax.f32 %v6868_v60, %v2356_v16  ;;  %v1588_v41 = vmul.f32 %v6454_v50, %v1463_v62 }
 0x776   :  { %v2275_v33 = vmax.f32 %v2227_v42, 0.0 }
 0x777   :  { %v7198_v61 = vmax.f32 %v2357_v20, %v2358_v31  ;;  %v1880_v60 = vadd.f32 %v1832_v3, %v1588_v41  ;;  %v2317_v31 = vsel %vm445_vm1, %v2280_v23, -inf }
 0x778   :  { %v7200_v56 = vpop.permute.xlu1 %1512  ;;  %v2330_v12 = vsel %vm445_vm1, %v2275_v33, -inf  ;;  %v2318_v5 = vmax.f32 %v2316_v46, %v2317_v31 }
 0x779   :  { %v2331_v8 = vmax.f32 %v7121_v53, %v2330_v12  ;;  %v2172_v32 = vadd.f32 %v2124_v63, %v1880_v60  ;;  %v8109_v60 = vmax.f32 %v8108_v7, 0.0 }
 0x77b   :  { %v2224_v28 = vadd.f32 %v7150_v57, %v2172_v32  ;;  %v1598_v32 = vmul.f32 %v6454_v50, %v7200_v56 }
 0x77d   :  { %v1765_v1 = vpop.permute.xlu1 %1764  ;;  %v2272_v16 = vmax.f32 %v2224_v28, 0.0  ;;  %v8111_v28 = vld [vmem:[#allocation16_spill] sm:$0xff] }
 0x77e   :  { %v1842_v63 = vmul.f32 %v6450_v30, %v1765_v1 }
 0x77f   :  { %v2373_v39 = vsel %vm445_vm1, %v2272_v16, -inf }
 0x782   :  { %v1993_v0 = vpop.permute.xlu1 %1992 }
 0x783   :  { %v2118_v53 = vmul.f32 %v6473_v37, %v1993_v0 }
 0x785   :  { %v2166_v44 = vadd.f32 %v2118_v53, %v8107_v15  ;;  %v1890_v53 = vadd.f32 %v1842_v63, %v1598_v32 }
 0x786   :  { %v2073_v13 = vpop.permute.xlu1 %2072 }
 0x787   :  { %v2138_v59 = vmul.f32 %v6473_v37, %v2073_v13  ;;  %v2218_v27 = vadd.f32 %v7150_v57, %v2166_v44  ;;  %v1843_v13 = vmul.f32 %v6450_v30, %v8111_v28  ;;  %v5273_v26 = vpop.f32.mrf.mxu1 }
 0x789   :  { %v2186_v54 = vadd.f32 %v2138_v59, %v1894_v38  ;;  %v2266_v62 = vmax.f32 %v2218_v27, 0.0  ;;  %v2061_v59 = vpop.permute.xlu0 %2060 }
 0x78b   :  { %v7223_v42 = vadd.f32 %v7150_v57, %v2186_v54  ;;  %v1488_v20 = vpop.permute.xlu1 %1487  ;;  %v2371_v43 = vsel %vm445_vm1, %v2266_v62, -inf  ;;  %5305 = vmatmul.mubr.msk.f32.gmra.mxu1 %vm445_vm1, %v2266_v62  ;;  %v2135_v62 = vmul.f32 %v6473_v37, %v2061_v59 }
 0x78c   :  { %v2372_v12 = vmax.f32 %v6978_v9, %v2371_v43  ;;  %5307 = vmatprep.mubr.msk.f32.mxu1 %vm445_vm1, %v2267_v2  ;;  %v1593_v43 = vmul.f32 %v6454_v50, %v1488_v20 }
 0x78d   :  { %v2286_v41 = vmax.f32 %v7223_v42, 0.0 }
 0x78e   :  { %v7239_v3 = vmax.f32 %v2372_v12, %v2373_v39 }
 0x78f   :  { %5308 = vmatmul.mubr.msk.f32.gmra.mxu1 %vm445_vm1, %v8109_v60  ;;  %v2319_v9 = vsel %vm445_vm1, %v2286_v41, -inf }
 0x790   :  { %v1745_v40 = vpop.permute.xlu1 %1744  ;;  %5310 = vmatprep.mubr.msk.f32.mxu1 %vm445_vm1, %v2269_v6  ;;  %v2320_v2 = vmax.f32 %v2318_v5, %v2319_v9 }
 0x791   :  { %v1837_v56 = vmul.f32 %v6450_v30, %v1745_v40 }
 0x792   :  { %5255 = vmatmul.mubr.msk.f32.vlgmr.msra.gmra.mxu0 %vm445_vm1, %v2320_v2 }
 0x793   :  { %5311 = vmatmul.mubr.msk.f32.gmra.mxu1 %vm445_vm1, %v2270_v14  ;;  %v1885_v7 = vadd.f32 %v1837_v56, %v1593_v43  ;;  %v8113_v56 = vld [vmem:[#allocation24_spill] sm:$0xff]  ;;  %5344 = vmatpush3.msra.mxu0 %v1303_v55  ;;  %v1301_v43 = vld [vmem:[%s7929_s3 + $0x60] sm:$0xff] }
 0x794   :  { %v1785_v4 = vpop.permute.xlu1 %1784  ;;  %5313 = vmatprep.mubr.msk.f32.mxu1 %vm445_vm1, %v2271_v17  ;;  %v1850_v59 = vmul.f32 %v6450_v30, %v8113_v56  ;;  %5345 = vmatprep.subr.mxu0 %v1302_v25 }
 0x795   :  { %v1847_v60 = vmul.f32 %v6450_v30, %v1785_v4  ;;  %5346 = vmatpush3.msra.mxu0 %v1302_v25 }
 0x796   :  { %5347 = vmatprep.subr.mxu0 %v1301_v43 }
 0x797   :  { %5314 = vmatmul.mubr.msk.f32.gmra.mxu1 %vm445_vm1, %v2272_v16  ;;  %5348 = vmatpush3.msra.mxu0 %v1301_v43 }
 0x798   :  { %5316 = vmatprep.mubr.msk.f32.mxu1 %vm445_vm1, %v2273_v18 }
 0x799   :  { %v2053_v51 = vpop.permute.xlu1 %2052 }
 0x79a   :  { %v2133_v46 = vmul.f32 %v6473_v37, %v2053_v51  ;;  %v8112_v51 = vld [vmem:[#allocation10_spill] sm:$0xff] }
 0x79b   :  { %5317 = vmatmul.mubr.msk.f32.gmra.mxu1 %vm445_vm1, %v2274_v22  ;;  %v1603_v20 = vmul.f32 %v6454_v50, %v8112_v51 }
 0x79c   :  { %v2181_v29 = vadd.f32 %v2133_v46, %v7179_v35  ;;  %5319 = vmatprep.mubr.msk.f32.mxu1 %vm445_vm1, %v2275_v33  ;;  %v8110_v35 = vld [vmem:[#allocation19_spill] sm:$0xff] }
 0x79d   :  { %v1604_v17 = vmul.f32 %v6454_v50, %v8110_v35 }
 0x79e   :  { %v7266_v6 = vadd.f32 %v7150_v57, %v2181_v29  ;;  %v1493_v45 = vpop.permute.xlu1 %1492 }
 0x79f   :  { %5320 = vmatmul.mubr.msk.f32.gmra.mxu1 %vm445_vm1, %v2276_v49 }
 0x7a0   :  { %v2281_v52 = vmax.f32 %v7266_v6, 0.0 }
 0x7a2   :  { %v2332_v19 = vsel %vm445_vm1, %v2281_v52, -inf }
 0x7a3   :  { %v1749_v18 = vpop.permute.xlu1 %1748  ;;  %v2333_v22 = vmax.f32 %v2331_v8, %v2332_v19 }
 0x7a7   :  { %v1789_v14 = vpop.permute.xlu1 %1788 }
 0x7a8   :  { %v1848_v33 = vmul.f32 %v6450_v30, %v1789_v14  ;;  %v1895_v14 = vadd.f32 %v1847_v60, %v1603_v20 }
 0x7aa   :  { %v1896_v49 = vadd.f32 %v1848_v33, %v1604_v17 }
 0x7ac   :  { %v2188_v0 = vadd.f32 %v2140_v10, %v1896_v49  ;;  %v2057_v11 = vpop.permute.xlu1 %2056  ;;  %v1838_v10 = vmul.f32 %v6450_v30, %v1749_v18 }
 0x7ad   :  { %v2134_v8 = vmul.f32 %v6473_v37, %v2057_v11  ;;  %v1594_v11 = vmul.f32 %v6454_v50, %v1493_v45 }
 0x7ae   :  { %v7284_v58 = vadd.f32 %v7150_v57, %v2188_v0 }
 0x7af   :  { %v2182_v15 = vadd.f32 %v2134_v8, %v1890_v53 }
 0x7b0   :  { %v2288_v54 = vmax.f32 %v7284_v58, 0.0 }
 0x7b1   :  { %v7287_v44 = vadd.f32 %v7150_v57, %v2182_v15  ;;  %v1518_v1 = vpop.permute.xlu1 %1517 }
 0x7b2   :  { %v1599_v38 = vmul.f32 %v6454_v50, %v1518_v1  ;;  %v2349_v40 = vsel %vm445_vm1, %v2288_v54, -inf }
 0x7b3   :  { %v2282_v27 = vmax.f32 %v7287_v44, 0.0  ;;  %v1886_v44 = vadd.f32 %v1838_v10, %v1594_v11 }
 0x7b4   :  { %v1891_v16 = vadd.f32 %v1843_v13, %v1599_v38 }
 0x7b5   :  { %v2347_v31 = vsel %vm445_vm1, %v2282_v27, -inf }
 0x7b6   :  { %v2183_v12 = vadd.f32 %v2135_v62, %v1891_v16  ;;  %v2037_v39 = vpop.permute.xlu1 %2036  ;;  %v2348_v5 = vmax.f32 %v2346_v36, %v2347_v31 }
 0x7b7   :  { %v2129_v9 = vmul.f32 %v6473_v37, %v2037_v39 }
 0x7b8   :  { %v2350_v2 = vmax.f32 %v2348_v5, %v2349_v40  ;;  %v2235_v29 = vadd.f32 %v7150_v57, %v2183_v12 }
 0x7b9   :  { %v2177_v46 = vadd.f32 %v2129_v9, %v1885_v7  ;;  %v1300_v7 = vld [vmem:[%s7929_s3 + $0x58] sm:$0xff] }
 0x7ba   :  { %v2077_v19 = vpop.permute.xlu1 %2076  ;;  %v2283_v35 = vmax.f32 %v2235_v29, 0.0  ;;  %5349 = vmatprep.subr.mxu0 %v1300_v7 }
 0x7bb   :  { %v2139_v48 = vmul.f32 %v6473_v37, %v2077_v19  ;;  %v2229_v24 = vadd.f32 %v7150_v57, %v2177_v46  ;;  %5350 = vmatpush3.msra.mxu0 %v1300_v7 }
 0x7bc   :  { %v2362_v32 = vsel %vm445_vm1, %v2283_v35, -inf }
 0x7bd   :  { %v2187_v36 = vadd.f32 %v2139_v48, %v1895_v14  ;;  %v2277_v4 = vmax.f32 %v2229_v24, 0.0 }
 0x7bf   :  { %v7312_v17 = vadd.f32 %v7150_v57, %v2187_v36  ;;  %v1773_v33 = vpop.permute.xlu1 %1772  ;;  %v2360_v63 = vsel %vm445_vm1, %v2277_v4, -inf  ;;  %5322 = vmatprep.mubr.msk.f32.mxu1 %vm445_vm1, %v2277_v4 }
 0x7c0   :  { %v2361_v21 = vmax.f32 %v7198_v61, %v2360_v63 }
 0x7c1   :  { %v2287_v49 = vmax.f32 %v7312_v17, 0.0 }
 0x7c2   :  { %v7320_v0 = vmax.f32 %v2361_v21, %v2362_v32 }
 0x7c3   :  { %v2334_v53 = vsel %vm445_vm1, %v2287_v49, -inf }
 0x7c4   :  { %v2041_v8 = vpop.permute.xlu1 %2040  ;;  %v2335_v15 = vmax.f32 %v2333_v22, %v2334_v53  ;;  %v2089_v22 = vpop.permute.xlu0 %2088 }
 0x7c5   :  { %v2130_v1 = vmul.f32 %v6473_v37, %v2041_v8 }
 0x7c6   :  { %5257 = vmatprep.mubr.msk.f32.mxu0 %vm445_vm1, %v2335_v15 }
 0x7c7   :  { %v2178_v61 = vadd.f32 %v2130_v1, %v1886_v44  ;;  %5258 = vmatmul.mubr.msk.f32.gmra.mxu0 %vm445_vm1, %v2350_v2 }
 0x7c9   :  { %v1548_v18 = vpop.permute.xlu1 %1547  ;;  %v2230_v28 = vadd.f32 %v7150_v57, %v2178_v61 }
 0x7ca   :  { %v1605_v60 = vmul.f32 %v6454_v50, %v1548_v18 }
 0x7cb   :  { %v2278_v13 = vmax.f32 %v2230_v28, 0.0 }
 0x7cd   :  { %5323 = vmatmul.mubr.msk.f32.gmra.mxu1 %vm445_vm1, %v2278_v13  ;;  %v2375_v51 = vsel %vm445_vm1, %v2278_v13, -inf }
 0x7ce   :  { %v1793_v45 = vpop.permute.xlu1 %1792  ;;  %5325 = vmatprep.mubr.msk.f32.mxu1 %vm445_vm1, %v2279_v34  ;;  %v1844_v34 = vmul.f32 %v6450_v30, %v1773_v33  ;;  %v2376_v48 = vmax.f32 %v7239_v3, %v2375_v51 }
 0x7cf   :  { %v1849_v39 = vmul.f32 %v6450_v30, %v1793_v45 }
 0x7d1   :  { %5326 = vmatmul.mubr.msk.f32.gmra.mxu1 %vm445_vm1, %v2280_v23  ;;  %v2142_v23 = vmul.f32 %v6473_v37, %v2089_v22  ;;  %v1897_v20 = vadd.f32 %v1849_v39, %v1605_v60 }
 0x7d2   :  { %5328 = vmatprep.mubr.msk.f32.mxu1 %vm445_vm1, %v2281_v52  ;;  %v8114_v52 = vld [vmem:[#allocation25_spill] sm:$0xff] }
 0x7d3   :  { %v1553_v38 = vpop.permute.xlu1 %1552  ;;  %v1600_v16 = vmul.f32 %v6454_v50, %v8114_v52 }
 0x7d4   :  { %v1606_v62 = vmul.f32 %v6454_v50, %v1553_v38 }
 0x7d5   :  { %5329 = vmatmul.mubr.msk.f32.gmra.mxu1 %vm445_vm1, %v2282_v27  ;;  %v1892_v12 = vadd.f32 %v1844_v34, %v1600_v16 }
 0x7d6   :  { %v1898_v6 = vadd.f32 %v1850_v59, %v1606_v62  ;;  %5331 = vmatprep.mubr.msk.f32.mxu1 %vm445_vm1, %v2283_v35 }
 0x7d8   :  { %v2190_v27 = vadd.f32 %v2142_v23, %v1898_v6  ;;  %v2065_v31 = vpop.permute.xlu1 %2064 }
 0x7d9   :  { %v2136_v5 = vmul.f32 %v6473_v37, %v2065_v31 }
 0x7da   :  { %v2242_v9 = vadd.f32 %v7150_v57, %v2190_v27 }
 0x7db   :  { %v2184_v40 = vadd.f32 %v2136_v5, %v1892_v12 }
 0x7dc   :  { %v2085_v2 = vpop.permute.xlu1 %2084  ;;  %v2290_v14 = vmax.f32 %v2242_v9, 0.0 }
 0x7dd   :  { %v2141_v30 = vmul.f32 %v6473_v37, %v2085_v2  ;;  %v2236_v46 = vadd.f32 %v7150_v57, %v2184_v40 }
 0x7de   :  { %v2379_v37 = vsel %vm445_vm1, %v2290_v14, -inf }
 0x7df   :  { %v2189_v29 = vadd.f32 %v2141_v30, %v1897_v20  ;;  %v2284_v19 = vmax.f32 %v2236_v46, 0.0 }
 0x7e1   :  { %v2241_v50 = vadd.f32 %v7150_v57, %v2189_v29  ;;  %v2377_v24 = vsel %vm445_vm1, %v2284_v19, -inf  ;;  %5332 = vmatmul.mubr.msk.f32.gmra.mxu1 %vm445_vm1, %v2284_v19 }
 0x7e2   :  { %5334 = vmatprep.mubr.msk.f32.mxu1 %vm445_vm1, %v2285_v47  ;;  %v2378_v36 = vmax.f32 %v2376_v48, %v2377_v24  ;;  %v2708_v47 = vpop.f32.mrf.mxu1 }
 0x7e3   :  { %v2289_v4 = vmax.f32 %v2241_v50, 0.0 }
 0x7e4   :  { %v2380_v35 = vmax.f32 %v2378_v36, %v2379_v37  ;;  %v5276_v42 = vpop.f32.mrf.mxu1 }
 0x7e5   :  { %5335 = vmatmul.mubr.msk.f32.gmra.mxu1 %vm445_vm1, %v2286_v41  ;;  %v2364_v3 = vsel %vm445_vm1, %v2289_v4, -inf  ;;  %v4733_v41 = vld [vmem:[%s7929_s3 + $0x50] ss:$0 sm:$0xff] }
 0x7e6   :  { %5337 = vmatprep.mubr.msk.f32.mxu1 %vm445_vm1, %v2287_v49  ;;  %v2365_v57 = vmax.f32 %v7320_v0, %v2364_v3  ;;  %v2718_v33 = vpop.f32.mrf.mxu1 }
 0x7e8   :  { %5260 = vmatprep.mubr.msk.f32.mxu0 %vm445_vm1, %v2365_v57  ;;  %v5279_v10 = vpop.f32.mrf.mxu1 }
 0x7e9   :  { %5261 = vmatmul.mubr.msk.f32.gmra.mxu0 %vm445_vm1, %v2380_v35  ;;  %5338 = vmatmul.mubr.msk.f32.gmra.mxu1 %vm445_vm1, %v2288_v54 }
 0x7ea   :  { %5340 = vmatprep.mubr.msk.f32.mxu1 %vm445_vm1, %v2289_v4  ;;  %v2728_v32 = vpop.f32.mrf.mxu1 }
 0x7ec   :  { %v5282_v53 = vpop.f32.mrf.mxu1 }
 0x7ed   :  { %5341 = vmatmul.mubr.msk.f32.gmra.mxu1 %vm445_vm1, %v2290_v14 }
 0x7ee   :  { %v2738_v8 = vpop.f32.mrf.mxu1 }
 0x7f0   :  { %v5285_v15 = vpop.f32.mrf.mxu1 }
 0x7f2   :  { %v2748_v44 = vpop.f32.mrf.mxu1 }
 0x7f4   :  { %v5288_v1 = vpop.f32.mrf.mxu1 }
 0x7f6   :  { %v2758_v61 = vpop.f32.mrf.mxu1 }
 0x7f8   :  { %v5291_v18 = vpop.f32.mrf.mxu1 }
 0x7fa   :  { %v2768_v28 = vpop.f32.mrf.mxu1 }
 0x7fc   :  { %v5294_v13 = vpop.f32.mrf.mxu1 }
 0x7fe   :  { %v2778_v45 = vpop.f32.mrf.mxu1 }
 0x800   :  { %v7402_v22 = vpop.f32.mrf.mxu1 }
 0x802   :  { %v2788_v59 = vpop.f32.mrf.mxu1 }
 0x804   :  { %v7410_v23 = vpop.f32.mrf.mxu1 }
 0x806   :  { %v2798_v16 = vpop.f32.mrf.mxu1 }
 0x808   :  { %v7414_v43 = vpop.f32.mrf.mxu1 }
 0x80a   :  { %v2808_v27 = vpop.f32.mrf.mxu1 }
 0x84b   :  { %v7416_v31 = vpop.f32.mrf.mxu1 }
 0x84d   :  { %v7418_v12 = vpop.f32.mrf.mxu1 }
 0x84f   :  { %v7420_v39 = vpop.f32.mrf.mxu1 }
 0x851   :  { %v7422_v5 = vpop.f32.mrf.mxu1 }
 0x852   :  { %v5256_v17 = vpop.f32.mrf.mxu0 }
 0x853   :  { %v7394_v63 = vadd.f32 %v5256_v17, %v4733_v41  ;;  %v7426_v9 = vpop.f32.mrf.mxu1 }
 0x854   :  { %v2469_v21 = vpop.f32.mrf.mxu0 }
 0x855   :  { %v7396_v58 = vadd.f32 %v4733_v41, %v2469_v21  ;;  %v2948_v54 = vadd.f32 %v5273_v26, %v7394_v63  ;;  %v7433_v46 = vpop.f32.mrf.mxu1  ;;  %v2954_v14 = vadd.f32 %v5282_v53, %v7394_v63 }
 0x857   :  { %v2947_v49 = vadd.f32 %v2708_v47, %v7396_v58  ;;  %v2996_v11 = vmax.f32 %v2948_v54, 0.0  ;;  %v2953_v30 = vadd.f32 %v2738_v8, %v7396_v58  ;;  %v7438_v24 = vpop.f32.mrf.mxu1  ;;  %v3002_v36 = vmax.f32 %v2954_v14, 0.0 }
 0x859   :  { %v2995_v0 = vmax.f32 %v2947_v49, 0.0  ;;  %v3001_v48 = vmax.f32 %v2953_v30, 0.0  ;;  %v7444_v3 = vpop.f32.mrf.mxu1 }
 0x85b   :  { %5351 = vmatprep.mubr.msk.f32.mxu0 %vm445_vm1, %v2995_v0 }
 0x85c   :  { %5352 = vmatmul.mubr.msk.f32.vlgmr.msra.gmra.mxu0 %vm445_vm1, %v2996_v11 }
 0x887   :  { %v5259_v38 = vpop.f32.mrf.mxu0 }
 0x888   :  { %v7404_v56 = vadd.f32 %v5259_v38, %v4733_v41 }
 0x889   :  { %v2479_v62 = vpop.f32.mrf.mxu0 }
 0x88a   :  { %v7406_v55 = vadd.f32 %v4733_v41, %v2479_v62  ;;  %v2950_v34 = vadd.f32 %v5276_v42, %v7404_v56  ;;  %v2956_v4 = vadd.f32 %v5285_v15, %v7404_v56  ;;  %v2959_v42 = vadd.f32 %v2768_v28, %v7396_v58 }
 0x88b   :  { %v2968_v62 = vadd.f32 %v7414_v43, %v7404_v56  ;;  %v2974_v30 = vadd.f32 %v7426_v9, %v7404_v56 }
 0x88c   :  { %v2949_v25 = vadd.f32 %v2718_v33, %v7406_v55  ;;  %v2998_v52 = vmax.f32 %v2950_v34, 0.0  ;;  %v2955_v50 = vadd.f32 %v2748_v44, %v7406_v55  ;;  %v3004_v57 = vmax.f32 %v2956_v4, 0.0 }
 0x88d   :  { %v2960_v33 = vadd.f32 %v5291_v18, %v7394_v63  ;;  %v3007_v21 = vmax.f32 %v2959_v42, 0.0  ;;  %v2967_v38 = vadd.f32 %v2808_v27, %v7406_v55  ;;  %v2971_v27 = vadd.f32 %v7422_v5, %v7396_v58 }
 0x88e   :  { %v2997_v6 = vmax.f32 %v2949_v25, 0.0  ;;  %v3003_v37 = vmax.f32 %v2955_v50, 0.0 }
 0x88f   :  { %v3008_v49 = vmax.f32 %v2960_v33, 0.0  ;;  %v3015_v34 = vmax.f32 %v2967_v38, 0.0 }
 0x890   :  { %5354 = vmatprep.mubr.msk.f32.mxu0 %vm445_vm1, %v2997_v6  ;;  %v3016_v6 = vmax.f32 %v2968_v62, 0.0 }
 0x891   :  { %5355 = vmatmul.mubr.msk.f32.gmra.mxu0 %vm445_vm1, %v2998_v52 }
 0x8a9   :  { %v5262_v7 = vpop.f32.mrf.mxu0 }
 0x8aa   :  { %v7424_v60 = vadd.f32 %v5262_v7, %v4733_v41 }
 0x8ab   :  { %v2489_v40 = vpop.f32.mrf.mxu0 }
 0x8ac   :  { %v7428_v2 = vadd.f32 %v4733_v41, %v2489_v40  ;;  %v2952_v51 = vadd.f32 %v5279_v10, %v7424_v60  ;;  %v2958_v26 = vadd.f32 %v5288_v1, %v7424_v60  ;;  %v7450_v41 = vpop.f32.mrf.mxu1  ;;  %v2961_v10 = vadd.f32 %v2778_v45, %v7406_v55 }
 0x8ad   :  { %v2964_v15 = vadd.f32 %v7402_v22, %v7424_v60  ;;  %v2965_v1 = vadd.f32 %v2798_v16, %v7396_v58  ;;  %v2970_v52 = vadd.f32 %v7416_v31, %v7424_v60  ;;  %v3019_v40 = vmax.f32 %v2971_v27, 0.0  ;;  %v1308_v31 = vld [vmem:[%s7929_s3 + $0x98] sm:$0xff]  ;;  %v1313_v27 = vld [vmem:[%s7929_s3 + $0xc0] sm:$0xff] }
 0x8ae   :  { %v2951_v20 = vadd.f32 %v2728_v32, %v7428_v2  ;;  %v3000_v19 = vmax.f32 %v2952_v51, 0.0  ;;  %v2957_v35 = vadd.f32 %v2758_v61, %v7428_v2  ;;  %v3006_v17 = vmax.f32 %v2958_v26, 0.0  ;;  %v2858_v54 = vpop.f32.mrf.mxu1  ;;  %5423 = vmatprep.subr.mxu1 %v1308_v31  ;;  %5440 = vmatprep.subr.mxu0 %v1313_v27 }
 0x8af   :  { %v2962_v32 = vadd.f32 %v5294_v13, %v7404_v56  ;;  %v3009_v0 = vmax.f32 %v2961_v10, 0.0  ;;  %v2963_v11 = vadd.f32 %v2788_v59, %v7428_v2  ;;  %v3012_v28 = vmax.f32 %v2964_v15, 0.0  ;;  %5424 = vmatpush3.msra.mxu1 %v1308_v31  ;;  %5441 = vmatpush3.msra.mxu0 %v1313_v27 }
 0x8b0   :  { %v2999_v29 = vmax.f32 %v2951_v20, 0.0  ;;  %v3005_v47 = vmax.f32 %v2957_v35, 0.0  ;;  %v7460_v53 = vpop.f32.mrf.mxu1  ;;  %v2966_v13 = vadd.f32 %v7410_v23, %v7394_v63  ;;  %v3013_v45 = vmax.f32 %v2965_v1, 0.0 }
 0x8b1   :  { %v3010_v8 = vmax.f32 %v2962_v32, 0.0  ;;  %v3011_v44 = vmax.f32 %v2963_v11, 0.0  ;;  %v2969_v25 = vadd.f32 %v7418_v12, %v7428_v2  ;;  %v3018_v7 = vmax.f32 %v2970_v52, 0.0 }
 0x8b2   :  { %5357 = vmatprep.mubr.msk.f32.mxu0 %vm445_vm1, %v2999_v29  ;;  %v2868_v61 = vpop.f32.mrf.mxu1  ;;  %v3014_v59 = vmax.f32 %v2966_v13, 0.0  ;;  %v2972_v12 = vadd.f32 %v7420_v39, %v7394_v63  ;;  %v2973_v51 = vadd.f32 %v7433_v46, %v7406_v55  ;;  %v2975_v39 = vadd.f32 %v7444_v3, %v7428_v2 }
 0x8b3   :  { %5358 = vmatmul.mubr.msk.f32.gmra.mxu0 %vm445_vm1, %v3000_v19  ;;  %v3017_v16 = vmax.f32 %v2969_v25, 0.0  ;;  %v3022_v19 = vmax.f32 %v2974_v30, 0.0  ;;  %v2976_v14 = vadd.f32 %v7438_v24, %v7424_v60  ;;  %v2978_v9 = vadd.f32 %v7450_v41, %v7394_v63 }
 0x8b4   :  { %5360 = vmatprep.mubr.msk.f32.mxu0 %vm445_vm1, %v3001_v48  ;;  %v5324_v18 = vpop.f32.mrf.mxu1  ;;  %v3020_v20 = vmax.f32 %v2972_v12, 0.0  ;;  %v3021_v29 = vmax.f32 %v2973_v51, 0.0  ;;  %v2977_v48 = vadd.f32 %v2858_v54, %v7396_v58  ;;  %v3023_v50 = vmax.f32 %v2975_v39, 0.0  ;;  %v1310_v12 = vld [vmem:[%s7929_s3 + $0xa8] sm:$0xff] }
 0x8b5   :  { %v3024_v4 = vmax.f32 %v2976_v14, 0.0  ;;  %v2979_v35 = vadd.f32 %v2868_v61, %v7406_v55  ;;  %v3026_v24 = vmax.f32 %v2978_v9, 0.0 }
 0x8b6   :  { %v2878_v22 = vpop.f32.mrf.mxu1 }
 0x8b7   :  { %5361 = vmatmul.mubr.msk.f32.gmra.mxu0 %vm445_vm1, %v3002_v36  ;;  %v3027_v26 = vmax.f32 %v2979_v35, 0.0 }
 0x8b8   :  { %5363 = vmatprep.mubr.msk.f32.mxu0 %vm445_vm1, %v3003_v37  ;;  %v5327_v23 = vpop.f32.mrf.mxu1  ;;  %v3025_v37 = vmax.f32 %v2977_v48, 0.0 }
 0x8b9   :  { %v2984_v54 = vadd.f32 %v5327_v23, %v7394_v63 }
 0x8ba   :  { %v2888_v43 = vpop.f32.mrf.mxu1 }
 0x8bb   :  { %5364 = vmatmul.mubr.msk.f32.gmra.mxu0 %vm445_vm1, %v3004_v57  ;;  %v2980_v57 = vadd.f32 %v7460_v53, %v7404_v56  ;;  %v2983_v33 = vadd.f32 %v2888_v43, %v7396_v58  ;;  %v3032_v53 = vmax.f32 %v2984_v54, 0.0  ;;  %v1312_v43 = vld [vmem:[%s7929_s3 + $0xb8] sm:$0xff] }
 0x8bc   :  { %5366 = vmatprep.mubr.msk.f32.mxu0 %vm445_vm1, %v3005_v47  ;;  %v5330_v5 = vpop.f32.mrf.mxu1  ;;  %v2981_v47 = vadd.f32 %v2878_v22, %v7428_v2  ;;  %5442 = vmatprep.subr.mxu0 %v1312_v43 }
 0x8bd   :  { %v3028_v41 = vmax.f32 %v2980_v57, 0.0  ;;  %v3031_v32 = vmax.f32 %v2983_v33, 0.0  ;;  %5443 = vmatpush3.msra.mxu0 %v1312_v43 }
 0x8be   :  { %v2898_v46 = vpop.f32.mrf.mxu1 }
 0x8bf   :  { %5367 = vmatmul.mubr.msk.f32.gmra.mxu0 %vm445_vm1, %v3006_v17  ;;  %v2982_v17 = vadd.f32 %v5324_v18, %v7424_v60 }
 0x8c0   :  { %5369 = vmatprep.mubr.msk.f32.mxu0 %vm445_vm1, %v3007_v21  ;;  %v5333_v36 = vpop.f32.mrf.mxu1  ;;  %v3029_v21 = vmax.f32 %v2981_v47, 0.0 }
 0x8c1   :  { %v2988_v18 = vadd.f32 %v5333_v36, %v7424_v60 }
 0x8c2   :  { %v2908_v3 = vpop.f32.mrf.mxu1 }
 0x8c3   :  { %5370 = vmatmul.mubr.msk.f32.gmra.mxu0 %vm445_vm1, %v3008_v49  ;;  %v3030_v49 = vmax.f32 %v2982_v17, 0.0  ;;  %v3036_v22 = vmax.f32 %v2988_v18, 0.0 }
 0x8c4   :  { %5372 = vmatprep.mubr.msk.f32.mxu0 %vm445_vm1, %v3009_v0  ;;  %v5336_v42 = vpop.f32.mrf.mxu1  ;;  %v2985_v0 = vadd.f32 %v2898_v46, %v7406_v55 }
 0x8c5   :  { %v2990_v38 = vadd.f32 %v5336_v42, %v7394_v63 }
 0x8c6   :  { %v2918_v10 = vpop.f32.mrf.mxu1  ;;  %v3033_v15 = vmax.f32 %v2985_v0, 0.0 }
 0x8c7   :  { %5373 = vmatmul.mubr.msk.f32.gmra.mxu0 %vm445_vm1, %v3010_v8  ;;  %v2986_v8 = vadd.f32 %v5330_v5, %v7404_v56  ;;  %v3038_v25 = vmax.f32 %v2990_v38, 0.0 }
 0x8c8   :  { %5375 = vmatprep.mubr.msk.f32.mxu0 %vm445_vm1, %v3011_v44  ;;  %v5339_v11 = vpop.f32.mrf.mxu1  ;;  %v2987_v44 = vadd.f32 %v2908_v3, %v7428_v2 }
 0x8c9   :  { %v3034_v61 = vmax.f32 %v2986_v8, 0.0 }
 0x8ca   :  { %v2928_v1 = vpop.f32.mrf.mxu1  ;;  %v3035_v13 = vmax.f32 %v2987_v44, 0.0 }
 0x8cb   :  { %5376 = vmatmul.mubr.msk.f32.gmra.mxu0 %vm445_vm1, %v3012_v28  ;;  %v2989_v28 = vadd.f32 %v2918_v10, %v7396_v58  ;;  %v2991_v62 = vadd.f32 %v2928_v1, %v7406_v55  ;;  %v2992_v58 = vadd.f32 %v5339_v11, %v7404_v56  ;;  %v1307_v56 = vld [vmem:[%s7929_s3 + $0x90] sm:$0xff] }
 0x8cc   :  { %5378 = vmatprep.mubr.msk.f32.mxu0 %vm445_vm1, %v3013_v45  ;;  %v5342_v45 = vpop.f32.mrf.mxu1  ;;  %5425 = vmatprep.subr.mxu1 %v1307_v56 }
 0x8cd   :  { %v3039_v23 = vmax.f32 %v2991_v62, 0.0  ;;  %v3040_v63 = vmax.f32 %v2992_v58, 0.0  ;;  %v2994_v52 = vadd.f32 %v5342_v45, %v7424_v60  ;;  %5426 = vmatpush3.msra.mxu1 %v1307_v56  ;;  %v1305_v60 = vld [vmem:[%s7929_s3 + $0x80] sm:$0xff] }
 0x8cf   :  { %5379 = vmatmul.mubr.msk.f32.gmra.mxu0 %vm445_vm1, %v3014_v59  ;;  %v3037_v59 = vmax.f32 %v2989_v28, 0.0  ;;  %v3042_v55 = vmax.f32 %v2994_v52, 0.0 }
 0x8d0   :  { %5381 = vmatprep.mubr.msk.f32.mxu0 %vm445_vm1, %v3015_v34  ;;  %v2938_v34 = vpop.f32.mrf.mxu1 }
 0x8d3   :  { %5382 = vmatmul.mubr.msk.f32.gmra.mxu0 %vm445_vm1, %v3016_v6  ;;  %v2993_v6 = vadd.f32 %v2938_v34, %v7428_v2  ;;  %v1306_v2 = vld [vmem:[%s7929_s3 + $0x88] sm:$0xff] }
 0x8d4   :  { %5384 = vmatprep.mubr.msk.f32.mxu0 %vm445_vm1, %v3017_v16  ;;  %5427 = vmatprep.subr.mxu1 %v1306_v2 }
 0x8d5   :  { %v3041_v16 = vmax.f32 %v2993_v6, 0.0  ;;  %5428 = vmatpush3.msra.mxu1 %v1306_v2 }
 0x8d6   :  { %5429 = vmatprep.subr.mxu1 %v1305_v60 }
 0x8d7   :  { %5385 = vmatmul.mubr.msk.f32.gmra.mxu0 %vm445_vm1, %v3018_v7  ;;  %5430 = vmatpush3.msra.mxu1 %v1305_v60  ;;  %v1311_v7 = vld [vmem:[%s7929_s3 + $0xb0] sm:$0xff] }
 0x8d8   :  { %5387 = vmatprep.mubr.msk.f32.mxu0 %vm445_vm1, %v3019_v40  ;;  %5444 = vmatprep.subr.mxu0 %v1311_v7 }
 0x8d9   :  { %5445 = vmatpush3.msra.mxu0 %v1311_v7 }
 0x8da   :  { %5446 = vmatprep.subr.mxu0 %v1310_v12 }
 0x8db   :  { %5388 = vmatmul.mubr.msk.f32.gmra.mxu0 %vm445_vm1, %v3020_v20 }
 0x8dc   :  { %5390 = vmatprep.mubr.msk.f32.mxu0 %vm445_vm1, %v3021_v29  ;;  %5447 = vmatpush3.msra.mxu0 %v1310_v12 }
 0x8df   :  { %5391 = vmatmul.mubr.msk.f32.gmra.mxu0 %vm445_vm1, %v3022_v19 }
 0x8e0   :  { %5393 = vmatprep.mubr.msk.f32.mxu0 %vm445_vm1, %v3023_v50 }
 0x8e3   :  { %5394 = vmatmul.mubr.msk.f32.gmra.mxu0 %vm445_vm1, %v3024_v4 }
 0x8e4   :  { %5396 = vmatprep.mubr.msk.f32.mxu0 %vm445_vm1, %v3025_v37 }
 0x8e7   :  { %5397 = vmatmul.mubr.msk.f32.gmra.mxu0 %vm445_vm1, %v3026_v24 }
 0x8e8   :  { %5399 = vmatprep.mubr.msk.f32.mxu0 %vm445_vm1, %v3027_v26 }
 0x8eb   :  { %5400 = vmatmul.mubr.msk.f32.gmra.mxu0 %vm445_vm1, %v3028_v41  ;;  %v7576_v41 = vld [vmem:[%s7929_s3 + $0x78] ss:$0 sm:$0xff] }
 0x8ec   :  { %5402 = vmatprep.mubr.msk.f32.mxu0 %vm445_vm1, %v3029_v21 }
 0x8ef   :  { %5403 = vmatmul.mubr.msk.f32.gmra.mxu0 %vm445_vm1, %v3030_v49 }
 0x8f0   :  { %5405 = vmatprep.mubr.msk.f32.mxu0 %vm445_vm1, %v3031_v32 }
 0x8f3   :  { %5406 = vmatmul.mubr.msk.f32.gmra.mxu0 %vm445_vm1, %v3032_v53 }
 0x8f4   :  { %5408 = vmatprep.mubr.msk.f32.mxu0 %vm445_vm1, %v3033_v15 }
 0x8f7   :  { %5409 = vmatmul.mubr.msk.f32.gmra.mxu0 %vm445_vm1, %v3034_v61 }
 0x8f8   :  { %5411 = vmatprep.mubr.msk.f32.mxu0 %vm445_vm1, %v3035_v13 }
 0x8fb   :  { %5412 = vmatmul.mubr.msk.f32.gmra.mxu0 %vm445_vm1, %v3036_v22 }
 0x8fc   :  { %5414 = vmatprep.mubr.msk.f32.mxu0 %vm445_vm1, %v3037_v59 }
 0x8ff   :  { %5415 = vmatmul.mubr.msk.f32.gmra.mxu0 %vm445_vm1, %v3038_v25 }
 0x900   :  { %5417 = vmatprep.mubr.msk.f32.mxu0 %vm445_vm1, %v3039_v23 }
 0x903   :  { %5418 = vmatmul.mubr.msk.f32.gmra.mxu0 %vm445_vm1, %v3040_v63 }
 0x904   :  { %5420 = vmatprep.mubr.msk.f32.mxu0 %vm445_vm1, %v3041_v16 }
 0x907   :  { %5421 = vmatmul.mubr.msk.f32.gmra.mxu0 %vm445_vm1, %v3042_v55 }
 0x91c   :  { %v5353_v40 = vpop.f32.mrf.mxu0 }
 0x91d   :  { %v3263_v33 = vadd.f32 %v5353_v40, %v7576_v41 }
 0x91e   :  { %v3257_v51 = vpop.f32.mrf.mxu0 }
 0x91f   :  { %v3258_v10 = vadd.f32 %v7576_v41, %v3257_v51  ;;  %v3497_v44 = vmax.f32 %v3263_v33, 0.0 }
 0x921   :  { %v3496_v18 = vmax.f32 %v3258_v10, 0.0  ;;  %v3559_v6 = vsel %vm445_vm1, %v3497_v44, -inf }
 0x923   :  { %v3544_v56 = vsel %vm445_vm1, %v3496_v18, -inf }
 0x951   :  { %v5356_v31 = vpop.f32.mrf.mxu0 }
 0x952   :  { %v3273_v54 = vadd.f32 %v5356_v31, %v7576_v41 }
 0x953   :  { %v3267_v5 = vpop.f32.mrf.mxu0 }
 0x954   :  { %v3268_v49 = vadd.f32 %v7576_v41, %v3267_v5  ;;  %v3499_v28 = vmax.f32 %v3273_v54, 0.0 }
 0x956   :  { %v3498_v13 = vmax.f32 %v3268_v49, 0.0  ;;  %v3589_v2 = vsel %vm445_vm1, %v3499_v28, -inf }
 0x958   :  { %v3574_v60 = vsel %vm445_vm1, %v3498_v13, -inf }
 0x973   :  { %v5359_v20 = vpop.f32.mrf.mxu0 }
 0x974   :  { %v3283_v32 = vadd.f32 %v5359_v20, %v7576_v41 }
 0x975   :  { %v3277_v30 = vpop.f32.mrf.mxu0 }
 0x976   :  { %v3278_v0 = vadd.f32 %v7576_v41, %v3277_v30  ;;  %v3501_v45 = vmax.f32 %v3283_v32, 0.0 }
 0x977   :  { %v5362_v29 = vpop.f32.mrf.mxu0 }
 0x978   :  { %v3293_v11 = vadd.f32 %v5362_v29, %v7576_v41  ;;  %v3500_v38 = vmax.f32 %v3278_v0, 0.0  ;;  %v3619_v27 = vsel %vm445_vm1, %v3501_v45, -inf }
 0x979   :  { %v3287_v39 = vpop.f32.mrf.mxu0 }
 0x97a   :  { %v3288_v8 = vadd.f32 %v7576_v41, %v3287_v39  ;;  %v3503_v22 = vmax.f32 %v3293_v11, 0.0  ;;  %v7611_v43 = vsel %vm445_vm1, %v3500_v38, -inf }
 0x97b   :  { %v5365_v46 = vpop.f32.mrf.mxu0 }
 0x97c   :  { %v3303_v15 = vadd.f32 %v5365_v46, %v7576_v41  ;;  %v3502_v34 = vmax.f32 %v3288_v8, 0.0  ;;  %v3560_v7 = vsel %vm445_vm1, %v3503_v22, -inf }
 0x97d   :  { %v3297_v19 = vpop.f32.mrf.mxu0 }
 0x97e   :  { %v3298_v1 = vadd.f32 %v7576_v41, %v3297_v19  ;;  %v3505_v25 = vmax.f32 %v3303_v15, 0.0  ;;  %v3545_v31 = vsel %vm445_vm1, %v3502_v34, -inf }
 0x97f   :  { %v5368_v14 = vpop.f32.mrf.mxu0 }
 0x980   :  { %v3313_v59 = vadd.f32 %v5368_v14, %v7576_v41  ;;  %v3504_v63 = vmax.f32 %v3298_v1, 0.0  ;;  %v3590_v5 = vsel %vm445_vm1, %v3505_v25, -inf }
 0x981   :  { %v3307_v48 = vpop.f32.mrf.mxu0  ;;  %v3591_v33 = vmax.f32 %v3589_v2, %v3590_v5 }
 0x982   :  { %v3308_v58 = vadd.f32 %v7576_v41, %v3307_v48  ;;  %v3507_v12 = vmax.f32 %v3313_v59, 0.0  ;;  %v3575_v29 = vsel %vm445_vm1, %v3504_v63, -inf  ;;  %v3561_v48 = vmax.f32 %v3559_v6, %v3560_v7 }
 0x983   :  { %v5371_v50 = vpop.f32.mrf.mxu0  ;;  %v3576_v32 = vmax.f32 %v3574_v60, %v3575_v29 }
 0x984   :  { %v3323_v23 = vadd.f32 %v5371_v50, %v7576_v41  ;;  %v3506_v20 = vmax.f32 %v3308_v58, 0.0  ;;  %v3620_v10 = vsel %vm445_vm1, %v3507_v12, -inf }
 0x985   :  { %v3317_v36 = vpop.f32.mrf.mxu0  ;;  %v3621_v44 = vmax.f32 %v3619_v27, %v3620_v10 }
 0x986   :  { %v3318_v52 = vadd.f32 %v7576_v41, %v3317_v36  ;;  %v3509_v30 = vmax.f32 %v3323_v23, 0.0  ;;  %v3605_v0 = vsel %vm445_vm1, %v3506_v20, -inf }
 0x987   :  { %v5374_v9 = vpop.f32.mrf.mxu0  ;;  %v3606_v13 = vmax.f32 %v7611_v43, %v3605_v0 }
 0x988   :  { %v3333_v16 = vadd.f32 %v5374_v9, %v7576_v41  ;;  %v3508_v39 = vmax.f32 %v3318_v52, 0.0 }
 0x989   :  { %v3327_v4 = vpop.f32.mrf.mxu0 }
 0x98a   :  { %v3328_v40 = vadd.f32 %v7576_v41, %v3327_v4  ;;  %v3511_v46 = vmax.f32 %v3333_v16, 0.0  ;;  %v3546_v4 = vmax.f32 %v3544_v56, %v3545_v31 }
 0x98b   :  { %v5377_v37 = vpop.f32.mrf.mxu0 }
 0x98c   :  { %v3343_v19 = vadd.f32 %v5377_v37, %v7576_v41  ;;  %v3510_v54 = vmax.f32 %v3328_v40, 0.0  ;;  %v3562_v37 = vsel %vm445_vm1, %v3509_v30, -inf }
 0x98d   :  { %v3337_v35 = vpop.f32.mrf.mxu0  ;;  %v3563_v59 = vmax.f32 %v3561_v48, %v3562_v37 }
 0x98e   :  { %v3338_v50 = vadd.f32 %v7576_v41, %v3337_v35  ;;  %v3547_v35 = vsel %vm445_vm1, %v3508_v39, -inf  ;;  %v3577_v45 = vsel %vm445_vm1, %v3510_v54, -inf }
 0x98f   :  { %v5380_v3 = vpop.f32.mrf.mxu0  ;;  %v3548_v34 = vmax.f32 %v3546_v4, %v3547_v35 }
 0x990   :  { %v3353_v36 = vadd.f32 %v5380_v3, %v7576_v41  ;;  %v3592_v3 = vsel %vm445_vm1, %v3511_v46, -inf  ;;  %v3512_v1 = vmax.f32 %v3338_v50, 0.0 }
 0x991   :  { %v3347_v24 = vpop.f32.mrf.mxu0 }
 0x992   :  { %v3348_v9 = vadd.f32 %v7576_v41, %v3347_v24  ;;  %v3513_v24 = vmax.f32 %v3343_v19, 0.0  ;;  %v3515_v18 = vmax.f32 %v3353_v36, 0.0 }
 0x993   :  { %v7565_v57 = vpop.f32.mrf.mxu0 }
 0x994   :  { %v3363_v11 = vadd.f32 %v7565_v57, %v7576_v41  ;;  %v3514_v28 = vmax.f32 %v3348_v9, 0.0  ;;  %v3622_v58 = vsel %vm445_vm1, %v3513_v24, -inf  ;;  %v3564_v16 = vsel %vm445_vm1, %v3515_v18, -inf }
 0x995   :  { %v7567_v26 = vpop.f32.mrf.mxu0  ;;  %v3623_v7 = vmax.f32 %v3621_v44, %v3622_v58  ;;  %v3565_v39 = vmax.f32 %v3563_v59, %v3564_v16 }
 0x996   :  { %v3358_v8 = vadd.f32 %v7576_v41, %v7567_v26  ;;  %v3593_v26 = vmax.f32 %v3591_v33, %v3592_v3  ;;  %v3517_v25 = vmax.f32 %v3363_v11, 0.0  ;;  %v3549_v56 = vsel %vm445_vm1, %v3514_v28, -inf }
 0x997   :  { %v7569_v47 = vpop.f32.mrf.mxu0 }
 0x998   :  { %v3373_v57 = vadd.f32 %v7569_v47, %v7576_v41  ;;  %v3516_v23 = vmax.f32 %v3358_v8, 0.0  ;;  %v3578_v47 = vmax.f32 %v3576_v32, %v3577_v45 }
 0x999   :  { %v7571_v42 = vpop.f32.mrf.mxu0 }
 0x99a   :  { %v3368_v38 = vadd.f32 %v7576_v41, %v7571_v42  ;;  %v3607_v42 = vsel %vm445_vm1, %v3512_v1, -inf  ;;  %v3519_v2 = vmax.f32 %v3373_v57, 0.0  ;;  %v3579_v31 = vsel %vm445_vm1, %v3516_v23, -inf }
 0x99b   :  { %v7578_v17 = vpop.f32.mrf.mxu0  ;;  %v3608_v29 = vmax.f32 %v3606_v13, %v3607_v42  ;;  %v3580_v9 = vmax.f32 %v3578_v47, %v3579_v31 }
 0x99c   :  { %v3383_v6 = vadd.f32 %v7578_v17, %v7576_v41  ;;  %v3518_v60 = vmax.f32 %v3368_v38, 0.0  ;;  %v3624_v19 = vsel %vm445_vm1, %v3519_v2, -inf }
 0x99d   :  { %v7581_v21 = vpop.f32.mrf.mxu0 }
 0x99e   :  { %v3378_v63 = vadd.f32 %v7576_v41, %v7581_v21  ;;  %v3594_v21 = vsel %vm445_vm1, %v3517_v25, -inf  ;;  %v3521_v5 = vmax.f32 %v3383_v6, 0.0  ;;  %v3609_v48 = vsel %vm445_vm1, %v3518_v60, -inf }
 0x99f   :  { %v7589_v53 = vpop.f32.mrf.mxu0  ;;  %v3610_v37 = vmax.f32 %v3608_v29, %v3609_v48 }
 0x9a0   :  { %v3393_v27 = vadd.f32 %v7589_v53, %v7576_v41  ;;  %v3520_v20 = vmax.f32 %v3378_v63, 0.0  ;;  %v3566_v10 = vsel %vm445_vm1, %v3521_v5, -inf }
 0x9a1   :  { %v7594_v61 = vpop.f32.mrf.mxu0  ;;  %v3567_v18 = vmax.f32 %v3565_v39, %v3566_v10 }
 0x9a2   :  { %v3388_v17 = vadd.f32 %v7576_v41, %v7594_v61  ;;  %v3550_v61 = vmax.f32 %v3548_v34, %v3549_v56 }
 0x9a3   :  { %v7597_v62 = vpop.f32.mrf.mxu0 }
 0x9a4   :  { %v3403_v12 = vadd.f32 %v7597_v62, %v7576_v41  ;;  %v3523_v62 = vmax.f32 %v3393_v27, 0.0  ;;  %v3522_v50 = vmax.f32 %v3388_v17, 0.0 }
 0x9a5   :  { %v7604_v55 = vpop.f32.mrf.mxu0 }
 0x9a6   :  { %v3398_v40 = vadd.f32 %v7576_v41, %v7604_v55  ;;  %v3595_v55 = vmax.f32 %v3593_v26, %v3594_v21  ;;  %v3525_v4 = vmax.f32 %v3403_v12, 0.0  ;;  %v3596_v3 = vsel %vm445_vm1, %v3523_v62, -inf }
 0x9a7   :  { %v5398_v51 = vpop.f32.mrf.mxu0  ;;  %v3581_v24 = vsel %vm445_vm1, %v3522_v50, -inf }
 0x9a8   :  { %v3413_v30 = vadd.f32 %v5398_v51, %v7576_v41  ;;  %v3524_v33 = vmax.f32 %v3398_v40, 0.0  ;;  %v3551_v51 = vsel %vm445_vm1, %v3520_v20, -inf  ;;  %v3626_v13 = vsel %vm445_vm1, %v3525_v4, -inf }
 0x9a9   :  { %v3407_v14 = vpop.f32.mrf.mxu0  ;;  %v3552_v28 = vmax.f32 %v3550_v61, %v3551_v51  ;;  %v3597_v25 = vmax.f32 %v3595_v55, %v3596_v3  ;;  %v3582_v58 = vmax.f32 %v3580_v9, %v3581_v24 }
 0x9aa   :  { %v3408_v46 = vadd.f32 %v7576_v41, %v3407_v14  ;;  %v3527_v54 = vmax.f32 %v3413_v30, 0.0  ;;  %v3625_v14 = vmax.f32 %v3623_v7, %v3624_v19  ;;  %v3611_v45 = vsel %vm445_vm1, %v3524_v33, -inf }
 0x9ab   :  { %v7623_v49 = vpop.f32.mrf.mxu0  ;;  %v3612_v16 = vmax.f32 %v3610_v37, %v3611_v45 }
 0x9ac   :  { %v3526_v11 = vmax.f32 %v3408_v46, 0.0  ;;  %v3423_v8 = vadd.f32 %v7623_v49, %v7576_v41  ;;  %v3568_v57 = vsel %vm445_vm1, %v3527_v54, -inf  ;;  %v7680_v23 = vmax.f32 %v3625_v14, %v3626_v13 }
 0x9ad   :  { %v3417_v15 = vpop.f32.mrf.mxu0  ;;  %v3569_v56 = vmax.f32 %v3567_v18, %v3568_v57 }
 0x9ae   :  { %v3418_v44 = vadd.f32 %v7576_v41, %v3417_v15  ;;  %v3553_v49 = vsel %vm445_vm1, %v3526_v11, -inf  ;;  %v3529_v6 = vmax.f32 %v3423_v8, 0.0 }
 0x9af   :  { %v7639_v22 = vpop.f32.mrf.mxu0  ;;  %v3554_v27 = vmax.f32 %v3552_v28, %v3553_v49 }
 0x9b0   :  { %v3528_v63 = vmax.f32 %v3418_v44, 0.0  ;;  %v3433_v47 = vadd.f32 %v7639_v22, %v7576_v41  ;;  %v3598_v5 = vsel %vm445_vm1, %v3529_v6, -inf }
 0x9b1   :  { %v7646_v52 = vpop.f32.mrf.mxu0  ;;  %v3599_v10 = vmax.f32 %v3597_v25, %v3598_v5 }
 0x9b2   :  { %v3428_v2 = vadd.f32 %v7576_v41, %v7646_v52  ;;  %v3583_v20 = vsel %vm445_vm1, %v3528_v63, -inf  ;;  %v3531_v52 = vmax.f32 %v3433_v47, 0.0  ;;  %v3876_v47 = vld [vmem:[%s7930_s4 + $0x10] sm:$0xff] }
 0x9b3   :  { %v5407_v43 = vpop.f32.mrf.mxu0  ;;  %v3584_v51 = vmax.f32 %v3582_v58, %v3583_v20 }
 0x9b4   :  { %v3443_v32 = vadd.f32 %v5407_v43, %v7576_v41  ;;  %v3530_v29 = vmax.f32 %v3428_v2, 0.0  ;;  %v3628_v3 = vsel %vm445_vm1, %v3531_v52, -inf }
 0x9b5   :  { %v3437_v53 = vpop.f32.mrf.mxu0 }
 0x9b6   :  { %v3438_v35 = vadd.f32 %v7576_v41, %v3437_v53  ;;  %v3533_v38 = vmax.f32 %v3443_v32, 0.0  ;;  %v3613_v14 = vsel %vm445_vm1, %v3530_v29, -inf }
 0x9b7   :  { %v5410_v36 = vpop.f32.mrf.mxu0  ;;  %v3614_v57 = vmax.f32 %v3612_v16, %v3613_v14  ;;  %v4837_v16 = vld [vmem:[%s7929_s3 + $0xa0] ss:$0 sm:$0xff]  ;;  %v3880_v14 = vld [vmem:[%s7930_s4 + $0x30] sm:$0xff] }
 0x9b8   :  { %v3453_v59 = vadd.f32 %v5410_v36, %v7576_v41  ;;  %v3532_v15 = vmax.f32 %v3438_v35, 0.0  ;;  %v3570_v17 = vsel %vm445_vm1, %v3533_v38, -inf }
 0x9b9   :  { %v3447_v0 = vpop.f32.mrf.mxu0  ;;  %v3571_v39 = vmax.f32 %v3569_v56, %v3570_v17 }
 0x9ba   :  { %v3448_v34 = vadd.f32 %v7576_v41, %v3447_v0  ;;  %v3535_v43 = vmax.f32 %v3453_v59, 0.0  ;;  %v3555_v12 = vsel %vm445_vm1, %v3532_v15, -inf }
 0x9bb   :  { %v5413_v1 = vpop.f32.mrf.mxu0  ;;  %v3556_v19 = vmax.f32 %v3554_v27, %v3555_v12 }
 0x9bc   :  { %v3534_v7 = vmax.f32 %v3448_v34, 0.0  ;;  %v3463_v30 = vadd.f32 %v5413_v1, %v7576_v41  ;;  %v3600_v48 = vsel %vm445_vm1, %v3535_v43, -inf  ;;  %v3629_v34 = vmax.f32 %v7680_v23, %v3628_v3  ;;  %v3877_v23 = vld [vmem:[%s7930_s4 + $0x18] sm:$0xff]  ;;  %v4125_v3 = vld [vmem:[%s7931_s5 + $0x28] sm:$0xff] }
 0x9bd   :  { %v3457_v26 = vpop.f32.mrf.mxu0  ;;  %v3601_v24 = vmax.f32 %v3599_v10, %v3600_v48  ;;  %5457 = vmatprep.subr.mxu1 %v3877_v23 }
 0x9be   :  { %v3458_v40 = vadd.f32 %v7576_v41, %v3457_v26  ;;  %v3585_v62 = vsel %vm445_vm1, %v3534_v7, -inf  ;;  %v3537_v54 = vmax.f32 %v3463_v30, 0.0 }
 0x9bf   :  { %v5416_v42 = vpop.f32.mrf.mxu0  ;;  %v3586_v8 = vmax.f32 %v3584_v51, %v3585_v62  ;;  %v4844_v62 = vld [vmem:[%s7929_s3 + $0xc8] ss:$0 sm:$0xff] }
 0x9c0   :  { %v3473_v60 = vadd.f32 %v5416_v42, %v7576_v41  ;;  %v3536_v55 = vmax.f32 %v3458_v40, 0.0  ;;  %v3630_v38 = vsel %vm445_vm1, %v3537_v54, -inf  ;;  %v3875_v42 = vld [vmem:[%s7930_s4 + $0x8] sm:$0xff] }
 0x9c1   :  { %v3467_v21 = vpop.f32.mrf.mxu0  ;;  %v3631_v15 = vmax.f32 %v3629_v34, %v3630_v38 }
 0x9c2   :  { %v3539_v31 = vmax.f32 %v3473_v60, 0.0  ;;  %v3468_v22 = vadd.f32 %v7576_v41, %v3467_v21  ;;  %v3615_v18 = vsel %vm445_vm1, %v3536_v55, -inf }
 0x9c3   :  { %v5419_v53 = vpop.f32.mrf.mxu0  ;;  %v3616_v58 = vmax.f32 %v3614_v57, %v3615_v18 }
 0x9c4   :  { %v3538_v61 = vmax.f32 %v3468_v22, 0.0  ;;  %v3483_v46 = vadd.f32 %v5419_v53, %v7576_v41  ;;  %v3572_v50 = vsel %vm445_vm1, %v3539_v31, -inf }
 0x9c5   :  { %v3477_v36 = vpop.f32.mrf.mxu0  ;;  %v3573_v37 = vmax.f32 %v3571_v39, %v3572_v50  ;;  %v3874_v39 = vld [vmem:[%s7930_s4] sm:$0xff] }
 0x9c6   :  { %v3557_v9 = vsel %vm445_vm1, %v3538_v61, -inf  ;;  %v3541_v4 = vmax.f32 %v3483_v46, 0.0  ;;  %v3478_v33 = vadd.f32 %v7576_v41, %v3477_v36  ;;  %v8115_v61 = vmov 0.0   ;;  %v3882_v46 = vld [vmem:[%s7930_s4 + $0x40] sm:$0xff] }
 0x9c7   :  { %v3558_v32 = vmax.f32 %v3556_v19, %v3557_v9  ;;  %v5422_v0 = vpop.f32.mrf.mxu0  ;;  %v3881_v19 = vld [vmem:[%s7930_s4 + $0x38] sm:$0xff]  ;;  %5474 = vmatprep.subr.mxu0 %v3882_v46 }
 0x9c8   :  { %v3540_v11 = vmax.f32 %v3478_v33, 0.0  ;;  %v3493_v35 = vadd.f32 %v5422_v0, %v7576_v41  ;;  %v3602_v44 = vsel %vm445_vm1, %v3541_v4, -inf }
 0x9c9   :  { %v3487_v1 = vpop.f32.mrf.mxu0  ;;  %5431 = vmatprep.mubr.msk.f32.mxu1 %vm445_vm1, %v3558_v32  ;;  %v3603_v26 = vmax.f32 %v3601_v24, %v3602_v44  ;;  %v4851_v24 = vld [vmem:[%s7930_s4 + $0x20] ss:$0 sm:$0xff] }
 0x9ca   :  { %v3587_v28 = vsel %vm445_vm1, %v3540_v11, -inf  ;;  %v3543_v13 = vmax.f32 %v3493_v35, 0.0  ;;  %v3488_v45 = vadd.f32 %v7576_v41, %v3487_v1  ;;  %5432 = vmatmul.mubr.msk.f32.vlgmr.msra.gmra.mxu1 %vm445_vm1, %v3573_v37  ;;  %v3879_v37 = vld [vmem:[%s7930_s4 + $0x28] sm:$0xff]  ;;  %v4127_v11 = vld [vmem:[%s7931_s5 + $0x38] sm:$0xff]  ;;  %v4126_v35 = vld [vmem:[%s7931_s5 + $0x30] sm:$0xff] }
 0x9cb   :  { %v3588_v59 = vmax.f32 %v3586_v8, %v3587_v28  ;;  %5458 = vmatpush3.msra.mxu1 %v3877_v23 }
 0x9cc   :  { %v3542_v25 = vmax.f32 %v3488_v45, 0.0  ;;  %v3632_v49 = vsel %vm445_vm1, %v3543_v13, -inf  ;;  %5459 = vmatprep.subr.mxu1 %v3876_v47 }
 0x9cd   :  { %5434 = vmatprep.mubr.msk.f32.mxu1 %vm445_vm1, %v3588_v59  ;;  %v3633_v63 = vmax.f32 %v3631_v15, %v3632_v49  ;;  %5460 = vmatpush3.msra.mxu1 %v3876_v47  ;;  %v4131_v59 = vld [vmem:[%s7931_s5 + $0x58] sm:$0xff] }
 0x9ce   :  { %v3617_v6 = vsel %vm445_vm1, %v3542_v25, -inf  ;;  %5435 = vmatmul.mubr.msk.f32.gmra.mxu1 %vm445_vm1, %v3603_v26  ;;  %5461 = vmatprep.subr.mxu1 %v3875_v42  ;;  %v4130_v25 = vld [vmem:[%s7931_s5 + $0x50] sm:$0xff] }
 0x9cf   :  { %v3618_v41 = vmax.f32 %v3616_v58, %v3617_v6  ;;  %5462 = vmatpush3.msra.mxu1 %v3875_v42  ;;  %v4128_v42 = vld [vmem:[%s7931_s5 + $0x40] sm:$0xff] }
 0x9d0   :  { %5463 = vmatprep.subr.mxu1 %v3874_v39 }
 0x9d1   :  { %5437 = vmatprep.mubr.msk.f32.mxu1 %vm445_vm1, %v3618_v41  ;;  %5464 = vmatpush3.msra.mxu1 %v3874_v39  ;;  %v4129_v41 = vld [vmem:[%s7931_s5 + $0x48] sm:$0xff]  ;;  %v4143_v39 = vld [vmem:[%s7931_s5 + $0xb8] sm:$0xff] }
 0x9d2   :  { %5438 = vmatmul.mubr.msk.f32.gmra.mxu1 %vm445_vm1, %v3633_v63  ;;  %5491 = vmatprep.subr.mxu1 %v8115_v61 }
 0xa8a   :  { %v5433_v56 = vpop.f32.mrf.mxu1 }
 0xa8b   :  { %v3728_v2 = vadd.f32 %v5433_v56, %v4837_v16  ;;  %v7809_v56 = vld [vmem:[%s7930_s4 + $0x48] ss:$0 sm:$0xff] }
 0xa8c   :  { %v3722_v60 = vpop.f32.mrf.mxu1 }
 0xa8d   :  { %v3723_v27 = vadd.f32 %v4837_v16, %v3722_v60  ;;  %v3752_v7 = vmax.f32 %v3728_v2, 0.0 }
 0xa8e   :  { %v5436_v17 = vpop.f32.mrf.mxu1 }
 0xa8f   :  { %v3751_v43 = vmax.f32 %v3723_v27, 0.0  ;;  %v3738_v21 = vadd.f32 %v5436_v17, %v4837_v16  ;;  %v4139_v27 = vld [vmem:[%s7931_s5 + $0x98] sm:$0xff] }
 0xa90   :  { %v3732_v12 = vpop.f32.mrf.mxu1 }
 0xa91   :  { %v3733_v40 = vadd.f32 %v4837_v16, %v3732_v12  ;;  %5448 = vmatprep.mubr.msk.f32.mxu0 %vm445_vm1, %v3751_v43  ;;  %v3754_v5 = vmax.f32 %v3738_v21, 0.0  ;;  %v4138_v21 = vld [vmem:[%s7931_s5 + $0x90] sm:$0xff] }
 0xa92   :  { %v5439_v31 = vpop.f32.mrf.mxu1  ;;  %5449 = vmatmul.mubr.msk.f32.vlgmr.msra.gmra.mxu0 %vm445_vm1, %v3752_v7  ;;  %v4135_v7 = vld [vmem:[%s7931_s5 + $0x78] sm:$0xff] }
 0xa93   :  { %v3753_v22 = vmax.f32 %v3733_v40, 0.0  ;;  %v3748_v20 = vadd.f32 %v5439_v31, %v4837_v16  ;;  %5475 = vmatpush3.msra.mxu0 %v3882_v46  ;;  %v4134_v40 = vld [vmem:[%s7931_s5 + $0x70] sm:$0xff]  ;;  %v4137_v31 = vld [vmem:[%s7931_s5 + $0x88] sm:$0xff] }
 0xa94   :  { %v3742_v52 = vpop.f32.mrf.mxu1  ;;  %5476 = vmatprep.subr.mxu0 %v3881_v19  ;;  %v4146_v46 = vld [vmem:[%s7931_s5 + $0xd0] sm:$0xff] }
 0xa95   :  { %v3743_v30 = vadd.f32 %v4837_v16, %v3742_v52  ;;  %5451 = vmatprep.mubr.msk.f32.mxu0 %vm445_vm1, %v3753_v22  ;;  %v3756_v29 = vmax.f32 %v3748_v20, 0.0  ;;  %5477 = vmatpush3.msra.mxu0 %v3881_v19  ;;  %v4124_v16 = vld [vmem:[%s7931_s5 + $0x20] sm:$0xff]  ;;  %v4133_v22 = vld [vmem:[%s7931_s5 + $0x68] sm:$0xff] }
 0xa96   :  { %5452 = vmatmul.mubr.msk.f32.gmra.mxu0 %vm445_vm1, %v3754_v5  ;;  %5478 = vmatprep.subr.mxu0 %v3880_v14  ;;  %v4136_v5 = vld [vmem:[%s7931_s5 + $0x80] sm:$0xff] }
 0xa97   :  { %v3755_v53 = vmax.f32 %v3743_v30, 0.0  ;;  %5479 = vmatpush3.msra.mxu0 %v3880_v14  ;;  %v4132_v30 = vld [vmem:[%s7931_s5 + $0x60] sm:$0xff] }
 0xa98   :  { %5480 = vmatprep.subr.mxu0 %v3879_v37 }
 0xa99   :  { %5454 = vmatprep.mubr.msk.f32.mxu0 %vm445_vm1, %v3755_v53  ;;  %5481 = vmatpush3.msra.mxu0 %v3879_v37  ;;  %v4147_v53 = vld [vmem:[%s7931_s5 + $0xd8] sm:$0xff] }
 0xa9a   :  { %5455 = vmatmul.mubr.msk.f32.gmra.mxu0 %vm445_vm1, %v3756_v29  ;;  %5502 = vmatprep.subr.mxu0 %v8115_v61 }
 0xb52   :  { %v5450_v48 = vpop.f32.mrf.mxu0 }
 0xb53   :  { %v3851_v55 = vadd.f32 %v5450_v48, %v4844_v62  ;;  %v4142_v48 = vld [vmem:[%s7931_s5 + $0xb0] sm:$0xff] }
 0xb54   :  { %v3845_v50 = vpop.f32.mrf.mxu0 }
 0xb55   :  { %v3846_v36 = vadd.f32 %v4844_v62, %v3845_v50  ;;  %v4141_v50 = vld [vmem:[%s7931_s5 + $0xa8] sm:$0xff] }
 0xb56   :  { %v5453_v9 = vpop.f32.mrf.mxu0 }
 0xb57   :  { %5465 = vmatprep.mubr.msk.f32.mxu1 %vm445_vm1, %v3846_v36  ;;  %v3861_v10 = vadd.f32 %v5453_v9, %v4844_v62  ;;  %v4144_v36 = vld [vmem:[%s7931_s5 + $0xc0] sm:$0xff] }
 0xb58   :  { %v3855_v4 = vpop.f32.mrf.mxu0  ;;  %5466 = vmatmul.mubr.msk.f32.vlgmr.msra.gmra.mxu1 %vm445_vm1, %v3851_v55 }
 0xb59   :  { %v3856_v33 = vadd.f32 %v4844_v62, %v3855_v4  ;;  %5492 = vmatpush3.msra.mxu1 %v4127_v11  ;;  %v4140_v4 = vld [vmem:[%s7931_s5 + $0xa0] sm:$0xff] }
 0xb5a   :  { %v5456_v51 = vpop.f32.mrf.mxu0  ;;  %5493 = vmatprep.subr.mxu1 %v8115_v61 }
 0xb5b   :  { %5468 = vmatprep.mubr.msk.f32.mxu1 %vm445_vm1, %v3856_v33  ;;  %v3871_v0 = vadd.f32 %v5456_v51, %v4844_v62  ;;  %5494 = vmatpush3.msra.mxu1 %v4126_v35  ;;  %v4601_v51 = vld [vmem:[%s7931_s5 + $0xf8] sm:$0xff] }
 0xb5c   :  { %v3865_v54 = vpop.f32.mrf.mxu0  ;;  %5469 = vmatmul.mubr.msk.f32.gmra.mxu1 %vm445_vm1, %v3861_v10  ;;  %5495 = vmatprep.subr.mxu1 %v8115_v61  ;;  %v4602_v10 = vld [vmem:[%s7931_s5 + $0x100] sm:$0xff] }
 0xb5d   :  { %v3866_v32 = vadd.f32 %v4844_v62, %v3865_v54  ;;  %5496 = vmatpush3.msra.mxu1 %v4125_v3  ;;  %v4145_v62 = vld [vmem:[%s7931_s5 + $0xc8] sm:$0xff]  ;;  %v4600_v54 = vld [vmem:[%s7931_s5 + $0xf0] sm:$0xff] }
 0xb5e   :  { %5497 = vmatprep.subr.mxu1 %v8115_v61 }
 0xb5f   :  { %5471 = vmatprep.mubr.msk.f32.mxu1 %vm445_vm1, %v3866_v32  ;;  %5498 = vmatpush3.msra.mxu1 %v4124_v16  ;;  %v4599_v32 = vld [vmem:[%s7931_s5 + $0xe8] sm:$0xff] }
 0xb60   :  { %5472 = vmatmul.mubr.msk.f32.gmra.mxu1 %vm445_vm1, %v3871_v0  ;;  %5513 = vmatprep.subr.mxu1 %v8115_v61 }
 0xb61   :  { %5499 = vmatprep.mubr.msk.f32.mxu1 %vm5648_vm0, %v8115_v61 }
 0xc18   :  { %v5467_v8 = vpop.f32.mrf.mxu1 }
 0xc19   :  { %v3978_v44 = vadd.f32 %v5467_v8, %v4851_v24 }
 0xc1a   :  { %v3972_v1 = vpop.f32.mrf.mxu1 }
 0xc1b   :  { %v3973_v18 = vadd.f32 %v4851_v24, %v3972_v1  ;;  %v4002_v45 = vmax.f32 %v3978_v44, 0.0 }
 0xc1c   :  { %v5470_v28 = vpop.f32.mrf.mxu1 }
 0xc1d   :  { %v4001_v13 = vmax.f32 %v3973_v18, 0.0  ;;  %v3988_v57 = vadd.f32 %v5470_v28, %v4851_v24 }
 0xc1e   :  { %v3982_v38 = vpop.f32.mrf.mxu1 }
 0xc1f   :  { %v3983_v34 = vadd.f32 %v4851_v24, %v3982_v38  ;;  %5482 = vmatprep.mubr.msk.f32.mxu0 %vm445_vm1, %v4001_v13  ;;  %v4004_v49 = vmax.f32 %v3988_v57, 0.0 }
 0xc20   :  { %v5473_v26 = vpop.f32.mrf.mxu1  ;;  %5483 = vmatmul.mubr.msk.f32.vlgmr.msra.gmra.mxu0 %vm445_vm1, %v4002_v45 }
 0xc21   :  { %v4003_v58 = vmax.f32 %v3983_v34, 0.0  ;;  %5503 = vmatpush3.msra.mxu0 %v4131_v59  ;;  %v3998_v15 = vadd.f32 %v5473_v26, %v4851_v24 }
 0xc22   :  { %v3992_v6 = vpop.f32.mrf.mxu1  ;;  %5504 = vmatprep.subr.mxu0 %v8115_v61 }
 0xc23   :  { %v3993_v63 = vadd.f32 %v4851_v24, %v3992_v6  ;;  %5485 = vmatprep.mubr.msk.f32.mxu0 %vm445_vm1, %v4003_v58  ;;  %5505 = vmatpush3.msra.mxu0 %v4130_v25  ;;  %v4006_v47 = vmax.f32 %v3998_v15, 0.0  ;;  %v8116_v15 = vld [vmem:[#allocation35_spill] sm:$0xff] }
 0xc24   :  { %5486 = vmatmul.mubr.msk.f32.gmra.mxu0 %vm445_vm1, %v4004_v49  ;;  %5506 = vmatprep.subr.mxu0 %v8115_v61 }
 0xc25   :  { %v4005_v23 = vmax.f32 %v3993_v63, 0.0  ;;  %5507 = vmatpush3.msra.mxu0 %v4129_v41  ;;  %v4871_v63 = vld [vmem:[%s7931_s5 + $0x108] ss:$0 sm:$0xff] }
 0xc26   :  { %5508 = vmatprep.subr.mxu0 %v8115_v61 }
 0xc27   :  { %5488 = vmatprep.mubr.msk.f32.mxu0 %vm445_vm1, %v4005_v23  ;;  %5509 = vmatpush3.msra.mxu0 %v4128_v42 }
 0xc28   :  { %5489 = vmatmul.mubr.msk.f32.gmra.mxu0 %vm445_vm1, %v4006_v47  ;;  %5524 = vmatprep.subr.mxu0 %v8115_v61 }
 0xc29   :  { %5510 = vmatprep.mubr.msk.f32.mxu0 %vm5648_vm0, %v8115_v61 }
 0xce0   :  { %v5484_v2 = vpop.f32.mrf.mxu0 }
 0xce1   :  { %v4101_v60 = vadd.f32 %v5484_v2, %v7809_v56 }
 0xce2   :  { %v4095_v17 = vpop.f32.mrf.mxu0 }
 0xce3   :  { %v4096_v43 = vadd.f32 %v7809_v56, %v4095_v17  ;;  %5511 = vmatmul.mubr.msk.f32.vlgmr.msra.gmra.mxu0 %vm445_vm1, %v4101_v60 }
 0xce4   :  { %5525 = vmatpush3.msra.mxu0 %v4139_v27  ;;  %5532 = vmatprep.mubr.msk.f32.mxu0 %vm5648_vm0, %v8115_v61  ;;  %v5487_v12 = vpop.f32.mrf.mxu0 }
 0xce5   :  { %5526 = vmatprep.subr.mxu0 %v8115_v61  ;;  %5500 = vmatmul.mubr.msk.f32.vlgmr.msra.gmra.mxu1 %vm445_vm1, %v4096_v43  ;;  %v4111_v20 = vadd.f32 %v5487_v12, %v7809_v56 }
 0xce6   :  { %5514 = vmatpush3.msra.mxu1 %v4135_v7  ;;  %5527 = vmatpush3.msra.mxu0 %v4138_v21  ;;  %v4105_v52 = vpop.f32.mrf.mxu0 }
 0xce7   :  { %5515 = vmatprep.subr.mxu1 %v8115_v61  ;;  %5528 = vmatprep.subr.mxu0 %v8115_v61  ;;  %v4106_v29 = vadd.f32 %v7809_v56, %v4105_v52 }
 0xce8   :  { %5516 = vmatpush3.msra.mxu1 %v4134_v40  ;;  %5529 = vmatpush3.msra.mxu0 %v4137_v31  ;;  %v5490_v19 = vpop.f32.mrf.mxu0 }
 0xce9   :  { %5517 = vmatprep.subr.mxu1 %v8115_v61  ;;  %5530 = vmatprep.subr.mxu0 %v8115_v61  ;;  %v4121_v9 = vadd.f32 %v5490_v19, %v7809_v56 }
 0xcea   :  { %5518 = vmatpush3.msra.mxu1 %v4133_v22  ;;  %5531 = vmatpush3.msra.mxu0 %v4136_v5  ;;  %v4115_v55 = vpop.f32.mrf.mxu0 }
 0xceb   :  { %5519 = vmatprep.subr.mxu1 %v8115_v61  ;;  %5533 = vmatmul.mubr.msk.f32.vlgmr.msra.gmra.mxu0 %vm445_vm1, %v4111_v20  ;;  %v4116_v33 = vadd.f32 %v7809_v56, %v4115_v55 }
 0xcec   :  { %5546 = vmatprep.subr.mxu0 %v8115_v61  ;;  %5520 = vmatpush3.msra.mxu1 %v4132_v30 }
 0xced   :  { %5521 = vmatprep.mubr.msk.f32.mxu1 %vm5648_vm0, %v8115_v61  ;;  %5547 = vmatpush3.msra.mxu0 %v4147_v53 }
 0xcee   :  { %5522 = vmatmul.mubr.msk.f32.vlgmr.msra.gmra.mxu1 %vm445_vm1, %v4106_v29  ;;  %5535 = vmatprep.subr.mxu1 %v8115_v61 }
 0xcef   :  { %5548 = vmatprep.subr.mxu0 %v8115_v61  ;;  %5536 = vmatpush3.msra.mxu1 %v4143_v39 }
 0xcf0   :  { %5549 = vmatpush3.msra.mxu0 %v4146_v46  ;;  %5537 = vmatprep.subr.mxu1 %v8115_v61 }
 0xcf1   :  { %5550 = vmatprep.subr.mxu0 %v8115_v61  ;;  %5538 = vmatpush3.msra.mxu1 %v4142_v48 }
 0xcf2   :  { %5551 = vmatpush3.msra.mxu0 %v4145_v62  ;;  %5539 = vmatprep.subr.mxu1 %v8115_v61 }
 0xcf3   :  { %5552 = vmatprep.subr.mxu0 %v8115_v61  ;;  %5540 = vmatpush3.msra.mxu1 %v4141_v50 }
 0xcf4   :  { %5553 = vmatpush3.msra.mxu0 %v4144_v36  ;;  %5554 = vmatprep.mubr.msk.f32.mxu0 %vm5648_vm0, %v8115_v61 }
 0xcf5   :  { %5541 = vmatprep.subr.mxu1 %v8115_v61  ;;  %5555 = vmatmul.mubr.msk.f32.vlgmr.msra.gmra.mxu0 %vm445_vm1, %v4121_v9 }
 0xcf6   :  { %5542 = vmatpush3.msra.mxu1 %v4140_v4  ;;  %5543 = vmatprep.mubr.msk.f32.mxu1 %vm5648_vm0, %v8115_v61 }
 0xcf7   :  { %5544 = vmatmul.mubr.msk.f32.vlgmr.msra.gmra.mxu1 %vm445_vm1, %v4116_v33  ;;  %5557 = vmatprep.subr.mxu1 %v8115_v61 }
 0xcf8   :  { %5565 = vmatprep.mubr.msk.f32.mxu1 %vm5648_vm0, %v8115_v61  ;;  %5558 = vmatpush3.msra.mxu1 %v4602_v10 }
 0xcf9   :  { %5559 = vmatprep.subr.mxu1 %v8115_v61 }
 0xcfa   :  { %5560 = vmatpush3.msra.mxu1 %v4601_v51 }
 0xcfb   :  { %5561 = vmatprep.subr.mxu1 %v8115_v61 }
 0xcfc   :  { %5562 = vmatpush3.msra.mxu1 %v4600_v54 }
 0xcfd   :  { %5563 = vmatprep.subr.mxu1 %v8115_v61 }
 0xcfe   :  { %5564 = vmatpush3.msra.mxu1 %v4599_v32 }
 0xda3   :  { %v4290_v0 = vpop.f32.mrf.mxu0 }
 0xda4   :  { %v4587_v44 = vsel %vm445_vm1, %v4290_v0, 0.0 }
 0xda5   :  { %v4217_v14 = vpop.f32.mrf.mxu1  ;;  %v5512_v37 = vpop.f32.mrf.mxu0 }
 0xda6   :  { %v4586_v24 = vsel %vm445_vm1, %v4217_v14, 0.0 }
 0xda7   :  { %v5501_v11 = vpop.f32.mrf.mxu1  ;;  %v4588_v28 = vadd.f32 %v4587_v44, %v4586_v24 }
 0xdab   :  { %v4436_v35 = vpop.f32.mrf.mxu0 }
 0xdac   :  { %v4591_v61 = vsel %vm445_vm1, %v4436_v35, 0.0 }
 0xdad   :  { %v5534_v3 = vpop.f32.mrf.mxu0 }
 0xdae   :  { %v4363_v8 = vpop.f32.mrf.mxu1 }
 0xdaf   :  { %v4589_v1 = vsel %vm445_vm1, %v4363_v8, 0.0 }
 0xdb0   :  { %v5523_v18 = vpop.f32.mrf.mxu1  ;;  %v4590_v13 = vadd.f32 %v4589_v1, %v4588_v28 }
 0xdb2   :  { %v4592_v38 = vadd.f32 %v4591_v61, %v4590_v13 }
 0xdb5   :  { %v4582_v45 = vpop.f32.mrf.mxu0 }
 0xdb6   :  { %v4595_v58 = vsel %vm445_vm1, %v4582_v45, 0.0 }
 0xdb7   :  { %v4509_v57 = vpop.f32.mrf.mxu1  ;;  %v5556_v59 = vpop.f32.mrf.mxu0 }
 0xdb8   :  { %v4593_v34 = vsel %vm445_vm1, %v4509_v57, 0.0 }
 0xdb9   :  { %v4594_v26 = vadd.f32 %v4593_v34, %v4592_v38  ;;  %v5545_v25 = vpop.f32.mrf.mxu1 }
 0xdbb   :  { %v4596_v49 = vadd.f32 %v4595_v58, %v4594_v26 }
 0xdbd   :  { %v4597_v6 = vadd.f32 %v4596_v49, %v8116_v15 }
 0xdbf   :  { %v4598_v41 = vmax.f32 %v4597_v6, 0.0 }
 0xdc1   :  { %5566 = vmatmul.mubr.msk.f32.vlgmr.msra.gmra.mxu1 %vm445_vm1, %v4598_v41 }
 0xe81   :  { %v4677_v23 = vpop.f32.mrf.mxu1 }
 0xe82   :  { %v4678_v47 = vadd.f32 %v4871_v63, %v4677_v23 }
 0xe83   :  { %v5567_v42 = vpop.f32.mrf.mxu1 }
 0xe84   :  { %4681 = vst.msk [vmem:[%s7933_s7] sm:$0xff] %vm445_vm1, %v4678_v47 }
 0xe85   :  { %4686 = vsyncmov [#allocation3] }
 0xe88   :  { %s4687_s1 = vpop.sfrf %4686 }
 0xe89   :  { %p4873_p0 = scmp.ne.s32.totalorder %s4687_s1, 0 }
 0xe8b   :  { %4691 = shalt.err (%p4873_p0)  }

</bundles_post_ra>
